<compile_context>
chip_gen: v5e
topology: v5e:2x2
jax: 0.10.0
libtpu: 0.0.40
codegen_flags: <defaults>
</compile_context>

<pallas_src>
import functools

import jax
import jax.numpy as jnp
from jax.experimental import pallas as pl
from jax.experimental.pallas import tpu as pltpu

EMBED_SIZE = 32      # embed_size argument of EncoderCNN
FEAT_DIM = 2048      # resnet.fc.in_features for ResNet-50
STEM_CH = 64


def _round_up(x, m):
    return (x + m - 1) // m * m


def _ceil_div(a, b):
    return -(-a // b)


@functools.lru_cache(maxsize=None)
def _vmem_limit_bytes():
    """Generation-aware scoped-VMEM budget: ~half of physical VMEM, clamped.

    v7x (64 MiB physical)  -> 32 MiB; v5e/v6e (128 MiB physical) -> 64 MiB.
    """
    try:
        cap = pltpu.get_tpu_info().vmem_capacity_bytes
    except Exception:
        cap = 128 * 1024 * 1024
    return int(min(96 * 1024 * 1024, max(32 * 1024 * 1024, cap // 2)))


# --------------------------------------------------------------------------- #
# Pallas kernels                                                              #
# --------------------------------------------------------------------------- #
def conv_mm_bias_relu_kernel(p_ref, w_ref, b_ref, o_ref, acc_ref):
    """(tm,tk) @ (tk,tn) bf16 MXU tile; f32 accumulation across the K grid axis;
    bias + ReLU fused into the last-K epilogue; bf16 output store."""
    k = pl.program_id(2)

    @pl.when(k == 0)
    def _():
        acc_ref[...] = jnp.zeros_like(acc_ref)

    acc_ref[...] += jnp.dot(p_ref[...], w_ref[...],
                            preferred_element_type=jnp.float32)

    @pl.when(k == pl.num_programs(2) - 1)
    def _():
        o_ref[...] = jnp.maximum(acc_ref[...] + b_ref[...],
                                 0.0).astype(o_ref.dtype)


def head_kernel(f_ref, w_ref, b_ref, o_ref, pooled_acc, *, inv_hw):
    """Fused AdaptiveAvgPool2d((1,1)) -> L2 row-normalize -> Linear.

    Grid = (batch_tiles, hw_tiles).  f_ref block: (Bt, t_hw, C) bf16.
    The pooled sum accumulates into a (Bt, 8, C) f32 scratch via element-wise
    VPU adds of full (8, C) vreg slabs; the single cross-sublane reduction,
    normalization and Linear run once on the last HW step.
    """
    hw_i = pl.program_id(1)

    @pl.when(hw_i == 0)
    def _():
        pooled_acc[...] = jnp.zeros_like(pooled_acc)

    bt, t_hw, c = f_ref.shape
    f = f_ref[...].astype(jnp.float32)
    # Layout-preserving split of the sublane dim: (Bt, t_hw, C) ->
    # (Bt, t_hw//8, 8, C); summing axis=1 is pure VPU work (no XLU per step).
    pooled_acc[...] += f.reshape(bt, t_hw // 8, 8, c).sum(axis=1)

    @pl.when(hw_i == pl.num_programs(1) - 1)
    def _():
        pooled = pooled_acc[...].sum(axis=1) * inv_hw            # (Bt, C) mean
        # torch.div(x, torch.norm(x, 2, 1)) -- same (no-epsilon) semantics as
        # the PyTorch original; rsqrt goes to the EUP slot.
        ssq = jnp.sum(pooled * pooled, axis=1, keepdims=True)
        normalized = pooled * jax.lax.rsqrt(ssq)
        o_ref[...] = (jnp.dot(normalized, w_ref[...],
                              preferred_element_type=jnp.float32) + b_ref[...])


# --------------------------------------------------------------------------- #
# Plain-JAX glue                                                              #
# --------------------------------------------------------------------------- #
def im2col(x_nhwc, kh, kw, stride, pad):
    x = jnp.pad(x_nhwc, ((0, 0), (pad, pad), (pad, pad), (0, 0)))
    b, hp, wp, c = x.shape
    ho = (hp - kh) // stride + 1
    wo = (wp - kw) // stride + 1
    cols = []
    for i in range(kh):
        for j in range(kw):
            cols.append(
                x[:, i:i + (ho - 1) * stride + 1:stride,
                     j:j + (wo - 1) * stride + 1:stride, :]
            )
    patches = jnp.concatenate(cols, axis=-1)            # order: (kh, kw, Cin)
    return patches.reshape(b * ho * wo, kh * kw * c), ho, wo


def conv2d_relu_pallas(x_nhwc, w_oihw, bias, *, stride=2, pad=1,
                       tm_pref=512, tn_pref=1024, tk_pref=1024):
    b = x_nhwc.shape[0]
    cout, cin, kh, kw = w_oihw.shape
    patches, ho, wo = im2col(x_nhwc, kh, kw, stride, pad)
    # torch weight (Cout, Cin, kh, kw) -> (kh*kw*Cin, Cout), matching patch order.
    w_flat = jnp.transpose(w_oihw, (2, 3, 1, 0)).reshape(kh * kw * cin, cout)

    m, k = patches.shape
    n = cout

    # ---- tile selection: minimal padding, bf16-friendly granules ----------- #
    if m >= tm_pref:
        tm = tm_pref
        m_pad = _round_up(m, tm)
    else:
        tm = _round_up(m, 16)                         # bf16 sublane packing
        m_pad = tm

    if n >= tn_pref:
        tn = tn_pref
        n_pad = _round_up(n, tn)
    else:
        tn = _round_up(n, 128)                        # lane-dense output stores
        n_pad = tn

    if k <= tk_pref:
        # Single full-K block: no K grid axis padding waste (e.g. K=576 stays
        # 576 instead of being rounded up to 1024).  Legal since the block dim
        # equals the full (padded) array dim.
        tk = _round_up(k, 128) if k <= 128 else _round_up(k, 16)
        k_pad = tk
    else:
        k_steps = _ceil_div(k, tk_pref)
        tk = _round_up(_ceil_div(k, k_steps), 128)
        k_pad = _round_up(k, tk)

    # bf16 MXU inputs, f32 accumulation (bias + ReLU stay f32 in the kernel);
    # bf16 output (conv1's output feeds conv2's im2col already in bf16).
    patches_p = jnp.pad(patches, ((0, m_pad - m), (0, k_pad - k))).astype(jnp.bfloat16)
    w_p = jnp.pad(w_flat, ((0, k_pad - k), (0, n_pad - n))).astype(jnp.bfloat16)
    bias_p = jnp.pad(bias.astype(jnp.float32), (0, n_pad - n)).reshape(1, n_pad)

    y = pl.pallas_call(
        conv_mm_bias_relu_kernel,
        out_shape=jax.ShapeDtypeStruct((m_pad, n_pad), jnp.bfloat16),
        grid=(m_pad // tm, n_pad // tn, k_pad // tk),
        in_specs=[
            pl.BlockSpec((tm, tk), lambda i, j, kk: (i, kk)),
            pl.BlockSpec((tk, tn), lambda i, j, kk: (kk, j)),
            pl.BlockSpec((1, tn), lambda i, j, kk: (0, j)),
        ],
        out_specs=pl.BlockSpec((tm, tn), lambda i, j, kk: (i, j)),
        scratch_shapes=[pltpu.VMEM((tm, tn), jnp.float32)],
        compiler_params=pltpu.CompilerParams(
            dimension_semantics=("parallel", "parallel", "arbitrary"),
            vmem_limit_bytes=_vmem_limit_bytes()),
    )(patches_p, w_p, bias_p)
    return y[:m, :n].reshape(b, ho, wo, n)


def head_pallas(feat_bhwc, linear_w, linear_b, *, t_hw_pref=128, bt_pref=8):
    b, h, w, c = feat_bhwc.shape
    hw = h * w
    e = linear_w.shape[0]
    e_pad = _round_up(e, 128)                         # lane-dense final store

    bt = bt_pref if b >= bt_pref else b               # batch-tiled head
    b_pad = _round_up(b, bt)

    if hw >= t_hw_pref:
        t_hw = t_hw_pref
        hw_pad = _round_up(hw, t_hw)
    else:
        t_hw = _round_up(hw, 8)
        hw_pad = t_hw

    # Zero-padded HW rows contribute 0 to the pooled sum; the true 1/HW is
    # applied inside the kernel, so the mean is exact.  Padded batch rows are
    # sliced off below.
    f = feat_bhwc.reshape(b, hw, c).astype(jnp.bfloat16)
    f = jnp.pad(f, ((0, b_pad - b), (0, hw_pad - hw), (0, 0)))
    w_t = jnp.pad(linear_w.T.astype(jnp.float32), ((0, 0), (0, e_pad - e)))
    b_p = jnp.pad(linear_b.astype(jnp.float32), (0, e_pad - e)).reshape(1, e_pad)

    out = pl.pallas_call(
        functools.partial(head_kernel, inv_hw=1.0 / hw),
        out_shape=jax.ShapeDtypeStruct((b_pad, e_pad), jnp.float32),
        grid=(b_pad // bt, hw_pad // t_hw),
        in_specs=[
            pl.BlockSpec((bt, t_hw, c), lambda bi, hi: (bi, hi, 0)),
            pl.BlockSpec((c, e_pad), lambda bi, hi: (0, 0)),
            pl.BlockSpec((1, e_pad), lambda bi, hi: (0, 0)),
        ],
        out_specs=pl.BlockSpec((bt, e_pad), lambda bi, hi: (bi, 0)),
        scratch_shapes=[pltpu.VMEM((bt, 8, c), jnp.float32)],
        compiler_params=pltpu.CompilerParams(
            dimension_semantics=("parallel", "arbitrary"),
            vmem_limit_bytes=_vmem_limit_bytes()),
    )(f, w_t, b_p)
    return out[:b, :e]


def encoder_cnn_forward(images_nchw, params):
    """Pallas implementation of EncoderCNN.forward (see TODO(synk) above)."""
    x = jnp.transpose(images_nchw, (0, 2, 3, 1)).astype(jnp.float32)   # NCHW -> NHWC
    x = conv2d_relu_pallas(x, params["conv1_w"], params["conv1_b"])    # stand-in trunk
    x = conv2d_relu_pallas(x, params["conv2_w"], params["conv2_b"])    # -> (B, H', W', 2048) bf16
    return head_pallas(x, params["linear_w"], params["linear_b"])      # (B, embed_size)


# --------------------------------------------------------------------------- #
# Reference (pure JAX) for a correctness spot-check                            #
# --------------------------------------------------------------------------- #
def reference_forward(images_nchw, params):
    x = jnp.transpose(images_nchw, (0, 2, 3, 1)).astype(jnp.float32)
    for wk, bk in (("conv1_w", "conv1_b"), ("conv2_w", "conv2_b")):
        w = jnp.transpose(params[wk], (2, 3, 1, 0))
        # Match the kernel's bf16-input / f32-accumulate / bf16-output math.
        y = jax.lax.conv_general_dilated(
            x.astype(jnp.bfloat16), w.astype(jnp.bfloat16), (2, 2), ((1, 1), (1, 1)),
            dimension_numbers=("NHWC", "HWIO", "NHWC"),
            preferred_element_type=jnp.float32,
        )
        x = jnp.maximum(y + params[bk], 0.0).astype(jnp.bfloat16).astype(jnp.float32)
    pooled = jnp.mean(x, axis=(1, 2))
    normalized = pooled / jnp.linalg.norm(pooled, axis=1, keepdims=True)
    return normalized @ params["linear_w"].T + params["linear_b"]


def init_params(key):
    k = jax.random.split(key, 6)
    return {
        "conv1_w": 0.10 * jax.random.normal(k[0], (STEM_CH, 3, 3, 3), jnp.float32),
        "conv1_b": 0.05 * jax.random.normal(k[1], (STEM_CH,), jnp.float32),
        "conv2_w": 0.02 * jax.random.normal(k[2], (FEAT_DIM, STEM_CH, 3, 3), jnp.float32),
        "conv2_b": 0.05 * jax.random.normal(k[3], (FEAT_DIM,), jnp.float32),
        "linear_w": 0.02 * jax.random.normal(k[4], (EMBED_SIZE, FEAT_DIM), jnp.float32),
        "linear_b": 0.02 * jax.random.normal(k[5], (EMBED_SIZE,), jnp.float32),
    }


if __name__ == "__main__":
    root = jax.random.PRNGKey(0)
    k_img, k_par = jax.random.split(root)
    images = jax.random.normal(k_img, (2, 3, 16, 16), jnp.float32)   # NCHW, like PyTorch
    params = init_params(k_par)

    fwd = jax.jit(functools.partial(encoder_cnn_forward, params=params))
    out = jax.block_until_ready(fwd(images))

    assert out.shape == (2, EMBED_SIZE) and out.dtype == jnp.float32

    ref = reference_forward(images, params)
    if not jnp.allclose(out, ref, atol=5e-3, rtol=5e-2):
        raise AssertionError(
            f"Pallas output mismatch vs reference, max abs diff "
            f"{float(jnp.max(jnp.abs(out - ref))):.3e}"
        )

    print("KERNEL_OK")
</pallas_src>

<mosaic_0001>
module attributes {stable_mosaic.version = 11 : i64} {
  func.func @conv_mm_bias_relu_kernel(%arg0: i32, %arg1: i32, %arg2: i32, %arg3: memref<128x128xbf16, #tpu.memory_space<vmem>>, %arg4: memref<128x128xbf16, #tpu.memory_space<vmem>>, %arg5: memref<1x128xf32, #tpu.memory_space<vmem>>, %arg6: memref<128x128xbf16, #tpu.memory_space<vmem>>, %arg7: memref<128x128xf32, #tpu.memory_space<vmem>>) attributes {dimension_semantics = [#tpu.dimension_semantics<parallel>, #tpu.dimension_semantics<parallel>, #tpu.dimension_semantics<arbitrary>], iteration_bounds = array<i64: 1, 1, 1>, scalar_prefetch = 0 : i64, scratch_operands = 1 : i64, tpu.core_type = #tpu.core_type<tc>, window_params = [{transform_indices = @transform_0, window_bounds = array<i64: 128, 128>}, {transform_indices = @transform_1, window_bounds = array<i64: 128, 128>}, {transform_indices = @transform_2, window_bounds = array<i64: 1, 128>}, {transform_indices = @transform_3, window_bounds = array<i64: 128, 128>}]} {
    %c0_i32 = arith.constant 0 : i32
    %0 = arith.cmpi eq, %arg2, %c0_i32 : i32
    %1 = arith.extui %0 : i1 to i32
    %c0_i32_0 = arith.constant 0 : i32
    %2 = arith.cmpi ne, %1, %c0_i32_0 : i32
    scf.if %2 {
      %cst_10 = arith.constant 0.000000e+00 : f32
      %12 = vector.broadcast %cst_10 : f32 to vector<128x128xf32>
      %c0_11 = arith.constant 0 : index
      %c0_12 = arith.constant 0 : index
      %13 = vector.load %arg7[%c0_11, %c0_12] : memref<128x128xf32, #tpu.memory_space<vmem>>, vector<128x128xf32>
      tpu.vector_store %arg7[%c0_11, %c0_12], %12 {strides = array<i32>} : memref<128x128xf32, #tpu.memory_space<vmem>>, vector<128x128xf32>,
    } else {
    }
    %c0 = arith.constant 0 : index
    %c0_1 = arith.constant 0 : index
    %3 = vector.load %arg7[%c0, %c0_1] : memref<128x128xf32, #tpu.memory_space<vmem>>, vector<128x128xf32>
    %c0_2 = arith.constant 0 : index
    %c0_3 = arith.constant 0 : index
    %4 = vector.load %arg3[%c0_2, %c0_3] : memref<128x128xbf16, #tpu.memory_space<vmem>>, vector<128x128xbf16>
    %c0_4 = arith.constant 0 : index
    %c0_5 = arith.constant 0 : index
    %5 = vector.load %arg4[%c0_4, %c0_5] : memref<128x128xbf16, #tpu.memory_space<vmem>>, vector<128x128xbf16>
    %cst = arith.constant dense<0.000000e+00> : vector<128x128xf32>
    %6 = tpu.matmul %4, %5, %cst {dimension_numbers = #tpu.dot_dimension_numbers<[1], [0], [0], [1], [0, 0, 1, 1], [], []>} : vector<128x128xbf16>, vector<128x128xbf16>, vector<128x128xf32> -> vector<128x128xf32>
    %7 = arith.addf %3, %6 : vector<128x128xf32>
    %c0_6 = arith.constant 0 : index
    %c0_7 = arith.constant 0 : index
    %8 = vector.load %arg7[%c0_6, %c0_7] : memref<128x128xf32, #tpu.memory_space<vmem>>, vector<128x128xf32>
    tpu.vector_store %arg7[%c0_6, %c0_7], %7 {strides = array<i32>} : memref<128x128xf32, #tpu.memory_space<vmem>>, vector<128x128xf32>,
    %c0_i32_8 = arith.constant 0 : i32
    %9 = arith.cmpi eq, %arg2, %c0_i32_8 : i32
    %10 = arith.extui %9 : i1 to i32
    %c0_i32_9 = arith.constant 0 : i32
    %11 = arith.cmpi ne, %10, %c0_i32_9 : i32
    scf.if %11 {
      %c0_10 = arith.constant 0 : index
      %c0_11 = arith.constant 0 : index
      %12 = vector.load %arg7[%c0_10, %c0_11] : memref<128x128xf32, #tpu.memory_space<vmem>>, vector<128x128xf32>
      %c0_12 = arith.constant 0 : index
      %c0_13 = arith.constant 0 : index
      %13 = vector.load %arg5[%c0_12, %c0_13] : memref<1x128xf32, #tpu.memory_space<vmem>>, vector<1x128xf32>
      %14 = vector.broadcast %13 : vector<1x128xf32> to vector<128x128xf32>
      %15 = arith.addf %12, %14 : vector<128x128xf32>
      %cst_14 = arith.constant 0.000000e+00 : f32
      %16 = vector.broadcast %cst_14 : f32 to vector<128x128xf32>
      %17 = arith.maximumf %15, %16 : vector<128x128xf32>
      %18 = arith.truncf %17 : vector<128x128xf32> to vector<128x128xbf16>
      %c0_15 = arith.constant 0 : index
      %c0_16 = arith.constant 0 : index
      %19 = vector.load %arg6[%c0_15, %c0_16] : memref<128x128xbf16, #tpu.memory_space<vmem>>, vector<128x128xbf16>
      tpu.vector_store %arg6[%c0_15, %c0_16], %18 {strides = array<i32>} : memref<128x128xbf16, #tpu.memory_space<vmem>>, vector<128x128xbf16>,
    } else {
    }
    return
  }
  func.func @transform_0(%arg0: i32, %arg1: i32, %arg2: i32) -> (i32, i32) {
    %c0_i32 = arith.constant 0 : i32
    return %arg0, %arg2 : i32, i32
  }
  func.func @transform_1(%arg0: i32, %arg1: i32, %arg2: i32) -> (i32, i32) {
    %c0_i32 = arith.constant 0 : i32
    return %arg2, %arg1 : i32, i32
  }
  func.func @transform_2(%arg0: i32, %arg1: i32, %arg2: i32) -> (i32, i32) {
    %c0_i32 = arith.constant 0 : i32
    %c0_i32_0 = arith.constant 0 : i32
    return %c0_i32, %arg1 : i32, i32
  }
  func.func @transform_3(%arg0: i32, %arg1: i32, %arg2: i32) -> (i32, i32) {
    %c0_i32 = arith.constant 0 : i32
    return %arg0, %arg1 : i32, i32
  }
}

module attributes {stable_mosaic.version = 11 : i64} {
  func.func @conv_mm_bias_relu_kernel(%arg0: i32, %arg1: i32, %arg2: i32, %arg3: memref<32x576xbf16, #tpu.memory_space<vmem>>, %arg4: memref<576x1024xbf16, #tpu.memory_space<vmem>>, %arg5: memref<1x1024xf32, #tpu.memory_space<vmem>>, %arg6: memref<32x1024xbf16, #tpu.memory_space<vmem>>, %arg7: memref<32x1024xf32, #tpu.memory_space<vmem>>) attributes {dimension_semantics = [#tpu.dimension_semantics<parallel>, #tpu.dimension_semantics<parallel>, #tpu.dimension_semantics<arbitrary>], iteration_bounds = array<i64: 1, 2, 1>, scalar_prefetch = 0 : i64, scratch_operands = 1 : i64, tpu.core_type = #tpu.core_type<tc>, window_params = [{transform_indices = @transform_0, window_bounds = array<i64: 32, 576>}, {transform_indices = @transform_1, window_bounds = array<i64: 576, 1024>}, {transform_indices = @transform_2, window_bounds = array<i64: 1, 1024>}, {transform_indices = @transform_3, window_bounds = array<i64: 32, 1024>}]} {
    %c0_i32 = arith.constant 0 : i32
    %0 = arith.cmpi eq, %arg2, %c0_i32 : i32
    %1 = arith.extui %0 : i1 to i32
    %c0_i32_0 = arith.constant 0 : i32
    %2 = arith.cmpi ne, %1, %c0_i32_0 : i32
    scf.if %2 {
      %cst_10 = arith.constant 0.000000e+00 : f32
      %12 = vector.broadcast %cst_10 : f32 to vector<32x1024xf32>
      %c0_11 = arith.constant 0 : index
      %c0_12 = arith.constant 0 : index
      %13 = vector.load %arg7[%c0_11, %c0_12] : memref<32x1024xf32, #tpu.memory_space<vmem>>, vector<32x1024xf32>
      tpu.vector_store %arg7[%c0_11, %c0_12], %12 {strides = array<i32>} : memref<32x1024xf32, #tpu.memory_space<vmem>>, vector<32x1024xf32>,
    } else {
    }
    %c0 = arith.constant 0 : index
    %c0_1 = arith.constant 0 : index
    %3 = vector.load %arg7[%c0, %c0_1] : memref<32x1024xf32, #tpu.memory_space<vmem>>, vector<32x1024xf32>
    %c0_2 = arith.constant 0 : index
    %c0_3 = arith.constant 0 : index
    %4 = vector.load %arg3[%c0_2, %c0_3] : memref<32x576xbf16, #tpu.memory_space<vmem>>, vector<32x576xbf16>
    %c0_4 = arith.constant 0 : index
    %c0_5 = arith.constant 0 : index
    %5 = vector.load %arg4[%c0_4, %c0_5] : memref<576x1024xbf16, #tpu.memory_space<vmem>>, vector<576x1024xbf16>
    %cst = arith.constant dense<0.000000e+00> : vector<32x1024xf32>
    %6 = tpu.matmul %4, %5, %cst {dimension_numbers = #tpu.dot_dimension_numbers<[1], [0], [0], [1], [0, 0, 1, 1], [], []>} : vector<32x576xbf16>, vector<576x1024xbf16>, vector<32x1024xf32> -> vector<32x1024xf32>
    %7 = arith.addf %3, %6 : vector<32x1024xf32>
    %c0_6 = arith.constant 0 : index
    %c0_7 = arith.constant 0 : index
    %8 = vector.load %arg7[%c0_6, %c0_7] : memref<32x1024xf32, #tpu.memory_space<vmem>>, vector<32x1024xf32>
    tpu.vector_store %arg7[%c0_6, %c0_7], %7 {strides = array<i32>} : memref<32x1024xf32, #tpu.memory_space<vmem>>, vector<32x1024xf32>,
    %c0_i32_8 = arith.constant 0 : i32
    %9 = arith.cmpi eq, %arg2, %c0_i32_8 : i32
    %10 = arith.extui %9 : i1 to i32
    %c0_i32_9 = arith.constant 0 : i32
    %11 = arith.cmpi ne, %10, %c0_i32_9 : i32
    scf.if %11 {
      %c0_10 = arith.constant 0 : index
      %c0_11 = arith.constant 0 : index
      %12 = vector.load %arg7[%c0_10, %c0_11] : memref<32x1024xf32, #tpu.memory_space<vmem>>, vector<32x1024xf32>
      %c0_12 = arith.constant 0 : index
      %c0_13 = arith.constant 0 : index
      %13 = vector.load %arg5[%c0_12, %c0_13] : memref<1x1024xf32, #tpu.memory_space<vmem>>, vector<1x1024xf32>
      %14 = vector.broadcast %13 : vector<1x1024xf32> to vector<32x1024xf32>
      %15 = arith.addf %12, %14 : vector<32x1024xf32>
      %cst_14 = arith.constant 0.000000e+00 : f32
      %16 = vector.broadcast %cst_14 : f32 to vector<32x1024xf32>
      %17 = arith.maximumf %15, %16 : vector<32x1024xf32>
      %18 = arith.truncf %17 : vector<32x1024xf32> to vector<32x1024xbf16>
      %c0_15 = arith.constant 0 : index
      %c0_16 = arith.constant 0 : index
      %19 = vector.load %arg6[%c0_15, %c0_16] : memref<32x1024xbf16, #tpu.memory_space<vmem>>, vector<32x1024xbf16>
      tpu.vector_store %arg6[%c0_15, %c0_16], %18 {strides = array<i32>} : memref<32x1024xbf16, #tpu.memory_space<vmem>>, vector<32x1024xbf16>,
    } else {
    }
    return
  }
  func.func @transform_0(%arg0: i32, %arg1: i32, %arg2: i32) -> (i32, i32) {
    %c0_i32 = arith.constant 0 : i32
    return %arg0, %arg2 : i32, i32
  }
  func.func @transform_1(%arg0: i32, %arg1: i32, %arg2: i32) -> (i32, i32) {
    %c0_i32 = arith.constant 0 : i32
    return %arg2, %arg1 : i32, i32
  }
  func.func @transform_2(%arg0: i32, %arg1: i32, %arg2: i32) -> (i32, i32) {
    %c0_i32 = arith.constant 0 : i32
    %c0_i32_0 = arith.constant 0 : i32
    return %c0_i32, %arg1 : i32, i32
  }
  func.func @transform_3(%arg0: i32, %arg1: i32, %arg2: i32) -> (i32, i32) {
    %c0_i32 = arith.constant 0 : i32
    return %arg0, %arg1 : i32, i32
  }
}

module attributes {stable_mosaic.version = 11 : i64} {
  func.func @head_kernel(%arg0: i32, %arg1: i32, %arg2: memref<2x16x2048xbf16, #tpu.memory_space<vmem>>, %arg3: memref<2048x128xf32, #tpu.memory_space<vmem>>, %arg4: memref<1x128xf32, #tpu.memory_space<vmem>>, %arg5: memref<2x128xf32, #tpu.memory_space<vmem>>, %arg6: memref<2x8x2048xf32, #tpu.memory_space<vmem>>) attributes {dimension_semantics = [#tpu.dimension_semantics<parallel>, #tpu.dimension_semantics<arbitrary>], iteration_bounds = array<i64: 1, 1>, scalar_prefetch = 0 : i64, scratch_operands = 1 : i64, tpu.core_type = #tpu.core_type<tc>, window_params = [{transform_indices = @transform_0, window_bounds = array<i64: 2, 16, 2048>}, {pipeline_mode = #tpu.pipeline_mode<synchronous>, transform_indices = @transform_1, window_bounds = array<i64: 2048, 128>}, {pipeline_mode = #tpu.pipeline_mode<synchronous>, transform_indices = @transform_2, window_bounds = array<i64: 1, 128>}, {transform_indices = @transform_3, window_bounds = array<i64: 2, 128>}]} {
    %c0_i32 = arith.constant 0 : i32
    %0 = arith.cmpi eq, %arg1, %c0_i32 : i32
    %1 = arith.extui %0 : i1 to i32
    %c0_i32_0 = arith.constant 0 : i32
    %2 = arith.cmpi ne, %1, %c0_i32_0 : i32
    scf.if %2 {
      %cst_11 = arith.constant 0.000000e+00 : f32
      %13 = vector.broadcast %cst_11 : f32 to vector<2x8x2048xf32>
      %c0_12 = arith.constant 0 : index
      %c0_13 = arith.constant 0 : index
      %c0_14 = arith.constant 0 : index
      %14 = vector.load %arg6[%c0_12, %c0_13, %c0_14] : memref<2x8x2048xf32, #tpu.memory_space<vmem>>, vector<2x8x2048xf32>
      tpu.vector_store %arg6[%c0_12, %c0_13, %c0_14], %13 {strides = array<i32>} : memref<2x8x2048xf32, #tpu.memory_space<vmem>>, vector<2x8x2048xf32>,
    } else {
    }
    %c0 = arith.constant 0 : index
    %c0_1 = arith.constant 0 : index
    %c0_2 = arith.constant 0 : index
    %3 = vector.load %arg2[%c0, %c0_1, %c0_2] : memref<2x16x2048xbf16, #tpu.memory_space<vmem>>, vector<2x16x2048xbf16>
    %4 = arith.extf %3 : vector<2x16x2048xbf16> to vector<2x16x2048xf32>
    %c0_3 = arith.constant 0 : index
    %c0_4 = arith.constant 0 : index
    %c0_5 = arith.constant 0 : index
    %5 = vector.load %arg6[%c0_3, %c0_4, %c0_5] : memref<2x8x2048xf32, #tpu.memory_space<vmem>>, vector<2x8x2048xf32>
    %6 = vector.shape_cast %4 : vector<2x16x2048xf32> to vector<2x2x8x2048xf32>
    %cst = arith.constant dense<0.000000e+00> : vector<2x8x2048xf32>
    %7 = vector.multi_reduction <add>, %6, %cst [1] : vector<2x2x8x2048xf32> to vector<2x8x2048xf32>
    %8 = arith.addf %5, %7 : vector<2x8x2048xf32>
    %c0_6 = arith.constant 0 : index
    %c0_7 = arith.constant 0 : index
    %c0_8 = arith.constant 0 : index
    %9 = vector.load %arg6[%c0_6, %c0_7, %c0_8] : memref<2x8x2048xf32, #tpu.memory_space<vmem>>, vector<2x8x2048xf32>
    tpu.vector_store %arg6[%c0_6, %c0_7, %c0_8], %8 {strides = array<i32>} : memref<2x8x2048xf32, #tpu.memory_space<vmem>>, vector<2x8x2048xf32>,
    %c0_i32_9 = arith.constant 0 : i32
    %10 = arith.cmpi eq, %arg1, %c0_i32_9 : i32
    %11 = arith.extui %10 : i1 to i32
    %c0_i32_10 = arith.constant 0 : i32
    %12 = arith.cmpi ne, %11, %c0_i32_10 : i32
    scf.if %12 {
      %c0_11 = arith.constant 0 : index
      %c0_12 = arith.constant 0 : index
      %c0_13 = arith.constant 0 : index
      %13 = vector.load %arg6[%c0_11, %c0_12, %c0_13] : memref<2x8x2048xf32, #tpu.memory_space<vmem>>, vector<2x8x2048xf32>
      %cst_14 = arith.constant dense<0.000000e+00> : vector<2x2048xf32>
      %14 = vector.multi_reduction <add>, %13, %cst_14 [1] : vector<2x8x2048xf32> to vector<2x2048xf32>
      %cst_15 = arith.constant 6.250000e-02 : f32
      %15 = vector.broadcast %cst_15 : f32 to vector<2x2048xf32>
      %16 = arith.mulf %14, %15 : vector<2x2048xf32>
      %17 = arith.mulf %16, %16 : vector<2x2048xf32>
      %cst_16 = arith.constant dense<0.000000e+00> : vector<2xf32>
      %18 = vector.multi_reduction <add>, %17, %cst_16 [1] : vector<2x2048xf32> to vector<2xf32>
      %19 = vector.shape_cast %18 : vector<2xf32> to vector<2x1xf32>
      %20 = math.rsqrt %19 : vector<2x1xf32>
      %21 = vector.broadcast %20 : vector<2x1xf32> to vector<2x2048xf32>
      %22 = arith.mulf %16, %21 : vector<2x2048xf32>
      %c0_17 = arith.constant 0 : index
      %c0_18 = arith.constant 0 : index
      %23 = vector.load %arg3[%c0_17, %c0_18] : memref<2048x128xf32, #tpu.memory_space<vmem>>, vector<2048x128xf32>
      %cst_19 = arith.constant dense<0.000000e+00> : vector<2x128xf32>
      %24 = tpu.matmul %22, %23, %cst_19 {dimension_numbers = #tpu.dot_dimension_numbers<[1], [0], [0], [1], [0, 0, 1, 1], [], []>} : vector<2x2048xf32>, vector<2048x128xf32>, vector<2x128xf32> -> vector<2x128xf32>
      %c0_20 = arith.constant 0 : index
      %c0_21 = arith.constant 0 : index
      %25 = vector.load %arg4[%c0_20, %c0_21] : memref<1x128xf32, #tpu.memory_space<vmem>>, vector<1x128xf32>
      %26 = vector.broadcast %25 : vector<1x128xf32> to vector<2x128xf32>
      %27 = arith.addf %24, %26 : vector<2x128xf32>
      %c0_22 = arith.constant 0 : index
      %c0_23 = arith.constant 0 : index
      %28 = vector.load %arg5[%c0_22, %c0_23] : memref<2x128xf32, #tpu.memory_space<vmem>>, vector<2x128xf32>
      tpu.vector_store %arg5[%c0_22, %c0_23], %27 {strides = array<i32>} : memref<2x128xf32, #tpu.memory_space<vmem>>, vector<2x128xf32>,
    } else {
    }
    return
  }
  func.func @transform_0(%arg0: i32, %arg1: i32) -> (i32, i32, i32) {
    %c0_i32 = arith.constant 0 : i32
    %c0_i32_0 = arith.constant 0 : i32
    return %arg0, %arg1, %c0_i32 : i32, i32, i32
  }
  func.func @transform_1(%arg0: i32, %arg1: i32) -> (i32, i32) {
    %c0_i32 = arith.constant 0 : i32
    %c0_i32_0 = arith.constant 0 : i32
    %c0_i32_1 = arith.constant 0 : i32
    return %c0_i32, %c0_i32_0 : i32, i32
  }
  func.func @transform_2(%arg0: i32, %arg1: i32) -> (i32, i32) {
    %c0_i32 = arith.constant 0 : i32
    %c0_i32_0 = arith.constant 0 : i32
    %c0_i32_1 = arith.constant 0 : i32
    return %c0_i32, %c0_i32_0 : i32, i32
  }
  func.func @transform_3(%arg0: i32, %arg1: i32) -> (i32, i32) {
    %c0_i32 = arith.constant 0 : i32
    %c0_i32_0 = arith.constant 0 : i32
    return %arg0, %c0_i32 : i32, i32
  }
}

</mosaic_0001>

<bundles_post_ra>
// kernel: encoder_cnn_forward.3
= control target key start
LH: loop header
LB: loop body
LE: loop exit
PB: predicated region body
PF: predicated region fallthrough
CT: control target
= control target key end

     0   :  { %8 = vsyncpa [#allocation4], 0  ;;  %s668_s0 = inlined_call_operand.vmem [shape: bf16[128,128], index: 0, kind: input, shape index: {}]   ;;  %s669_s1 = inlined_call_operand.hbm [shape: bf16[128,128], index: 1, kind: input, shape index: {}]   ;;  %s670_s2 = inlined_call_operand.hbm [shape: f32[1,128], index: 2, kind: input, shape index: {}]   ;;  %s671_s3 = inlined_call_operand.vmem [shape: bf16[128,128], index: 3, kind: output, shape index: {}]  }
   0x1   :  { %s16_s14 = sshll.u32 %s669_s1, 4  ;;  %s17_s14 = int_to_ptr.hbm [resolvable:$true] %s16_s14 }
   0x2   :  { %9 = vsyncpa [#allocation6], 0  ;;  %s590_s15 = smov [#allocation3]   ;;  %s30_s19 = sshll.u32 %s670_s2, 4  ;;  %s31_s19 = int_to_ptr.hbm [resolvable:$true] %s30_s19 }
   0x3   :  { %s18_s16 = sshll.u32 %s590_s15, 4  ;;  %s591_s20 = smov 64   ;;  %s19_s16 = int_to_ptr.vmem [resolvable:$true] %s18_s16 }
   0x4   :  { %s592_s21 = smov 4   ;;  %s593_s22 = smov [#allocation5]  }
   0x5   :  { %24 = dma.hbm_to_vmem [thread:$0]  %s17_s14, 1024, %s19_s16, [#allocation4], %s591_s20, %s591_s20, %s592_s21  }
   0x6   :  { %s32_s23 = sshll.u32 %s593_s22, 4  ;;  %s33_s23 = int_to_ptr.vmem [resolvable:$true] %s32_s23 }
   0x7   :  { %35 = dma.hbm_to_vmem [thread:$0]  %s31_s19, 16, %s33_s23, [#allocation6]  }
   0x8   :  { %586 = dma.done.wait [#allocation4], 1024  }
   0x9   :  { %587 = vsyncadd [#allocation4], 4294966272 }
   0xa   :  { %588 = dma.done.wait [#allocation6], 16  }
   0xb   :  { %589 = vsyncadd [#allocation6], 4294967280  ;;  %v461_v0 = vld [vmem:[#allocation3 + $0x38] sm:$0xff]  ;;  %v460_v1 = vld [vmem:[#allocation3 + $0x30] sm:$0xff] }
   0xc   :  { %208 = vmatpush.bf16.msra.mxu0 %v461_v0  ;;  %509 = vmatpush.bf16.msra.mxu1 %v461_v0  ;;  %v459_v2 = vld [vmem:[#allocation3 + $0x28] sm:$0xff]  ;;  %v458_v3 = vld [vmem:[#allocation3 + $0x20] sm:$0xff]  ;;  %v457_v4 = vld [vmem:[#allocation3 + $0x18] sm:$0xff] }
   0xd   :  { %510 = vmatpush.bf16.msra.mxu2 %v461_v0  ;;  %511 = vmatpush.bf16.msra.mxu3 %v461_v0  ;;  %v456_v5 = vld [vmem:[#allocation3 + $0x10] sm:$0xff]  ;;  %v455_v6 = vld [vmem:[#allocation3 + $0x8] sm:$0xff]  ;;  %v454_v7 = vld [vmem:[#allocation3] sm:$0xff] }
   0xe   :  { %v446_v8 = vld [vmem:[%s668_s0] sm:$0xff]  ;;  %v448_v9 = vld [vmem:[%s668_s0 + $0x10] sm:$0xff]  ;;  %v447_v12 = vld [vmem:[%s668_s0 + $0x8] sm:$0xff] }
   0xf   :  { %v450_v10 = vld [vmem:[%s668_s0 + $0x20] sm:$0xff]  ;;  %v452_v11 = vld [vmem:[%s668_s0 + $0x30] sm:$0xff]  ;;  %v449_v13 = vld [vmem:[%s668_s0 + $0x18] sm:$0xff] }
  0x10   :  { %209 = vmatpush.bf16.msra.mxu0 %v460_v1  ;;  %512 = vmatpush.bf16.msra.mxu1 %v460_v1  ;;  %v451_v14 = vld [vmem:[%s668_s0 + $0x28] sm:$0xff]  ;;  %v453_v15 = vld [vmem:[%s668_s0 + $0x38] sm:$0xff]  ;;  %v537_v18 = vld [vmem:[#allocation5] ss:$0 sm:$0xff] }
  0x11   :  { %513 = vmatpush.bf16.msra.mxu2 %v460_v1  ;;  %514 = vmatpush.bf16.msra.mxu3 %v460_v1 }
  0x14   :  { %210 = vmatpush.bf16.msra.mxu0 %v459_v2  ;;  %515 = vmatpush.bf16.msra.mxu1 %v459_v2 }
  0x15   :  { %516 = vmatpush.bf16.msra.mxu2 %v459_v2  ;;  %517 = vmatpush.bf16.msra.mxu3 %v459_v2 }
  0x18   :  { %211 = vmatpush.bf16.msra.mxu0 %v458_v3  ;;  %518 = vmatpush.bf16.msra.mxu1 %v458_v3 }
  0x19   :  { %519 = vmatpush.bf16.msra.mxu2 %v458_v3  ;;  %520 = vmatpush.bf16.msra.mxu3 %v458_v3 }
  0x1c   :  { %212 = vmatpush.bf16.msra.mxu0 %v457_v4  ;;  %521 = vmatpush.bf16.msra.mxu1 %v457_v4 }
  0x1d   :  { %522 = vmatpush.bf16.msra.mxu2 %v457_v4  ;;  %523 = vmatpush.bf16.msra.mxu3 %v457_v4 }
  0x20   :  { %213 = vmatpush.bf16.msra.mxu0 %v456_v5  ;;  %524 = vmatpush.bf16.msra.mxu1 %v456_v5 }
  0x21   :  { %525 = vmatpush.bf16.msra.mxu2 %v456_v5  ;;  %526 = vmatpush.bf16.msra.mxu3 %v456_v5 }
  0x24   :  { %214 = vmatpush.bf16.msra.mxu0 %v455_v6  ;;  %527 = vmatpush.bf16.msra.mxu1 %v455_v6 }
  0x25   :  { %528 = vmatpush.bf16.msra.mxu2 %v455_v6  ;;  %529 = vmatpush.bf16.msra.mxu3 %v455_v6 }
  0x28   :  { %215 = vmatpush.bf16.msra.mxu0 %v454_v7  ;;  %530 = vmatpush.bf16.msra.mxu1 %v454_v7 }
  0x29   :  { %531 = vmatpush.bf16.msra.mxu2 %v454_v7  ;;  %532 = vmatpush.bf16.msra.mxu3 %v454_v7 }
  0x2b   :  { %216 = vmatmul.bf16.vlgmr.msra.gmra.mxu0 %v446_v8  ;;  %226 = vmatmul.bf16.vlgmr.msra.gmra.mxu1 %v448_v9 }
  0x2c   :  { %236 = vmatmul.bf16.vlgmr.msra.gmra.mxu2 %v450_v10  ;;  %246 = vmatmul.bf16.vlgmr.msra.gmra.mxu3 %v452_v11 }
  0x3b   :  { %221 = vmatmul.bf16.gmra.mxu0 %v447_v12  ;;  %231 = vmatmul.bf16.gmra.mxu1 %v449_v13 }
  0x3c   :  { %241 = vmatmul.bf16.gmra.mxu2 %v451_v14  ;;  %251 = vmatmul.bf16.gmra.mxu3 %v453_v15 }
  0xa8   :  { %v217_v16 = vpop.f32.mrf.mxu0  ;;  %v227_v17 = vpop.f32.mrf.mxu1 }
  0xa9   :  { %v312_v19 = vadd.f32 %v537_v18, %v217_v16  ;;  %v316_v20 = vadd.f32 %v537_v18, %v227_v17 }
  0xab   :  { %v328_v27 = vmax.f32 %v312_v19, 0.0  ;;  %v332_v28 = vmax.f32 %v316_v20, 0.0 }
  0xaf   :  { %v237_v21 = vpop.f32.mrf.mxu2  ;;  %v247_v22 = vpop.f32.mrf.mxu3 }
  0xb0   :  { %v219_v23 = vpop.f32.mrf.mxu0  ;;  %v229_v24 = vpop.f32.mrf.mxu1  ;;  %v320_v33 = vadd.f32 %v537_v18, %v237_v21  ;;  %v324_v34 = vadd.f32 %v537_v18, %v247_v22 }
  0xb1   :  { %v313_v25 = vadd.f32 %v537_v18, %v219_v23  ;;  %v317_v26 = vadd.f32 %v537_v18, %v229_v24 }
  0xb2   :  { %v336_v41 = vmax.f32 %v320_v33, 0.0  ;;  %v340_v42 = vmax.f32 %v324_v34, 0.0 }
  0xb3   :  { %v329_v29 = vmax.f32 %v313_v25, 0.0  ;;  %v333_v30 = vmax.f32 %v317_v26, 0.0 }
  0xb5   :  { %v465_v31 = vpack.c.bf16 %v329_v29, %v328_v27  ;;  %v475_v32 = vpack.c.bf16 %v333_v30, %v332_v28 }
  0xb7   :  { %466 = vst [vmem:[%s671_s3] sm:$0xff] %v465_v31   ;;  %v239_v35 = vpop.f32.mrf.mxu2  ;;  %v249_v36 = vpop.f32.mrf.mxu3 }
  0xb8   :  { %503 = vst [vmem:[%s671_s3 + $0x10] sm:$0xff] %v475_v32   ;;  %v321_v37 = vadd.f32 %v537_v18, %v239_v35  ;;  %v325_v38 = vadd.f32 %v537_v18, %v249_v36  ;;  %v222_v39 = vpop.f32.mrf.mxu0  ;;  %v232_v40 = vpop.f32.mrf.mxu1 }
  0xb9   :  { %v314_v47 = vadd.f32 %v537_v18, %v222_v39  ;;  %v318_v48 = vadd.f32 %v537_v18, %v232_v40 }
  0xba   :  { %v337_v43 = vmax.f32 %v321_v37, 0.0  ;;  %v341_v44 = vmax.f32 %v325_v38, 0.0 }
  0xbb   :  { %v330_v55 = vmax.f32 %v314_v47, 0.0  ;;  %v334_v56 = vmax.f32 %v318_v48, 0.0 }
  0xbc   :  { %v485_v45 = vpack.c.bf16 %v337_v43, %v336_v41  ;;  %v495_v46 = vpack.c.bf16 %v341_v44, %v340_v42 }
  0xbe   :  { %505 = vst [vmem:[%s671_s3 + $0x20] sm:$0xff] %v485_v45  }
  0xbf   :  { %507 = vst [vmem:[%s671_s3 + $0x30] sm:$0xff] %v495_v46   ;;  %v242_v49 = vpop.f32.mrf.mxu2  ;;  %v252_v50 = vpop.f32.mrf.mxu3 }
  0xc0   :  { %v224_v51 = vpop.f32.mrf.mxu0  ;;  %v234_v52 = vpop.f32.mrf.mxu1  ;;  %v322_v61 = vadd.f32 %v537_v18, %v242_v49  ;;  %v326_v62 = vadd.f32 %v537_v18, %v252_v50 }
  0xc1   :  { %v315_v53 = vadd.f32 %v537_v18, %v224_v51  ;;  %v319_v54 = vadd.f32 %v537_v18, %v234_v52 }
  0xc2   :  { %v338_v3 = vmax.f32 %v322_v61, 0.0  ;;  %v342_v4 = vmax.f32 %v326_v62, 0.0 }
  0xc3   :  { %v331_v57 = vmax.f32 %v315_v53, 0.0  ;;  %v335_v58 = vmax.f32 %v319_v54, 0.0 }
  0xc5   :  { %v470_v59 = vpack.c.bf16 %v331_v57, %v330_v55  ;;  %v480_v60 = vpack.c.bf16 %v335_v58, %v334_v56 }
  0xc7   :  { %502 = vst [vmem:[%s671_s3 + $0x8] sm:$0xff] %v470_v59   ;;  %v244_v63 = vpop.f32.mrf.mxu2  ;;  %v254_v0 = vpop.f32.mrf.mxu3 }
  0xc8   :  { %504 = vst [vmem:[%s671_s3 + $0x18] sm:$0xff] %v480_v60   ;;  %v323_v1 = vadd.f32 %v537_v18, %v244_v63  ;;  %v327_v2 = vadd.f32 %v537_v18, %v254_v0 }
  0xca   :  { %v339_v5 = vmax.f32 %v323_v1, 0.0  ;;  %v343_v6 = vmax.f32 %v327_v2, 0.0 }
  0xcc   :  { %v490_v7 = vpack.c.bf16 %v339_v5, %v338_v3  ;;  %v500_v8 = vpack.c.bf16 %v343_v6, %v342_v4 }
  0xce   :  { %506 = vst [vmem:[%s671_s3 + $0x28] sm:$0xff] %v490_v7  }
  0xcf   :  { %508 = vst [vmem:[%s671_s3 + $0x38] sm:$0xff] %v500_v8  }
  0xd0   :  { %380 = vsyncpa [#allocation4], 1 }
  0xd1   :  { %381 = vsyncpa [#allocation6], 1 }

// kernel: encoder_cnn_forward.5
= control target key start
LH: loop header
LB: loop body
LE: loop exit
PB: predicated region body
PF: predicated region fallthrough
CT: control target
= control target key end

     0   :  { %8 = vsyncpa [#allocation4], 0  ;;  %s2225_s0 = inlined_call_operand.vmem [shape: bf16[2,16,2048], index: 0, kind: input, shape index: {}]   ;;  %s2226_s1 = inlined_call_operand.hbm [shape: f32[2048,128], index: 1, kind: input, shape index: {}]   ;;  %s2227_s2 = inlined_call_operand.hbm [shape: f32[1,128], index: 2, kind: input, shape index: {}]   ;;  %s2228_s3 = inlined_call_operand.hbm [shape: f32[2,128], index: 3, kind: output, shape index: {}]  }
   0x1   :  { %9 = vsyncpa [#allocation7], 0 }
   0x2   :  { %10 = vsyncpa [#allocation5], 0  ;;  %s17_s14 = sshll.u32 %s2226_s1, 4  ;;  %s1506_s15 = smov [#allocation3]   ;;  %s18_s14 = int_to_ptr.hbm [resolvable:$true] %s17_s14 }
   0x3   :  { %s19_s16 = sshll.u32 %s1506_s15, 4  ;;  %s31_s19 = sshll.u32 %s2227_s2, 4  ;;  %s20_s16 = int_to_ptr.vmem [resolvable:$true] %s19_s16  ;;  %s32_s19 = int_to_ptr.hbm [resolvable:$true] %s31_s19 }
   0x4   :  { %s1507_s20 = smov 128   ;;  %s1508_s21 = smov 8  }
   0x5   :  { %25 = dma.hbm_to_vmem [thread:$0]  %s18_s14, 32768, %s20_s16, [#allocation4], %s1507_s20, %s1507_s20, %s1508_s21  }
   0x6   :  { %s1509_s22 = smov [#allocation6]  }
   0x7   :  { %s33_s23 = sshll.u32 %s1509_s22, 4  ;;  %s34_s23 = int_to_ptr.vmem [resolvable:$true] %s33_s23 }
   0x8   :  { %36 = dma.hbm_to_vmem [thread:$0]  %s32_s19, 16, %s34_s23, [#allocation7]  }
   0x9   :  { %1500 = dma.done.wait [#allocation4], 32768  }
   0xa   :  { %1501 = vsyncadd [#allocation4], 4294934528 }
   0xb   :  { %1502 = dma.done.wait [#allocation7], 16  }
   0xc   :  { %1503 = vsyncadd [#allocation7], 4294967280  ;;  %v1540_v0 = vld [vmem:[%s2225_s0] sm:$0xff]  ;;  %v1545_v1 = vld [vmem:[%s2225_s0 + $0x8] sm:$0xff]  ;;  %vm628_vm0 = vcmask 1041409   ;;  %vm661_vm1 = vcmask 1041408  }
   0xd   :  { %v1550_v2 = vld [vmem:[%s2225_s0 + $0x10] sm:$0xff]  ;;  %v1555_v3 = vld [vmem:[%s2225_s0 + $0x18] sm:$0xff]  ;;  %v1560_v4 = vld [vmem:[%s2225_s0 + $0x20] sm:$0xff]  ;;  %v113_v7 = vunpack.c.l.bf16 %v1540_v0  ;;  %v114_v8 = vunpack.c.h.bf16 %v1540_v0  ;;  %v115_v11 = vunpack.c.l.bf16 %v1545_v1  ;;  %v116_v12 = vunpack.c.h.bf16 %v1545_v1  ;;  %s1409_s4 = sshll.u32 %s2228_s3, 4  ;;  %s1410_s4 = int_to_ptr.hbm [resolvable:$true] %s1409_s4 }
   0xe   :  { %v1565_v5 = vld [vmem:[%s2225_s0 + $0x28] sm:$0xff]  ;;  %v1570_v6 = vld [vmem:[%s2225_s0 + $0x30] sm:$0xff]  ;;  %v1577_v9 = vld [vmem:[%s2225_s0 + $0x38] sm:$0xff]  ;;  %v117_v13 = vunpack.c.l.bf16 %v1550_v2  ;;  %v2229_v0 = vunpack.c.h.bf16 %v1550_v2  ;;  %v2233_v1 = vunpack.c.l.bf16 %v1560_v4 }
   0xf   :  { %v1582_v10 = vld [vmem:[%s2225_s0 + $0x40] sm:$0xff]  ;;  %v1591_v15 = vld [vmem:[%s2225_s0 + $0x48] sm:$0xff]  ;;  %v1596_v16 = vld [vmem:[%s2225_s0 + $0x50] sm:$0xff]  ;;  %v2236_v2 = vunpack.c.h.bf16 %v1565_v5 }
  0x10   :  { %v1605_v21 = vld [vmem:[%s2225_s0 + $0x58] sm:$0xff]  ;;  %v1610_v22 = vld [vmem:[%s2225_s0 + $0x60] sm:$0xff]  ;;  %v1619_v27 = vld [vmem:[%s2225_s0 + $0x68] sm:$0xff]  ;;  %v129_v31 = vunpack.c.l.bf16 %v1582_v10  ;;  %v130_v32 = vunpack.c.h.bf16 %v1582_v10  ;;  %v131_v35 = vunpack.c.l.bf16 %v1591_v15  ;;  %v132_v36 = vunpack.c.h.bf16 %v1591_v15 }
  0x11   :  { %v1624_v28 = vld [vmem:[%s2225_s0 + $0x70] sm:$0xff]  ;;  %v1633_v33 = vld [vmem:[%s2225_s0 + $0x78] sm:$0xff]  ;;  %v1638_v34 = vld [vmem:[%s2225_s0 + $0x80] sm:$0xff]  ;;  %v133_v37 = vunpack.c.l.bf16 %v1596_v16  ;;  %v135_v41 = vunpack.c.l.bf16 %v1605_v21  ;;  %v136_v42 = vunpack.c.h.bf16 %v1605_v21  ;;  %v137_v43 = vunpack.c.l.bf16 %v1610_v22 }
  0x12   :  { %v1647_v39 = vld [vmem:[%s2225_s0 + $0x88] sm:$0xff]  ;;  %v1652_v40 = vld [vmem:[%s2225_s0 + $0x90] sm:$0xff]  ;;  %v138_v44 = vunpack.c.h.bf16 %v1610_v22  ;;  %v1661_v45 = vld [vmem:[%s2225_s0 + $0x98] sm:$0xff]  ;;  %v139_v47 = vunpack.c.l.bf16 %v1619_v27  ;;  %v140_v48 = vunpack.c.h.bf16 %v1619_v27  ;;  %v141_v49 = vunpack.c.l.bf16 %v1624_v28 }
  0x13   :  { %v1666_v46 = vld [vmem:[%s2225_s0 + $0xa0] sm:$0xff]  ;;  %v142_v50 = vunpack.c.h.bf16 %v1624_v28  ;;  %v1675_v51 = vld [vmem:[%s2225_s0 + $0xa8] sm:$0xff]  ;;  %v1680_v52 = vld [vmem:[%s2225_s0 + $0xb0] sm:$0xff]  ;;  %v143_v53 = vunpack.c.l.bf16 %v1633_v33  ;;  %v144_v54 = vunpack.c.h.bf16 %v1633_v33  ;;  %v147_v59 = vunpack.c.l.bf16 %v1647_v39 }
  0x14   :  { %v1689_v57 = vld [vmem:[%s2225_s0 + $0xb8] sm:$0xff]  ;;  %v105_v58 = vld [vmem:[%s2225_s0 + $0xc0] sm:$0xff]  ;;  %v148_v60 = vunpack.c.h.bf16 %v1647_v39  ;;  %v149_v61 = vunpack.c.l.bf16 %v1652_v40  ;;  %v150_v62 = vunpack.c.h.bf16 %v1652_v40  ;;  %v106_v63 = vld [vmem:[%s2225_s0 + $0xc8] sm:$0xff]  ;;  %v151_v22 = vunpack.c.l.bf16 %v1661_v45 }
  0x15   :  { %v107_v21 = vld [vmem:[%s2225_s0 + $0xd0] sm:$0xff]  ;;  %v152_v27 = vunpack.c.h.bf16 %v1661_v45  ;;  %v108_v39 = vld [vmem:[%s2225_s0 + $0xd8] sm:$0xff]  ;;  %v1714_v40 = vld [vmem:[%s2225_s0 + $0xe0] sm:$0xff]  ;;  %v161_v26 = vunpack.c.l.bf16 %v105_v58  ;;  %v162_v55 = vunpack.c.h.bf16 %v105_v58  ;;  %v163_v30 = vunpack.c.l.bf16 %v106_v63 }
  0x16   :  { %v1723_v33 = vld [vmem:[%s2225_s0 + $0xe8] sm:$0xff]  ;;  %v1728_v28 = vld [vmem:[%s2225_s0 + $0xf0] sm:$0xff]  ;;  %v1735_v45 = vld [vmem:[%s2225_s0 + $0xf8] sm:$0xff]  ;;  %v164_v25 = vunpack.c.h.bf16 %v106_v63  ;;  %v165_v24 = vunpack.c.l.bf16 %v107_v21  ;;  %v166_v23 = vunpack.c.h.bf16 %v107_v21  ;;  %v167_v20 = vunpack.c.l.bf16 %v108_v39  ;;  %s1510_s0 = smov [#allocation8]  }
  0x17   :  { %v168_v19 = vunpack.c.h.bf16 %v108_v39  ;;  %v169_v18 = vunpack.c.l.bf16 %v1714_v40  ;;  %v170_v17 = vunpack.c.h.bf16 %v1714_v40  ;;  %v171_v29 = vunpack.c.l.bf16 %v1723_v33  ;;  %s1407_s28 = sshll.u32 %s1510_s0, 4  ;;  %s1408_s28 = int_to_ptr.vmem [resolvable:$true] %s1407_s28 }
  0x18   :  { %v172_v56 = vunpack.c.h.bf16 %v1723_v33  ;;  %v173_v58 = vunpack.c.l.bf16 %v1728_v28  ;;  %v174_v38 = vunpack.c.h.bf16 %v1728_v28  ;;  %v175_v14 = vunpack.c.l.bf16 %v1735_v45 }
  0x19   :  { %v176_v63 = vunpack.c.h.bf16 %v1735_v45  ;;  %v209_v21 = vadd.f32 %v129_v31, %v113_v7  ;;  %v210_v39 = vadd.f32 %v130_v32, %v114_v8  ;;  %v211_v33 = vadd.f32 %v131_v35, %v115_v11 }
  0x1a   :  { %v212_v28 = vadd.f32 %v132_v36, %v116_v12  ;;  %v213_v7 = vadd.f32 %v133_v37, %v117_v13  ;;  %v2230_v10 = vunpack.c.h.bf16 %v1596_v16  ;;  %v2231_v31 = vunpack.c.l.bf16 %v1555_v3 }
  0x1b   :  { %v2232_v11 = vunpack.c.h.bf16 %v1555_v3  ;;  %v217_v15 = vadd.f32 %v137_v43, %v2233_v1  ;;  %v2234_v12 = vunpack.c.h.bf16 %v1560_v4  ;;  %v2235_v40 = vunpack.c.l.bf16 %v1565_v5 }
  0x1c   :  { %v214_v8 = vadd.f32 %v2230_v10, %v2229_v0  ;;  %v215_v32 = vadd.f32 %v135_v41, %v2231_v31  ;;  %v220_v37 = vadd.f32 %v140_v48, %v2236_v2  ;;  %v2237_v16 = vunpack.c.l.bf16 %v1570_v6 }
  0x1d   :  { %v216_v35 = vadd.f32 %v136_v42, %v2232_v11  ;;  %v218_v36 = vadd.f32 %v138_v44, %v2234_v12  ;;  %v219_v13 = vadd.f32 %v139_v47, %v2235_v40  ;;  %v2238_v41 = vunpack.c.h.bf16 %v1570_v6 }
  0x1e   :  { %v1783_v45 = vadd.f32 %v141_v49, %v2237_v16  ;;  %v2239_v42 = vunpack.c.l.bf16 %v1577_v9  ;;  %v2240_v4 = vunpack.c.h.bf16 %v1577_v9  ;;  %v340_v47 = vrot.slane %v209_v21, 4 }
  0x1f   :  { %v1787_v3 = vadd.f32 %v142_v50, %v2238_v41  ;;  %v346_v0 = vrot.slane %v210_v39, 4  ;;  %v352_v5 = vrot.slane %v211_v33, 4  ;;  %v358_v48 = vrot.slane %v212_v28, 4 }
  0x20   :  { %v1791_v43 = vadd.f32 %v143_v53, %v2239_v42  ;;  %v1795_v44 = vadd.f32 %v144_v54, %v2240_v4  ;;  %v364_v10 = vrot.slane %v213_v7, 4  ;;  %v370_v31 = vrot.slane %v214_v8, 4 }
  0x21   :  { %v2241_v49 = vunpack.c.l.bf16 %v1638_v34  ;;  %v2242_v6 = vunpack.c.h.bf16 %v1638_v34  ;;  %v1805_v53 = vadd.f32 %v163_v30, %v147_v59  ;;  %v1807_v1 = vadd.f32 %v164_v25, %v148_v60 }
  0x22   :  { %v1809_v9 = vadd.f32 %v165_v24, %v149_v61  ;;  %v1811_v54 = vadd.f32 %v166_v23, %v150_v62  ;;  %v376_v12 = vrot.slane %v215_v32, 4  ;;  %v382_v40 = vrot.slane %v216_v35, 4 }
  0x23   :  { %v1799_v11 = vadd.f32 %v161_v26, %v2241_v49  ;;  %v1803_v50 = vadd.f32 %v162_v55, %v2242_v6  ;;  %v1813_v2 = vadd.f32 %v167_v20, %v151_v22  ;;  %v1815_v16 = vadd.f32 %v168_v19, %v152_v27 }
  0x24   :  { %v341_v26 = vadd.f32 %v340_v47, %v209_v21  ;;  %v347_v41 = vadd.f32 %v346_v0, %v210_v39  ;;  %v353_v42 = vadd.f32 %v352_v5, %v211_v33  ;;  %v359_v34 = vadd.f32 %v358_v48, %v212_v28 }
  0x25   :  { %v365_v55 = vadd.f32 %v364_v10, %v213_v7  ;;  %v371_v4 = vadd.f32 %v370_v31, %v214_v8  ;;  %v2243_v30 = vunpack.c.l.bf16 %v1666_v46  ;;  %v2244_v24 = vunpack.c.h.bf16 %v1666_v46 }
  0x26   :  { %v2245_v59 = vunpack.c.l.bf16 %v1675_v51  ;;  %v2246_v19 = vunpack.c.h.bf16 %v1675_v51  ;;  %v2247_v61 = vunpack.c.l.bf16 %v1680_v52  ;;  %v2248_v22 = vunpack.c.h.bf16 %v1680_v52 }
  0x27   :  { %v1819_v25 = vadd.f32 %v169_v18, %v2243_v30  ;;  %v1823_v23 = vadd.f32 %v170_v17, %v2244_v24  ;;  %v377_v27 = vadd.f32 %v376_v12, %v215_v32  ;;  %v383_v46 = vadd.f32 %v382_v40, %v216_v35 }
  0x28   :  { %v1827_v20 = vadd.f32 %v171_v29, %v2245_v59  ;;  %v1831_v60 = vadd.f32 %v172_v56, %v2246_v19  ;;  %v1835_v62 = vadd.f32 %v173_v58, %v2247_v61  ;;  %v1839_v18 = vadd.f32 %v174_v38, %v2248_v22 }
  0x29   :  { %v2249_v17 = vunpack.c.l.bf16 %v1689_v57  ;;  %v2250_v29 = vunpack.c.h.bf16 %v1689_v57  ;;  %v342_v51 = vrot.slane %v341_v26, 2  ;;  %v348_v56 = vrot.slane %v347_v41, 2 }
  0x2a   :  { %v354_v33 = vrot.slane %v353_v42, 2  ;;  %v360_v28 = vrot.slane %v359_v34, 2  ;;  %v366_v58 = vrot.slane %v365_v55, 2  ;;  %v372_v7 = vrot.slane %v371_v4, 2 }
  0x2b   :  { %v1843_v21 = vadd.f32 %v175_v14, %v2249_v17  ;;  %v1847_v39 = vadd.f32 %v176_v63, %v2250_v29  ;;  %v388_v8 = vrot.slane %v217_v15, 4  ;;  %v394_v52 = vrot.slane %v218_v36, 4 }
  0x2c   :  { %v400_v38 = vrot.slane %v219_v13, 4  ;;  %v406_v47 = vrot.slane %v220_v37, 4  ;;  %v378_v32 = vrot.slane %v377_v27, 2  ;;  %v384_v35 = vrot.slane %v383_v46, 2 }
  0x2d   :  { %v412_v0 = vrot.slane %v1783_v45, 4  ;;  %v418_v14 = vrot.slane %v1787_v3, 4  ;;  %v343_v5 = vadd.f32 %v342_v51, %v341_v26  ;;  %v349_v57 = vadd.f32 %v348_v56, %v347_v41 }
  0x2e   :  { %v424_v63 = vrot.slane %v1791_v43, 4  ;;  %v430_v48 = vrot.slane %v1795_v44, 4  ;;  %v355_v10 = vadd.f32 %v354_v33, %v353_v42  ;;  %v361_v31 = vadd.f32 %v360_v28, %v359_v34 }
  0x2f   :  { %v367_v49 = vadd.f32 %v366_v58, %v365_v55  ;;  %v373_v6 = vadd.f32 %v372_v7, %v371_v4  ;;  %v389_v12 = vadd.f32 %v388_v8, %v217_v15  ;;  %v395_v40 = vadd.f32 %v394_v52, %v218_v36 }
  0x30   :  { %v401_v30 = vadd.f32 %v400_v38, %v219_v13  ;;  %v407_v24 = vadd.f32 %v406_v47, %v220_v37  ;;  %v379_v59 = vadd.f32 %v378_v32, %v377_v27  ;;  %v385_v19 = vadd.f32 %v384_v35, %v383_v46 }
  0x31   :  { %v413_v61 = vadd.f32 %v412_v0, %v1783_v45  ;;  %v419_v22 = vadd.f32 %v418_v14, %v1787_v3  ;;  %v344_v26 = vrot.slane %v343_v5, 1  ;;  %v350_v41 = vrot.slane %v349_v57, 1 }
  0x32   :  { %v425_v17 = vadd.f32 %v424_v63, %v1791_v43  ;;  %v431_v29 = vadd.f32 %v430_v48, %v1795_v44  ;;  %v356_v42 = vrot.slane %v355_v10, 1  ;;  %v362_v34 = vrot.slane %v361_v31, 1 }
  0x33   :  { %v368_v55 = vrot.slane %v367_v49, 1  ;;  %v374_v4 = vrot.slane %v373_v6, 1  ;;  %v390_v15 = vrot.slane %v389_v12, 2  ;;  %v396_v36 = vrot.slane %v395_v40, 2 }
  0x34   :  { %v402_v13 = vrot.slane %v401_v30, 2  ;;  %v408_v37 = vrot.slane %v407_v24, 2  ;;  %v380_v27 = vrot.slane %v379_v59, 1  ;;  %v386_v46 = vrot.slane %v385_v19, 1 }
  0x35   :  { %v414_v51 = vrot.slane %v413_v61, 2  ;;  %v420_v45 = vrot.slane %v419_v22, 2  ;;  %v1857_v56 = vadd.f32 %v344_v26, %v343_v5  ;;  %v1859_v3 = vadd.f32 %v350_v41, %v349_v57 }
  0x36   :  { %v426_v33 = vrot.slane %v425_v17, 2  ;;  %v432_v43 = vrot.slane %v431_v29, 2  ;;  %v1861_v28 = vadd.f32 %v356_v42, %v355_v10  ;;  %v1863_v44 = vadd.f32 %v362_v34, %v361_v31 }
  0x37   :  { %v1865_v58 = vadd.f32 %v368_v55, %v367_v49  ;;  %v1867_v7 = vadd.f32 %v374_v4, %v373_v6  ;;  %v391_v8 = vadd.f32 %v390_v15, %v389_v12  ;;  %v397_v52 = vadd.f32 %v396_v36, %v395_v40 }
  0x38   :  { %v403_v38 = vadd.f32 %v402_v13, %v401_v30  ;;  %v409_v47 = vadd.f32 %v408_v37, %v407_v24  ;;  %v1869_v32 = vadd.f32 %v380_v27, %v379_v59  ;;  %v1871_v35 = vadd.f32 %v386_v46, %v385_v19 }
  0x39   :  { %v415_v0 = vadd.f32 %v414_v51, %v413_v61  ;;  %v421_v14 = vadd.f32 %v420_v45, %v419_v22  ;;  %v427_v5 = vadd.f32 %v426_v33, %v425_v17  ;;  %v433_v57 = vadd.f32 %v432_v43, %v431_v29 }
  0x3a   :  { %v436_v63 = vrot.slane %v1799_v11, 4  ;;  %v442_v48 = vrot.slane %v1803_v50, 4  ;;  %v448_v10 = vrot.slane %v1805_v53, 4  ;;  %v454_v31 = vrot.slane %v1807_v1, 4 }
  0x3b   :  { %v460_v49 = vrot.slane %v1809_v9, 4  ;;  %v466_v6 = vrot.slane %v1811_v54, 4  ;;  %v392_v12 = vrot.slane %v391_v8, 1  ;;  %v398_v40 = vrot.slane %v397_v52, 1 }
  0x3c   :  { %v404_v30 = vrot.slane %v403_v38, 1  ;;  %v410_v24 = vrot.slane %v409_v47, 1  ;;  %v416_v59 = vrot.slane %v415_v0, 1  ;;  %v422_v19 = vrot.slane %v421_v14, 1 }
  0x3d   :  { %v472_v61 = vrot.slane %v1813_v2, 4  ;;  %v478_v22 = vrot.slane %v1815_v16, 4  ;;  %v428_v26 = vrot.slane %v427_v5, 1  ;;  %v434_v41 = vrot.slane %v433_v57, 1 }
  0x3e   :  { %v437_v17 = vadd.f32 %v436_v63, %v1799_v11  ;;  %v443_v29 = vadd.f32 %v442_v48, %v1803_v50  ;;  %v449_v42 = vadd.f32 %v448_v10, %v1805_v53  ;;  %v455_v34 = vadd.f32 %v454_v31, %v1807_v1 }
  0x3f   :  { %v461_v55 = vadd.f32 %v460_v49, %v1809_v9  ;;  %v467_v4 = vadd.f32 %v466_v6, %v1811_v54  ;;  %v1887_v15 = vadd.f32 %v392_v12, %v391_v8  ;;  %v1889_v36 = vadd.f32 %v398_v40, %v397_v52 }
  0x40   :  { %v1891_v13 = vadd.f32 %v404_v30, %v403_v38  ;;  %v1893_v37 = vadd.f32 %v410_v24, %v409_v47  ;;  %v1895_v27 = vadd.f32 %v416_v59, %v415_v0  ;;  %v1897_v11 = vadd.f32 %v422_v19, %v421_v14 }
  0x41   :  { %v473_v50 = vadd.f32 %v472_v61, %v1813_v2  ;;  %v479_v53 = vadd.f32 %v478_v22, %v1815_v16  ;;  %v1901_v1 = vadd.f32 %v428_v26, %v427_v5  ;;  %v1903_v9 = vadd.f32 %v434_v41, %v433_v57 }
  0x42   :  { %v438_v54 = vrot.slane %v437_v17, 2  ;;  %v444_v46 = vrot.slane %v443_v29, 2  ;;  %v450_v51 = vrot.slane %v449_v42, 2  ;;  %v456_v45 = vrot.slane %v455_v34, 2 }
  0x43   :  { %v462_v33 = vrot.slane %v461_v55, 2  ;;  %v468_v43 = vrot.slane %v467_v4, 2  ;;  %v484_v8 = vrot.slane %v1819_v25, 4  ;;  %v490_v52 = vrot.slane %v1823_v23, 4 }
  0x44   :  { %v496_v38 = vrot.slane %v1827_v20, 4  ;;  %v502_v2 = vrot.slane %v1831_v60, 4  ;;  %v474_v47 = vrot.slane %v473_v50, 2  ;;  %v480_v16 = vrot.slane %v479_v53, 2 }
  0x45   :  { %v508_v0 = vrot.slane %v1835_v62, 4  ;;  %v514_v14 = vrot.slane %v1839_v18, 4  ;;  %v439_v5 = vadd.f32 %v438_v54, %v437_v17  ;;  %v445_v57 = vadd.f32 %v444_v46, %v443_v29 }
  0x46   :  { %v520_v63 = vrot.slane %v1843_v21, 4  ;;  %v526_v48 = vrot.slane %v1847_v39, 4  ;;  %v451_v10 = vadd.f32 %v450_v51, %v449_v42  ;;  %v457_v31 = vadd.f32 %v456_v45, %v455_v34 }
  0x47   :  { %v463_v49 = vadd.f32 %v462_v33, %v461_v55  ;;  %v469_v6 = vadd.f32 %v468_v43, %v467_v4  ;;  %v485_v12 = vadd.f32 %v484_v8, %v1819_v25  ;;  %v491_v40 = vadd.f32 %v490_v52, %v1823_v23 }
  0x48   :  { %v497_v30 = vadd.f32 %v496_v38, %v1827_v20  ;;  %v503_v24 = vadd.f32 %v502_v2, %v1831_v60  ;;  %v475_v59 = vadd.f32 %v474_v47, %v473_v50  ;;  %v481_v19 = vadd.f32 %v480_v16, %v479_v53 }
  0x49   :  { %v509_v61 = vadd.f32 %v508_v0, %v1835_v62  ;;  %v515_v22 = vadd.f32 %v514_v14, %v1839_v18  ;;  %v440_v26 = vrot.slane %v439_v5, 1  ;;  %v446_v41 = vrot.slane %v445_v57, 1 }
  0x4a   :  { %v521_v17 = vadd.f32 %v520_v63, %v1843_v21  ;;  %v527_v29 = vadd.f32 %v526_v48, %v1847_v39  ;;  %v452_v42 = vrot.slane %v451_v10, 1  ;;  %v458_v25 = vrot.slane %v457_v31, 1 }
  0x4b   :  { %v464_v34 = vrot.slane %v463_v49, 1  ;;  %v470_v23 = vrot.slane %v469_v6, 1  ;;  %v486_v55 = vrot.slane %v485_v12, 2  ;;  %v492_v20 = vrot.slane %v491_v40, 2 }
  0x4c   :  { %v498_v4 = vrot.slane %v497_v30, 2  ;;  %v504_v60 = vrot.slane %v503_v24, 2  ;;  %v476_v50 = vrot.slane %v475_v59, 1  ;;  %v482_v53 = vrot.slane %v481_v19, 1 }
  0x4d   :  { %v510_v54 = vrot.slane %v509_v61, 2  ;;  %v516_v62 = vrot.slane %v515_v22, 2  ;;  %v441_v46 = vadd.f32 %v440_v26, %v439_v5  ;;  %v447_v18 = vadd.f32 %v446_v41, %v445_v57 }
  0x4e   :  { %v522_v51 = vrot.slane %v521_v17, 2  ;;  %v528_v45 = vrot.slane %v527_v29, 2  ;;  %v453_v33 = vadd.f32 %v452_v42, %v451_v10  ;;  %v459_v21 = vadd.f32 %v458_v25, %v457_v31 }
  0x4f   :  { %v465_v43 = vadd.f32 %v464_v34, %v463_v49  ;;  %v471_v39 = vadd.f32 %v470_v23, %v469_v6  ;;  %v487_v8 = vadd.f32 %v486_v55, %v485_v12  ;;  %v493_v52 = vadd.f32 %v492_v20, %v491_v40 }
  0x50   :  { %v499_v38 = vadd.f32 %v498_v4, %v497_v30  ;;  %v1921_v2 = vadd.f32 %v504_v60, %v503_v24  ;;  %v477_v47 = vadd.f32 %v476_v50, %v475_v59  ;;  %v483_v16 = vadd.f32 %v482_v53, %v481_v19 }
  0x51   :  { %v1923_v0 = vadd.f32 %v510_v54, %v509_v61  ;;  %v1925_v14 = vadd.f32 %v516_v62, %v515_v22  ;;  %v1927_v63 = vadd.f32 %v522_v51, %v521_v17  ;;  %v1929_v5 = vadd.f32 %v528_v45, %v527_v29 }
  0x52   :  { %v1932_v57 = vmul.f32 0.0625, %v1857_v56  ;;  %v1935_v48 = vmul.f32 0.0625, %v1859_v3  ;;  %v1938_v10 = vmul.f32 0.0625, %v1861_v28  ;;  %v1940_v31 = vmul.f32 0.0625, %v441_v46 }
  0x53   :  { %v1942_v49 = vmul.f32 0.0625, %v447_v18  ;;  %v1944_v6 = vmul.f32 0.0625, %v453_v33  ;;  %v488_v12 = vrot.slane %v487_v8, 1  ;;  %v494_v40 = vrot.slane %v493_v52, 1 }
  0x54   :  { %v500_v30 = vrot.slane %v499_v38, 1  ;;  %v506_v24 = vrot.slane %v1921_v2, 1  ;;  %v512_v56 = vrot.slane %v1923_v0, 1  ;;  %v518_v59 = vrot.slane %v1925_v14, 1 }
  0x55   :  { %v1950_v3 = vmul.f32 0.0625, %v1863_v44  ;;  %v1952_v28 = vmul.f32 0.0625, %v459_v21  ;;  %v1955_v19 = vmul.f32 0.0625, %v1865_v58  ;;  %v1957_v61 = vmul.f32 0.0625, %v465_v43 }
  0x56   :  { %v564_v22 = vmul.f32 %v1932_v57, %v1932_v57  ;;  %v565_v26 = vmul.f32 %v1935_v48, %v1935_v48  ;;  %v566_v41 = vmul.f32 %v1938_v10, %v1938_v10  ;;  %v580_v44 = vmul.f32 %v1940_v31, %v1940_v31 }
  0x57   :  { %v581_v17 = vmul.f32 %v1942_v49, %v1942_v49  ;;  %v582_v58 = vmul.f32 %v1944_v6, %v1944_v6  ;;  %v489_v29 = vadd.f32 %v488_v12, %v487_v8  ;;  %v524_v42 = vrot.slane %v1927_v63, 1  ;;  %v772_v8 = vld [vmem:[#allocation3 + $0xf8] sm:$0xff]  ;;  %v755_v12 = vld [vmem:[#allocation3 + $0x70] sm:$0xff] }
  0x58   :  { %v530_v25 = vrot.slane %v1929_v5, 1  ;;  %v1974_v34 = vmul.f32 0.0625, %v1867_v7  ;;  %v1976_v23 = vmul.f32 0.0625, %v471_v39  ;;  %v567_v55 = vmul.f32 %v1950_v3, %v1950_v3  ;;  %v756_v39 = vld [vmem:[#allocation3 + $0x78] sm:$0xff]  ;;  %1101 = vmatpush.msra.mxu1 %v772_v8 }
  0x59   :  { %v583_v20 = vmul.f32 %v1952_v28, %v1952_v28  ;;  %v1983_v4 = vmul.f32 0.0625, %v1869_v32  ;;  %v1985_v60 = vmul.f32 0.0625, %v477_v47  ;;  %v568_v50 = vmul.f32 %v1955_v19, %v1955_v19  ;;  %1081 = vmatpush.msra.mxu0 %v756_v39  ;;  %v753_v39 = vld [vmem:[#allocation3 + $0x60] sm:$0xff] }
  0x5a   :  { %v584_v7 = vmul.f32 %v1957_v61, %v1957_v61  ;;  %v629_v53 = vsel %vm628_vm0, %v580_v44, %v564_v22  ;;  %v630_v54 = vsel %vm628_vm0, %v581_v17, %v565_v26  ;;  %v631_v62 = vsel %vm628_vm0, %v582_v58, %v566_v41  ;;  %v771_v41 = vld [vmem:[#allocation3 + $0xf0] sm:$0xff] }
  0x5b   :  { %v495_v46 = vadd.f32 %v494_v40, %v493_v52  ;;  %v501_v18 = vadd.f32 %v500_v30, %v499_v38  ;;  %v1995_v32 = vmul.f32 0.0625, %v1871_v35  ;;  %v1998_v51 = vmul.f32 0.0625, %v1887_v15  ;;  %v788_v52 = vld [vmem:[#allocation3 + $0x178] sm:$0xff]  ;;  %v787_v44 = vld [vmem:[#allocation3 + $0x170] sm:$0xff]  ;;  %1082 = vmatpush.msra.mxu0 %v755_v12  ;;  %1102 = vmatpush.msra.mxu1 %v771_v41 }
  0x5c   :  { %v2000_v45 = vmul.f32 0.0625, %v483_v16  ;;  %v569_v33 = vmul.f32 %v1974_v34, %v1974_v34  ;;  %v585_v21 = vmul.f32 %v1976_v23, %v1976_v23  ;;  %v632_v43 = vsel %vm628_vm0, %v583_v20, %v567_v55  ;;  %v804_v16 = vld [vmem:[#allocation3 + $0x1f8] sm:$0xff]  ;;  %1121 = vmatpush.msra.mxu2 %v788_v52  ;;  %v803_v17 = vld [vmem:[#allocation3 + $0x1f0] sm:$0xff] }
  0x5d   :  { %v570_v35 = vmul.f32 %v1983_v4, %v1983_v4  ;;  %v662_v38 = vsel %vm661_vm1, %v629_v53, 0.0  ;;  %v663_v15 = vsel %vm661_vm1, %v630_v54, 0.0  ;;  %v665_v47 = vsel %vm661_vm1, %v631_v62, 0.0  ;;  %1141 = vmatpush.msra.mxu3 %v804_v16  ;;  %v754_v53 = vld [vmem:[#allocation3 + $0x68] sm:$0xff]  ;;  %v768_v16 = vld [vmem:[#allocation3 + $0xd8] sm:$0xff] }
  0x5e   :  { %v2012_v40 = vmul.f32 0.0625, %v489_v29  ;;  %v586_v30 = vmul.f32 %v1985_v60, %v1985_v60  ;;  %v633_v22 = vsel %vm628_vm0, %v584_v7, %v568_v50  ;;  %v664_v26 = vadd.f32 %v663_v15, %v662_v38  ;;  %v770_v50 = vld [vmem:[#allocation3 + $0xe8] sm:$0xff]  ;;  %1122 = vmatpush.msra.mxu2 %v787_v44  ;;  %1083 = vmatpush.msra.mxu0 %v754_v53  ;;  %v801_v38 = vld [vmem:[#allocation3 + $0x1e0] sm:$0xff] }
  0x5f   :  { %v507_v58 = vadd.f32 %v506_v24, %v1921_v2  ;;  %v2019_v55 = vmul.f32 0.0625, %v1889_v36  ;;  %v571_v29 = vmul.f32 %v1995_v32, %v1995_v32  ;;  %v667_v20 = vsel %vm661_vm1, %v632_v43, 0.0  ;;  %1142 = vmatpush.msra.mxu3 %v803_v17  ;;  %v786_v36 = vld [vmem:[#allocation3 + $0x168] sm:$0xff]  ;;  %1103 = vmatpush.msra.mxu1 %v770_v50 }
  0x60   :  { %v2024_v7 = vmul.f32 0.0625, %v495_v46  ;;  %v587_v54 = vmul.f32 %v2000_v45, %v2000_v45  ;;  %v634_v62 = vsel %vm628_vm0, %v585_v21, %v569_v33  ;;  %v666_v2 = vadd.f32 %v665_v47, %v664_v26  ;;  %v802_v24 = vld [vmem:[#allocation3 + $0x1e8] sm:$0xff]  ;;  %v769_v33 = vld [vmem:[#allocation3 + $0xe0] sm:$0xff]  ;;  %1123 = vmatpush.msra.mxu2 %v786_v36  ;;  %1084 = vmatpush.msra.mxu0 %v753_v39 }
  0x61   :  { %v513_v43 = vadd.f32 %v512_v56, %v1923_v0  ;;  %v2033_v8 = vmul.f32 0.0625, %v1891_v13  ;;  %v572_v46 = vmul.f32 %v1998_v51, %v1998_v51  ;;  %v669_v52 = vsel %vm661_vm1, %v633_v22, 0.0  ;;  %v785_v21 = vld [vmem:[#allocation3 + $0x160] sm:$0xff]  ;;  %1143 = vmatpush.msra.mxu3 %v802_v24  ;;  %v752_v13 = vld [vmem:[#allocation3 + $0x58] sm:$0xff]  ;;  %1104 = vmatpush.msra.mxu1 %v769_v33  ;;  %v798_v33 = vld [vmem:[#allocation3 + $0x1c8] sm:$0xff] }
  0x62   :  { %v2038_v15 = vmul.f32 0.0625, %v501_v18  ;;  %v588_v47 = vmul.f32 %v2012_v40, %v2012_v40  ;;  %v635_v0 = vsel %vm628_vm0, %v586_v30, %v570_v35  ;;  %v668_v56 = vadd.f32 %v667_v20, %v666_v2  ;;  %v784_v35 = vld [vmem:[#allocation3 + $0x158] sm:$0xff]  ;;  %1124 = vmatpush.msra.mxu2 %v785_v21  ;;  %1085 = vmatpush.msra.mxu0 %v752_v13 }
  0x63   :  { %v519_v12 = vadd.f32 %v518_v59, %v1925_v14  ;;  %v2047_v22 = vmul.f32 0.0625, %v1893_v37  ;;  %v573_v18 = vmul.f32 %v2019_v55, %v2019_v55  ;;  %v671_v26 = vsel %vm661_vm1, %v634_v62, 0.0  ;;  %v800_v30 = vld [vmem:[#allocation3 + $0x1d8] sm:$0xff]  ;;  %1144 = vmatpush.msra.mxu3 %v801_v38  ;;  %v751_v37 = vld [vmem:[#allocation3 + $0x50] sm:$0xff]  ;;  %1105 = vmatpush.msra.mxu1 %v768_v16  ;;  %v781_v16 = vld [vmem:[#allocation3 + $0x140] sm:$0xff] }
  0x64   :  { %v2052_v41 = vmul.f32 0.0625, %v507_v58  ;;  %v589_v44 = vmul.f32 %v2024_v7, %v2024_v7  ;;  %v636_v17 = vsel %vm628_vm0, %v587_v54, %v571_v29  ;;  %v670_v14 = vadd.f32 %v669_v52, %v668_v56  ;;  %v767_v59 = vld [vmem:[#allocation3 + $0xd0] sm:$0xff]  ;;  %1125 = vmatpush.msra.mxu2 %v784_v35  ;;  %1086 = vmatpush.msra.mxu0 %v751_v37 }
  0x65   :  { %v525_v20 = vadd.f32 %v524_v42, %v1927_v63  ;;  %v2061_v53 = vmul.f32 0.0625, %v1895_v27  ;;  %v574_v58 = vmul.f32 %v2033_v8, %v2033_v8  ;;  %v673_v50 = vsel %vm661_vm1, %v635_v0, 0.0  ;;  %v783_v29 = vld [vmem:[#allocation3 + $0x150] sm:$0xff]  ;;  %1145 = vmatpush.msra.mxu3 %v800_v30  ;;  %v750_v27 = vld [vmem:[#allocation3 + $0x48] sm:$0xff]  ;;  %1106 = vmatpush.msra.mxu1 %v767_v59  ;;  %v780_v59 = vld [vmem:[#allocation3 + $0x138] sm:$0xff] }
  0x66   :  { %v799_v54 = vld [vmem:[#allocation3 + $0x1d0] sm:$0xff]  ;;  %v2066_v62 = vmul.f32 0.0625, %v513_v43  ;;  %v590_v2 = vmul.f32 %v2038_v15, %v2038_v15  ;;  %v637_v36 = vsel %vm628_vm0, %v588_v47, %v572_v46  ;;  %v672_v63 = vadd.f32 %v671_v26, %v670_v14  ;;  %v766_v42 = vld [vmem:[#allocation3 + $0xc8] sm:$0xff]  ;;  %1126 = vmatpush.msra.mxu2 %v783_v29  ;;  %1087 = vmatpush.msra.mxu0 %v750_v27 }
  0x67   :  { %v531_v24 = vadd.f32 %v530_v25, %v1929_v5  ;;  %v2075_v39 = vmul.f32 0.0625, %v1897_v11  ;;  %v575_v43 = vmul.f32 %v2047_v22, %v2047_v22  ;;  %v675_v52 = vsel %vm661_vm1, %v636_v17, 0.0  ;;  %v782_v46 = vld [vmem:[#allocation3 + $0x148] sm:$0xff]  ;;  %1146 = vmatpush.msra.mxu3 %v799_v54  ;;  %v749_v11 = vld [vmem:[#allocation3 + $0x40] sm:$0xff]  ;;  %1107 = vmatpush.msra.mxu1 %v766_v42  ;;  %v779_v27 = vld [vmem:[#allocation3 + $0x130] sm:$0xff] }
  0x68   :  { %v2080_v21 = vmul.f32 0.0625, %v519_v12  ;;  %v591_v38 = vmul.f32 %v2052_v41, %v2052_v41  ;;  %v638_v47 = vsel %vm628_vm0, %v589_v44, %v573_v18  ;;  %v674_v5 = vadd.f32 %v673_v50, %v672_v63  ;;  %v765_v25 = vld [vmem:[#allocation3 + $0xc0] sm:$0xff]  ;;  %1127 = vmatpush.msra.mxu2 %v782_v46  ;;  %v764_v44 = vld [vmem:[#allocation3 + $0xb8] sm:$0xff]  ;;  %1088 = vmatpush.msra.mxu0 %v749_v11  ;;  %v795_v42 = vld [vmem:[#allocation3 + $0x1b0] sm:$0xff] }
  0x69   :  { %v2086_v0 = vmul.f32 0.0625, %v1901_v1  ;;  %v576_v56 = vmul.f32 %v2061_v53, %v2061_v53  ;;  %v677_v13 = vsel %vm661_vm1, %v637_v36, 0.0  ;;  %v797_v12 = vld [vmem:[#allocation3 + $0x1c0] sm:$0xff]  ;;  %v2091_v26 = vmul.f32 0.0625, %v525_v20  ;;  %1147 = vmatpush.msra.mxu3 %v798_v33  ;;  %v748_v1 = vld [vmem:[#allocation3 + $0x38] sm:$0xff]  ;;  %1108 = vmatpush.msra.mxu1 %v765_v25  ;;  %v746_v46 = vld [vmem:[#allocation3 + $0x28] sm:$0xff] }
  0x6a   :  { %v592_v18 = vmul.f32 %v2066_v62, %v2066_v62  ;;  %v639_v35 = vsel %vm628_vm0, %v590_v2, %v574_v58  ;;  %v676_v30 = vadd.f32 %v675_v52, %v674_v5  ;;  %v2097_v17 = vmul.f32 0.0625, %v1903_v9  ;;  %v796_v20 = vld [vmem:[#allocation3 + $0x1b8] sm:$0xff]  ;;  %1128 = vmatpush.msra.mxu2 %v781_v16  ;;  %v747_v9 = vld [vmem:[#allocation3 + $0x30] sm:$0xff]  ;;  %1089 = vmatpush.msra.mxu0 %v748_v1  ;;  %v762_v33 = vld [vmem:[#allocation3 + $0xa8] sm:$0xff] }
  0x6b   :  { %v577_v14 = vmul.f32 %v2075_v39, %v2075_v39  ;;  %v679_v37 = vsel %vm661_vm1, %v638_v47, 0.0  ;;  %v2102_v50 = vmul.f32 0.0625, %v531_v24  ;;  %v593_v58 = vmul.f32 %v2080_v21, %v2080_v21  ;;  %1148 = vmatpush.msra.mxu3 %v797_v12  ;;  %v763_v2 = vld [vmem:[#allocation3 + $0xb0] sm:$0xff]  ;;  %1109 = vmatpush.msra.mxu1 %v764_v44  ;;  %v778_v5 = vld [vmem:[#allocation3 + $0x128] sm:$0xff]  ;;  %v745_v16 = vld [vmem:[#allocation3 + $0x20] sm:$0xff] }
  0x6c   :  { %v640_v29 = vsel %vm628_vm0, %v591_v38, %v575_v43  ;;  %v678_v54 = vadd.f32 %v677_v13, %v676_v30  ;;  %v578_v36 = vmul.f32 %v2086_v0, %v2086_v0  ;;  %v681_v63 = vsel %vm661_vm1, %v639_v35, 0.0  ;;  %1129 = vmatpush.msra.mxu2 %v780_v59  ;;  %1090 = vmatpush.msra.mxu0 %v747_v9  ;;  %v794_v11 = vld [vmem:[#allocation3 + $0x1a8] sm:$0xff]  ;;  %v761_v12 = vld [vmem:[#allocation3 + $0xa0] sm:$0xff]  ;;  %v760_v59 = vld [vmem:[#allocation3 + $0x98] sm:$0xff] }
  0x6d   :  { %v594_v24 = vmul.f32 %v2091_v26, %v2091_v26  ;;  %v641_v52 = vsel %vm628_vm0, %v592_v18, %v576_v56  ;;  %1149 = vmatpush.msra.mxu3 %v796_v20  ;;  %v579_v38 = vmul.f32 %v2097_v17, %v2097_v17  ;;  %v683_v47 = vsel %vm661_vm1, %v640_v29, 0.0  ;;  %1110 = vmatpush.msra.mxu1 %v763_v2  ;;  %v777_v35 = vld [vmem:[#allocation3 + $0x120] sm:$0xff]  ;;  %v776_v20 = vld [vmem:[#allocation3 + $0x118] sm:$0xff]  ;;  %v743_v9 = vld [vmem:[#allocation3 + $0x10] sm:$0xff] }
  0x6e   :  { %v680_v43 = vadd.f32 %v679_v37, %v678_v54  ;;  %v595_v25 = vmul.f32 %v2102_v50, %v2102_v50  ;;  %v642_v13 = vsel %vm628_vm0, %v593_v58, %v577_v14  ;;  %1130 = vmatpush.msra.mxu2 %v779_v27  ;;  %v685_v18 = vsel %vm661_vm1, %v641_v52, 0.0  ;;  %1091 = vmatpush.msra.mxu0 %v746_v46  ;;  %v793_v30 = vld [vmem:[#allocation3 + $0x1a0] sm:$0xff]  ;;  %v744_v37 = vld [vmem:[#allocation3 + $0x18] sm:$0xff]  ;;  %v759_v2 = vld [vmem:[#allocation3 + $0x90] sm:$0xff] }
  0x6f   :  { %1150 = vmatpush.msra.mxu3 %v795_v42  ;;  %1111 = vmatpush.msra.mxu1 %v762_v33  ;;  %v643_v1 = vsel %vm628_vm0, %v594_v24, %v578_v36  ;;  %v687_v14 = vsel %vm661_vm1, %v642_v13, 0.0  ;;  %v792_v58 = vld [vmem:[#allocation3 + $0x198] sm:$0xff]  ;;  %v791_v27 = vld [vmem:[#allocation3 + $0x190] sm:$0xff]  ;;  %v742_v24 = vld [vmem:[#allocation3 + $0x8] sm:$0xff] }
  0x70   :  { %v682_v56 = vadd.f32 %v681_v63, %v680_v43  ;;  %1131 = vmatpush.msra.mxu2 %v778_v5  ;;  %1092 = vmatpush.msra.mxu0 %v745_v16  ;;  %v644_v29 = vsel %vm628_vm0, %v595_v25, %v579_v38  ;;  %v689_v36 = vsel %vm661_vm1, %v643_v1, 0.0  ;;  %v775_v63 = vld [vmem:[#allocation3 + $0x110] sm:$0xff]  ;;  %v758_v52 = vld [vmem:[#allocation3 + $0x88] sm:$0xff]  ;;  %v757_v5 = vld [vmem:[#allocation3 + $0x80] sm:$0xff] }
  0x71   :  { %1151 = vmatpush.msra.mxu3 %v794_v11  ;;  %1112 = vmatpush.msra.mxu1 %v761_v12  ;;  %v691_v43 = vsel %vm661_vm1, %v644_v29, 0.0  ;;  %v774_v46 = vld [vmem:[#allocation3 + $0x108] sm:$0xff]  ;;  %v773_v11 = vld [vmem:[#allocation3 + $0x100] sm:$0xff]  ;;  %v836_v16 = vld [vmem:[#allocation3 + $0x2f8] sm:$0xff] }
  0x72   :  { %v684_v44 = vadd.f32 %v683_v47, %v682_v56  ;;  %1132 = vmatpush.msra.mxu2 %v777_v35  ;;  %1093 = vmatpush.msra.mxu0 %v744_v37  ;;  %v790_v33 = vld [vmem:[#allocation3 + $0x188] sm:$0xff]  ;;  %v741_v47 = vld [vmem:[#allocation3] sm:$0xff]  ;;  %v820_v56 = vld [vmem:[#allocation3 + $0x278] sm:$0xff] }
  0x73   :  { %1152 = vmatpush.msra.mxu3 %v793_v30  ;;  %1113 = vmatpush.msra.mxu1 %v760_v59  ;;  %v789_v13 = vld [vmem:[#allocation3 + $0x180] sm:$0xff]  ;;  %v852_v12 = vld [vmem:[#allocation3 + $0x378] sm:$0xff]  ;;  %v819_v35 = vld [vmem:[#allocation3 + $0x270] sm:$0xff] }
  0x74   :  { %v686_v54 = vadd.f32 %v685_v18, %v684_v44  ;;  %1133 = vmatpush.msra.mxu2 %v776_v20  ;;  %1094 = vmatpush.msra.mxu0 %v743_v9  ;;  %v868_v18 = vld [vmem:[#allocation3 + $0x3f8] sm:$0xff]  ;;  %v835_v30 = vld [vmem:[#allocation3 + $0x2f0] sm:$0xff]  ;;  %v818_v37 = vld [vmem:[#allocation3 + $0x268] sm:$0xff] }
  0x75   :  { %1153 = vmatpush.msra.mxu3 %v792_v58  ;;  %1114 = vmatpush.msra.mxu1 %v759_v2  ;;  %v851_v1 = vld [vmem:[#allocation3 + $0x370] sm:$0xff]  ;;  %v834_v59 = vld [vmem:[#allocation3 + $0x2e8] sm:$0xff]  ;;  %v817_v58 = vld [vmem:[#allocation3 + $0x260] sm:$0xff] }
  0x76   :  { %v688_v42 = vadd.f32 %v687_v14, %v686_v54  ;;  %1134 = vmatpush.msra.mxu2 %v775_v63  ;;  %1095 = vmatpush.msra.mxu0 %v742_v24  ;;  %v867_v44 = vld [vmem:[#allocation3 + $0x3f0] sm:$0xff]  ;;  %v850_v14 = vld [vmem:[#allocation3 + $0x368] sm:$0xff]  ;;  %v833_v29 = vld [vmem:[#allocation3 + $0x2e0] sm:$0xff] }
  0x77   :  { %1154 = vmatpush.msra.mxu3 %v791_v27  ;;  %1115 = vmatpush.msra.mxu1 %v758_v52  ;;  %v866_v20 = vld [vmem:[#allocation3 + $0x3e8] sm:$0xff]  ;;  %v849_v54 = vld [vmem:[#allocation3 + $0x360] sm:$0xff]  ;;  %v816_v2 = vld [vmem:[#allocation3 + $0x258] sm:$0xff] }
  0x78   :  { %v690_v38 = vadd.f32 %v689_v36, %v688_v42  ;;  %1135 = vmatpush.msra.mxu2 %v774_v46  ;;  %1096 = vmatpush.msra.mxu0 %v741_v47  ;;  %v865_v9 = vld [vmem:[#allocation3 + $0x3e0] sm:$0xff]  ;;  %v832_v36 = vld [vmem:[#allocation3 + $0x2d8] sm:$0xff]  ;;  %v815_v42 = vld [vmem:[#allocation3 + $0x250] sm:$0xff] }
  0x79   :  { %1155 = vmatpush.msra.mxu3 %v790_v33  ;;  %1116 = vmatpush.msra.mxu1 %v757_v5  ;;  %v848_v63 = vld [vmem:[#allocation3 + $0x358] sm:$0xff]  ;;  %v831_v24 = vld [vmem:[#allocation3 + $0x2d0] sm:$0xff]  ;;  %v814_v46 = vld [vmem:[#allocation3 + $0x248] sm:$0xff] }
  0x7a   :  { %v692_v25 = vadd.f32 %v691_v43, %v690_v38  ;;  %1136 = vmatpush.msra.mxu2 %v773_v11  ;;  %1161 = vmatpush.msrb.mxu0 %v820_v56  ;;  %v864_v27 = vld [vmem:[#allocation3 + $0x3d8] sm:$0xff]  ;;  %v847_v52 = vld [vmem:[#allocation3 + $0x350] sm:$0xff]  ;;  %v830_v33 = vld [vmem:[#allocation3 + $0x2c8] sm:$0xff] }
  0x7b   :  { %1156 = vmatpush.msra.mxu3 %v789_v13  ;;  %1181 = vmatpush.msrb.mxu1 %v836_v16  ;;  %v863_v43 = vld [vmem:[#allocation3 + $0x3d0] sm:$0xff]  ;;  %v846_v38 = vld [vmem:[#allocation3 + $0x348] sm:$0xff]  ;;  %v813_v5 = vld [vmem:[#allocation3 + $0x240] sm:$0xff] }
  0x7c   :  { %693 = vadd.xlane.f32.xlu0 %v692_v25  ;;  %1201 = vmatpush.msrb.mxu2 %v852_v12  ;;  %v862_v47 = vld [vmem:[#allocation3 + $0x3c8] sm:$0xff]  ;;  %v829_v11 = vld [vmem:[#allocation3 + $0x2c0] sm:$0xff]  ;;  %v812_v56 = vld [vmem:[#allocation3 + $0x238] sm:$0xff] }
  0x7d   :  { %1221 = vmatpush.msrb.mxu3 %v868_v18  ;;  %1162 = vmatpush.msrb.mxu0 %v819_v35  ;;  %v845_v25 = vld [vmem:[#allocation3 + $0x340] sm:$0xff]  ;;  %v828_v16 = vld [vmem:[#allocation3 + $0x2b8] sm:$0xff]  ;;  %v811_v35 = vld [vmem:[#allocation3 + $0x230] sm:$0xff] }
  0x7e   :  { %1182 = vmatpush.msrb.mxu1 %v835_v30  ;;  %1202 = vmatpush.msrb.mxu2 %v851_v1  ;;  %v861_v13 = vld [vmem:[#allocation3 + $0x3c0] sm:$0xff]  ;;  %v844_v12 = vld [vmem:[#allocation3 + $0x338] sm:$0xff]  ;;  %v827_v30 = vld [vmem:[#allocation3 + $0x2b0] sm:$0xff] }
  0x7f   :  { %1222 = vmatpush.msrb.mxu3 %v867_v44  ;;  %1163 = vmatpush.msrb.mxu0 %v818_v37  ;;  %v860_v18 = vld [vmem:[#allocation3 + $0x3b8] sm:$0xff]  ;;  %v843_v1 = vld [vmem:[#allocation3 + $0x330] sm:$0xff]  ;;  %v810_v37 = vld [vmem:[#allocation3 + $0x228] sm:$0xff] }
  0x80   :  { %1183 = vmatpush.msrb.mxu1 %v834_v59  ;;  %1203 = vmatpush.msrb.mxu2 %v850_v14  ;;  %v859_v44 = vld [vmem:[#allocation3 + $0x3b0] sm:$0xff]  ;;  %v826_v59 = vld [vmem:[#allocation3 + $0x2a8] sm:$0xff] }
  0x81   :  { %1223 = vmatpush.msrb.mxu3 %v866_v20  ;;  %1164 = vmatpush.msrb.mxu0 %v817_v58  ;;  %v842_v14 = vld [vmem:[#allocation3 + $0x328] sm:$0xff]  ;;  %v809_v58 = vld [vmem:[#allocation3 + $0x220] sm:$0xff] }
  0x82   :  { %1184 = vmatpush.msrb.mxu1 %v833_v29  ;;  %1204 = vmatpush.msrb.mxu2 %v849_v54  ;;  %v858_v20 = vld [vmem:[#allocation3 + $0x3a8] sm:$0xff]  ;;  %v825_v29 = vld [vmem:[#allocation3 + $0x2a0] sm:$0xff] }
  0x83   :  { %1224 = vmatpush.msrb.mxu3 %v865_v9  ;;  %1165 = vmatpush.msrb.mxu0 %v816_v2  ;;  %v841_v54 = vld [vmem:[#allocation3 + $0x320] sm:$0xff]  ;;  %v808_v2 = vld [vmem:[#allocation3 + $0x218] sm:$0xff] }
  0x84   :  { %1185 = vmatpush.msrb.mxu1 %v832_v36  ;;  %1205 = vmatpush.msrb.mxu2 %v848_v63  ;;  %v857_v9 = vld [vmem:[#allocation3 + $0x3a0] sm:$0xff]  ;;  %v824_v36 = vld [vmem:[#allocation3 + $0x298] sm:$0xff] }
  0x85   :  { %1225 = vmatpush.msrb.mxu3 %v864_v27  ;;  %1166 = vmatpush.msrb.mxu0 %v815_v42  ;;  %v840_v63 = vld [vmem:[#allocation3 + $0x318] sm:$0xff]  ;;  %v807_v42 = vld [vmem:[#allocation3 + $0x210] sm:$0xff] }
  0x86   :  { %1186 = vmatpush.msrb.mxu1 %v831_v24  ;;  %1206 = vmatpush.msrb.mxu2 %v847_v52  ;;  %v856_v27 = vld [vmem:[#allocation3 + $0x398] sm:$0xff]  ;;  %v823_v24 = vld [vmem:[#allocation3 + $0x290] sm:$0xff] }
  0x87   :  { %1226 = vmatpush.msrb.mxu3 %v863_v43  ;;  %1167 = vmatpush.msrb.mxu0 %v814_v46  ;;  %v839_v52 = vld [vmem:[#allocation3 + $0x310] sm:$0xff]  ;;  %v806_v46 = vld [vmem:[#allocation3 + $0x208] sm:$0xff] }
  0x88   :  { %1187 = vmatpush.msrb.mxu1 %v830_v33  ;;  %1207 = vmatpush.msrb.mxu2 %v846_v38  ;;  %v855_v43 = vld [vmem:[#allocation3 + $0x390] sm:$0xff]  ;;  %v822_v33 = vld [vmem:[#allocation3 + $0x288] sm:$0xff] }
  0x89   :  { %1227 = vmatpush.msrb.mxu3 %v862_v47  ;;  %1168 = vmatpush.msrb.mxu0 %v813_v5  ;;  %v838_v38 = vld [vmem:[#allocation3 + $0x308] sm:$0xff]  ;;  %v805_v5 = vld [vmem:[#allocation3 + $0x200] sm:$0xff] }
  0x8a   :  { %1188 = vmatpush.msrb.mxu1 %v829_v11  ;;  %1208 = vmatpush.msrb.mxu2 %v845_v25  ;;  %v854_v47 = vld [vmem:[#allocation3 + $0x388] sm:$0xff]  ;;  %v821_v11 = vld [vmem:[#allocation3 + $0x280] sm:$0xff] }
  0x8b   :  { %1228 = vmatpush.msrb.mxu3 %v861_v13  ;;  %1169 = vmatpush.msrb.mxu0 %v812_v56  ;;  %v837_v25 = vld [vmem:[#allocation3 + $0x300] sm:$0xff] }
  0x8c   :  { %1189 = vmatpush.msrb.mxu1 %v828_v16  ;;  %1209 = vmatpush.msrb.mxu2 %v844_v12  ;;  %v853_v13 = vld [vmem:[#allocation3 + $0x380] sm:$0xff] }
  0x8d   :  { %1229 = vmatpush.msrb.mxu3 %v860_v18  ;;  %1170 = vmatpush.msrb.mxu0 %v811_v35 }
  0x8e   :  { %1190 = vmatpush.msrb.mxu1 %v827_v30  ;;  %1210 = vmatpush.msrb.mxu2 %v843_v1 }
  0x8f   :  { %1230 = vmatpush.msrb.mxu3 %v859_v44  ;;  %1171 = vmatpush.msrb.mxu0 %v810_v37 }
  0x90   :  { %1191 = vmatpush.msrb.mxu1 %v826_v59  ;;  %1211 = vmatpush.msrb.mxu2 %v842_v14 }
  0x91   :  { %1231 = vmatpush.msrb.mxu3 %v858_v20  ;;  %1172 = vmatpush.msrb.mxu0 %v809_v58 }
  0x92   :  { %1192 = vmatpush.msrb.mxu1 %v825_v29  ;;  %1212 = vmatpush.msrb.mxu2 %v841_v54 }
  0x93   :  { %1232 = vmatpush.msrb.mxu3 %v857_v9  ;;  %1173 = vmatpush.msrb.mxu0 %v808_v2 }
  0x94   :  { %1193 = vmatpush.msrb.mxu1 %v824_v36  ;;  %1213 = vmatpush.msrb.mxu2 %v840_v63 }
  0x95   :  { %1233 = vmatpush.msrb.mxu3 %v856_v27  ;;  %1174 = vmatpush.msrb.mxu0 %v807_v42  ;;  %v884_v42 = vld [vmem:[#allocation3 + $0x478] sm:$0xff] }
  0x96   :  { %1194 = vmatpush.msrb.mxu1 %v823_v24  ;;  %1214 = vmatpush.msrb.mxu2 %v839_v52  ;;  %v932_v24 = vld [vmem:[#allocation3 + $0x5f8] sm:$0xff]  ;;  %v883_v52 = vld [vmem:[#allocation3 + $0x470] sm:$0xff] }
  0x97   :  { %1234 = vmatpush.msrb.mxu3 %v855_v43  ;;  %1175 = vmatpush.msrb.mxu0 %v806_v46  ;;  %v899_v43 = vld [vmem:[#allocation3 + $0x4f0] sm:$0xff] }
  0x98   :  { %1195 = vmatpush.msrb.mxu1 %v822_v33  ;;  %1215 = vmatpush.msrb.mxu2 %v838_v38  ;;  %v915_v33 = vld [vmem:[#allocation3 + $0x570] sm:$0xff] }
  0x99   :  { %1235 = vmatpush.msrb.mxu3 %v854_v47  ;;  %1176 = vmatpush.msrb.mxu0 %v805_v5  ;;  %v931_v38 = vld [vmem:[#allocation3 + $0x5f0] sm:$0xff]  ;;  %v882_v5 = vld [vmem:[#allocation3 + $0x468] sm:$0xff] }
  0x9a   :  { %1196 = vmatpush.msrb.mxu1 %v821_v11  ;;  %1216 = vmatpush.msrb.mxu2 %v837_v25  ;;  %v898_v11 = vld [vmem:[#allocation3 + $0x4e8] sm:$0xff] }
  0x9b   :  { %1236 = vmatpush.msrb.mxu3 %v853_v13  ;;  %v914_v13 = vld [vmem:[#allocation3 + $0x568] sm:$0xff] }
  0xef   :  { %v694_v56 = vpop.xlane.xlu0 %693 }
  0xf0   :  { %1426 = vrsqrt.f32 %v694_v56  ;;  %vm701_vm3 = vweird.f32 %v694_v56 }
  0xf6   :  { %v1427_v16 = vpop.eup %1426 }
  0xf7   :  { %v696_v12 = vmul.f32 %v1427_v16, %v694_v56  ;;  %vm702_vm2 = vweird.f32 %v1427_v16  ;;  %v930_v56 = vld [vmem:[#allocation3 + $0x5e8] sm:$0xff] }
  0xf8   :  { %vm703_vm4 = vmor %vm701_vm3, %vm702_vm2 }
  0xf9   :  { %v697_v18 = vmul.f32 %v1427_v16, %v696_v12  ;;  %v897_v12 = vld [vmem:[#allocation3 + $0x4e0] sm:$0xff] }
  0xfb   :  { %v698_v35 = vmul.f32 0.5, %v697_v18 }
  0xfd   :  { %v699_v30 = vsub.f32 1.5, %v698_v35 }
  0xff   :  { %v700_v1 = vmul.f32 %v1427_v16, %v699_v30 }
 0x101   :  { %v2125_v44 = vsel %vm703_vm4, %v1427_v16, %v700_v1 }
 0x102   :  { %v2128_v37 = vrot.slane %v2125_v44, 1  ;;  %v709_v29 = vmul.f32 %v2125_v44, %v1932_v57  ;;  %v710_v54 = vmul.f32 %v2125_v44, %v1935_v48  ;;  %v711_v9 = vmul.f32 %v2125_v44, %v1938_v10  ;;  %v900_v10 = vld [vmem:[#allocation3 + $0x4f8] sm:$0xff] }
 0x103   :  { %v715_v35 = vmul.f32 %v2125_v44, %v1983_v4 }
 0x104   :  { %v725_v59 = vmul.f32 %v2128_v37, %v1940_v31  ;;  %v726_v14 = vmul.f32 %v2128_v37, %v1942_v49  ;;  %v727_v20 = vmul.f32 %v2128_v37, %v1944_v6  ;;  %v728_v58 = vmul.f32 %v2128_v37, %v1952_v28 }
 0x105   :  { %v712_v31 = vmul.f32 %v2125_v44, %v1950_v3  ;;  %v729_v6 = vmul.f32 %v2128_v37, %v1957_v61  ;;  %v916_v3 = vld [vmem:[#allocation3 + $0x578] sm:$0xff]  ;;  %v730_v61 = vmul.f32 %v2128_v37, %v1976_v23  ;;  %v731_v46 = vmul.f32 %v2128_v37, %v1985_v60 }
 0x106   :  { %v1033_v2 = vrot.slane %v725_v59, 7  ;;  %v1035_v49 = vrot.slane %v726_v14, 7  ;;  %v1037_v36 = vrot.slane %v727_v20, 7  ;;  %v1039_v63 = vrot.slane %v728_v58, 7  ;;  %v929_v59 = vld [vmem:[#allocation3 + $0x5e0] sm:$0xff] }
 0x107   :  { %v732_v47 = vmul.f32 %v2128_v37, %v2000_v45  ;;  %v1041_v25 = vrot.slane %v729_v6, 7  ;;  %v713_v23 = vmul.f32 %v2125_v44, %v1955_v19  ;;  %v714_v60 = vmul.f32 %v2125_v44, %v1974_v34  ;;  %v881_v45 = vld [vmem:[#allocation3 + $0x460] sm:$0xff] }
 0x108   :  { %v1034_v28 = vsel %vm628_vm0, %v1033_v2, %v709_v29  ;;  %v1036_v57 = vsel %vm628_vm0, %v1035_v49, %v710_v54  ;;  %v1038_v27 = vsel %vm628_vm0, %v1037_v36, %v711_v9  ;;  %v1040_v48 = vsel %vm628_vm0, %v1039_v63, %v712_v31  ;;  %v913_v19 = vld [vmem:[#allocation3 + $0x560] sm:$0xff]  ;;  %v896_v2 = vld [vmem:[#allocation3 + $0x4d8] sm:$0xff] }
 0x109   :  { %1097 = vmatmul.f32.vlgmr.msra.gmra.mxu0 %v1034_v28  ;;  %1117 = vmatmul.f32.vlgmr.msra.gmra.mxu1 %v1036_v57  ;;  %v737_v16 = vmul.f32 %v2128_v37, %v2066_v62  ;;  %v1043_v18 = vrot.slane %v730_v61, 7  ;;  %v1045_v30 = vrot.slane %v731_v46, 7  ;;  %v738_v1 = vmul.f32 %v2128_v37, %v2080_v21  ;;  %v928_v63 = vld [vmem:[#allocation3 + $0x5d8] sm:$0xff]  ;;  %v879_v57 = vld [vmem:[#allocation3 + $0x450] sm:$0xff]  ;;  %v893_v61 = vld [vmem:[#allocation3 + $0x4c0] sm:$0xff] }
 0x10a   :  { %1137 = vmatmul.f32.vlgmr.msra.gmra.mxu2 %v1038_v27  ;;  %1157 = vmatmul.f32.vlgmr.msra.gmra.mxu3 %v1040_v48  ;;  %v1047_v34 = vrot.slane %v732_v47, 7  ;;  %v721_v62 = vmul.f32 %v2125_v44, %v2061_v53  ;;  %v739_v20 = vmul.f32 %v2128_v37, %v2091_v26  ;;  %v1042_v4 = vsel %vm628_vm0, %v1041_v25, %v713_v23  ;;  %v895_v27 = vld [vmem:[#allocation3 + $0x4d0] sm:$0xff]  ;;  %v909_v46 = vld [vmem:[#allocation3 + $0x540] sm:$0xff]  ;;  %v892_v47 = vld [vmem:[#allocation3 + $0x4b8] sm:$0xff] }
 0x10b   :  { %1241 = vmatpush.msra.mxu0 %v884_v42  ;;  %1261 = vmatpush.msra.mxu1 %v900_v10  ;;  %v1057_v14 = vrot.slane %v737_v16, 7  ;;  %v716_v58 = vmul.f32 %v2125_v44, %v1995_v32  ;;  %v722_v21 = vmul.f32 %v2125_v44, %v2075_v39  ;;  %v1059_v29 = vrot.slane %v738_v1, 7  ;;  %v880_v39 = vld [vmem:[#allocation3 + $0x458] sm:$0xff]  ;;  %v911_v48 = vld [vmem:[#allocation3 + $0x550] sm:$0xff]  ;;  %v890_v16 = vld [vmem:[#allocation3 + $0x4a8] sm:$0xff] }
 0x10c   :  { %1281 = vmatpush.msra.mxu2 %v916_v3  ;;  %1301 = vmatpush.msra.mxu3 %v932_v24  ;;  %v723_v53 = vmul.f32 %v2125_v44, %v2086_v0  ;;  %v1061_v26 = vrot.slane %v739_v20, 7  ;;  %v740_v9 = vmul.f32 %v2128_v37, %v2102_v50  ;;  %v1044_v32 = vsel %vm628_vm0, %v1043_v18, %v714_v60  ;;  %v912_v0 = vld [vmem:[#allocation3 + $0x558] sm:$0xff]  ;;  %v927_v42 = vld [vmem:[#allocation3 + $0x5d0] sm:$0xff]  ;;  %v878_v3 = vld [vmem:[#allocation3 + $0x448] sm:$0xff] }
 0x10d   :  { %1242 = vmatpush.msra.mxu0 %v883_v52  ;;  %1262 = vmatpush.msra.mxu1 %v899_v43  ;;  %v2178_v54 = vsel %vm628_vm0, %v1057_v14, %v721_v62  ;;  %v1046_v31 = vsel %vm628_vm0, %v1045_v30, %v715_v35  ;;  %v2187_v49 = vsel %vm628_vm0, %v1059_v29, %v722_v21  ;;  %v894_v24 = vld [vmem:[#allocation3 + $0x4c8] sm:$0xff]  ;;  %v877_v43 = vld [vmem:[#allocation3 + $0x440] sm:$0xff]  ;;  %v875_v25 = vld [vmem:[#allocation3 + $0x430] sm:$0xff] }
 0x10e   :  { %1282 = vmatpush.msra.mxu2 %v915_v33  ;;  %1302 = vmatpush.msra.mxu3 %v931_v38  ;;  %v1048_v36 = vsel %vm628_vm0, %v1047_v34, %v716_v58  ;;  %v2191_v6 = vsel %vm628_vm0, %v1061_v26, %v723_v53  ;;  %v724_v50 = vmul.f32 %v2125_v44, %v2097_v17  ;;  %v1063_v28 = vrot.slane %v740_v9, 7  ;;  %v910_v52 = vld [vmem:[#allocation3 + $0x548] sm:$0xff]  ;;  %v925_v33 = vld [vmem:[#allocation3 + $0x5c0] sm:$0xff]  ;;  %v876_v38 = vld [vmem:[#allocation3 + $0x438] sm:$0xff] }
 0x10f   :  { %1243 = vmatpush.msra.mxu0 %v882_v5  ;;  %1263 = vmatpush.msra.mxu1 %v898_v11  ;;  %v926_v17 = vld [vmem:[#allocation3 + $0x5c8] sm:$0xff]  ;;  %v908_v5 = vld [vmem:[#allocation3 + $0x538] sm:$0xff]  ;;  %v923_v23 = vld [vmem:[#allocation3 + $0x5b0] sm:$0xff]  ;;  %v734_v58 = vmul.f32 %v2128_v37, %v2024_v7  ;;  %v735_v53 = vmul.f32 %v2128_v37, %v2038_v15  ;;  %v736_v26 = vmul.f32 %v2128_v37, %v2052_v41 }
 0x110   :  { %1283 = vmatpush.msra.mxu2 %v914_v13  ;;  %1303 = vmatpush.msra.mxu3 %v930_v56  ;;  %v2196_v10 = vsel %vm628_vm0, %v1063_v28, %v724_v50  ;;  %v924_v11 = vld [vmem:[#allocation3 + $0x5b8] sm:$0xff]  ;;  %v891_v13 = vld [vmem:[#allocation3 + $0x4b0] sm:$0xff]  ;;  %v874_v60 = vld [vmem:[#allocation3 + $0x428] sm:$0xff]  ;;  %v718_v50 = vmul.f32 %v2125_v44, %v2019_v55  ;;  %v719_v28 = vmul.f32 %v2125_v44, %v2033_v8 }
 0x111   :  { %1244 = vmatpush.msra.mxu0 %v881_v45  ;;  %1264 = vmatpush.msra.mxu1 %v897_v12  ;;  %v907_v56 = vld [vmem:[#allocation3 + $0x530] sm:$0xff]  ;;  %v906_v45 = vld [vmem:[#allocation3 + $0x528] sm:$0xff]  ;;  %v873_v18 = vld [vmem:[#allocation3 + $0x420] sm:$0xff]  ;;  %v1055_v41 = vrot.slane %v736_v26, 7 }
 0x112   :  { %1284 = vmatpush.msra.mxu2 %v913_v19  ;;  %1304 = vmatpush.msra.mxu3 %v929_v59  ;;  %v922_v12 = vld [vmem:[#allocation3 + $0x5a8] sm:$0xff]  ;;  %v889_v35 = vld [vmem:[#allocation3 + $0x4a0] sm:$0xff]  ;;  %v872_v19 = vld [vmem:[#allocation3 + $0x418] sm:$0xff] }
 0x113   :  { %1177 = vmatmul.f32.vlgmr.msrb.gmra.mxu0 %v1042_v4  ;;  %1197 = vmatmul.f32.vlgmr.msrb.gmra.mxu1 %v1044_v32  ;;  %v905_v30 = vld [vmem:[#allocation3 + $0x520] sm:$0xff]  ;;  %v888_v59 = vld [vmem:[#allocation3 + $0x498] sm:$0xff]  ;;  %v871_v14 = vld [vmem:[#allocation3 + $0x410] sm:$0xff]  ;;  %v733_v4 = vmul.f32 %v2128_v37, %v2012_v40  ;;  %v717_v37 = vmul.f32 %v2125_v44, %v1998_v51 }
 0x114   :  { %1217 = vmatmul.f32.vlgmr.msrb.gmra.mxu2 %v1046_v31  ;;  %1237 = vmatmul.f32.vlgmr.msrb.gmra.mxu3 %v1048_v36  ;;  %v921_v1 = vld [vmem:[#allocation3 + $0x5a0] sm:$0xff]  ;;  %v904_v34 = vld [vmem:[#allocation3 + $0x518] sm:$0xff]  ;;  %v887_v20 = vld [vmem:[#allocation3 + $0x490] sm:$0xff]  ;;  %v1051_v36 = vrot.slane %v734_v58, 7 }
 0x115   :  { %1245 = vmatpush.msra.mxu0 %v880_v39  ;;  %1265 = vmatpush.msra.mxu1 %v896_v2  ;;  %v920_v62 = vld [vmem:[#allocation3 + $0x598] sm:$0xff]  ;;  %v903_v21 = vld [vmem:[#allocation3 + $0x510] sm:$0xff]  ;;  %v870_v9 = vld [vmem:[#allocation3 + $0x408] sm:$0xff]  ;;  %v1049_v2 = vrot.slane %v733_v4, 7 }
 0x116   :  { %1285 = vmatpush.msra.mxu2 %v912_v0  ;;  %1305 = vmatpush.msra.mxu3 %v928_v63  ;;  %v919_v29 = vld [vmem:[#allocation3 + $0x590] sm:$0xff]  ;;  %v886_v32 = vld [vmem:[#allocation3 + $0x488] sm:$0xff]  ;;  %v869_v7 = vld [vmem:[#allocation3 + $0x400] sm:$0xff]  ;;  %v1053_v63 = vrot.slane %v735_v53, 7 }
 0x117   :  { %1246 = vmatpush.msra.mxu0 %v879_v57  ;;  %1266 = vmatpush.msra.mxu1 %v895_v27  ;;  %v902_v40 = vld [vmem:[#allocation3 + $0x508] sm:$0xff]  ;;  %v885_v39 = vld [vmem:[#allocation3 + $0x480] sm:$0xff]  ;;  %v720_v57 = vmul.f32 %v2125_v44, %v2047_v22  ;;  %v1050_v27 = vsel %vm628_vm0, %v1049_v2, %v717_v37  ;;  %v947_v8 = vld [vmem:[#allocation3 + $0x670] sm:$0xff] }
 0x118   :  { %1286 = vmatpush.msra.mxu2 %v911_v48  ;;  %1306 = vmatpush.msra.mxu3 %v927_v42  ;;  %v918_v31 = vld [vmem:[#allocation3 + $0x588] sm:$0xff]  ;;  %v901_v15 = vld [vmem:[#allocation3 + $0x500] sm:$0xff]  ;;  %v1052_v48 = vsel %vm628_vm0, %v1051_v36, %v718_v50  ;;  %v948_v42 = vld [vmem:[#allocation3 + $0x678] sm:$0xff]  ;;  %v1054_v51 = vsel %vm628_vm0, %v1053_v63, %v719_v28 }
 0x119   :  { %1247 = vmatpush.msra.mxu0 %v878_v3  ;;  %1267 = vmatpush.msra.mxu1 %v894_v24  ;;  %v917_v0 = vld [vmem:[#allocation3 + $0x580] sm:$0xff]  ;;  %v964_v3 = vld [vmem:[#allocation3 + $0x6f8] sm:$0xff]  ;;  %v1056_v55 = vsel %vm628_vm0, %v1055_v41, %v720_v57  ;;  %v963_v22 = vld [vmem:[#allocation3 + $0x6f0] sm:$0xff] }
 0x11a   :  { %1287 = vmatpush.msra.mxu2 %v910_v52  ;;  %1307 = vmatpush.msra.mxu3 %v926_v17  ;;  %v980_v24 = vld [vmem:[#allocation3 + $0x778] sm:$0xff]  ;;  %v979_v44 = vld [vmem:[#allocation3 + $0x770] sm:$0xff]  ;;  %v969_v2 = vld [vmem:[#allocation3 + $0x720] sm:$0xff] }
 0x11b   :  { %1248 = vmatpush.msra.mxu0 %v877_v43  ;;  %1268 = vmatpush.msra.mxu1 %v893_v61  ;;  %v996_v52 = vld [vmem:[#allocation3 + $0x7f8] sm:$0xff]  ;;  %v995_v17 = vld [vmem:[#allocation3 + $0x7f0] sm:$0xff]  ;;  %v946_v43 = vld [vmem:[#allocation3 + $0x668] sm:$0xff] }
 0x11c   :  { %1288 = vmatpush.msra.mxu2 %v909_v46  ;;  %1308 = vmatpush.msra.mxu3 %v925_v33  ;;  %v962_v61 = vld [vmem:[#allocation3 + $0x6e8] sm:$0xff]  ;;  %v972_v4 = vld [vmem:[#allocation3 + $0x738] sm:$0xff]  ;;  %v971_v53 = vld [vmem:[#allocation3 + $0x730] sm:$0xff] }
 0x11d   :  { %1249 = vmatpush.msra.mxu0 %v876_v38  ;;  %1269 = vmatpush.msra.mxu1 %v892_v47  ;;  %v978_v46 = vld [vmem:[#allocation3 + $0x768] sm:$0xff]  ;;  %v945_v38 = vld [vmem:[#allocation3 + $0x660] sm:$0xff]  ;;  %v988_v58 = vld [vmem:[#allocation3 + $0x7b8] sm:$0xff] }
 0x11e   :  { %1289 = vmatpush.msra.mxu2 %v908_v5  ;;  %1309 = vmatpush.msra.mxu3 %v924_v11  ;;  %v994_v33 = vld [vmem:[#allocation3 + $0x7e8] sm:$0xff]  ;;  %v961_v47 = vld [vmem:[#allocation3 + $0x6e0] sm:$0xff]  ;;  %v987_v26 = vld [vmem:[#allocation3 + $0x7b0] sm:$0xff] }
 0x11f   :  { %1250 = vmatpush.msra.mxu0 %v875_v25  ;;  %1270 = vmatpush.msra.mxu1 %v891_v13  ;;  %v977_v5 = vld [vmem:[#allocation3 + $0x760] sm:$0xff]  ;;  %v944_v25 = vld [vmem:[#allocation3 + $0x658] sm:$0xff]  ;;  %v935_v37 = vld [vmem:[#allocation3 + $0x610] sm:$0xff] }
 0x120   :  { %1290 = vmatpush.msra.mxu2 %v907_v56  ;;  %1310 = vmatpush.msra.mxu3 %v923_v23  ;;  %v993_v11 = vld [vmem:[#allocation3 + $0x7e0] sm:$0xff]  ;;  %v960_v13 = vld [vmem:[#allocation3 + $0x6d8] sm:$0xff]  ;;  %v951_v50 = vld [vmem:[#allocation3 + $0x690] sm:$0xff] }
 0x121   :  { %1251 = vmatpush.msra.mxu0 %v874_v60  ;;  %1271 = vmatpush.msra.mxu1 %v890_v16  ;;  %v976_v56 = vld [vmem:[#allocation3 + $0x758] sm:$0xff]  ;;  %v943_v60 = vld [vmem:[#allocation3 + $0x650] sm:$0xff]  ;;  %v985_v36 = vld [vmem:[#allocation3 + $0x7a0] sm:$0xff] }
 0x122   :  { %1291 = vmatpush.msra.mxu2 %v906_v45  ;;  %1311 = vmatpush.msra.mxu3 %v922_v12  ;;  %v992_v23 = vld [vmem:[#allocation3 + $0x7d8] sm:$0xff]  ;;  %v959_v16 = vld [vmem:[#allocation3 + $0x6d0] sm:$0xff] }
 0x123   :  { %1252 = vmatpush.msra.mxu0 %v873_v18  ;;  %1272 = vmatpush.msra.mxu1 %v889_v35  ;;  %v975_v45 = vld [vmem:[#allocation3 + $0x750] sm:$0xff]  ;;  %v942_v18 = vld [vmem:[#allocation3 + $0x648] sm:$0xff]  ;;  %v968_v63 = vld [vmem:[#allocation3 + $0x718] sm:$0xff] }
 0x124   :  { %1292 = vmatpush.msra.mxu2 %v905_v30  ;;  %1312 = vmatpush.msra.mxu3 %v921_v1  ;;  %v991_v12 = vld [vmem:[#allocation3 + $0x7d0] sm:$0xff]  ;;  %v958_v35 = vld [vmem:[#allocation3 + $0x6c8] sm:$0xff]  ;;  %v984_v41 = vld [vmem:[#allocation3 + $0x798] sm:$0xff] }
 0x125   :  { %1253 = vmatpush.msra.mxu0 %v872_v19  ;;  %1273 = vmatpush.msra.mxu1 %v888_v59  ;;  %v974_v30 = vld [vmem:[#allocation3 + $0x748] sm:$0xff]  ;;  %v941_v19 = vld [vmem:[#allocation3 + $0x640] sm:$0xff]  ;;  %v967_v28 = vld [vmem:[#allocation3 + $0x710] sm:$0xff] }
 0x126   :  { %1293 = vmatpush.msra.mxu2 %v904_v34  ;;  %1313 = vmatpush.msra.mxu3 %v920_v62  ;;  %v990_v1 = vld [vmem:[#allocation3 + $0x7c8] sm:$0xff]  ;;  %v957_v59 = vld [vmem:[#allocation3 + $0x6c0] sm:$0xff]  ;;  %v983_v57 = vld [vmem:[#allocation3 + $0x790] sm:$0xff] }
 0x127   :  { %1254 = vmatpush.msra.mxu0 %v871_v14  ;;  %1274 = vmatpush.msra.mxu1 %v887_v20  ;;  %v973_v34 = vld [vmem:[#allocation3 + $0x740] sm:$0xff]  ;;  %v940_v14 = vld [vmem:[#allocation3 + $0x638] sm:$0xff] }
 0x128   :  { %1294 = vmatpush.msra.mxu2 %v903_v21  ;;  %1314 = vmatpush.msra.mxu3 %v919_v29  ;;  %v989_v62 = vld [vmem:[#allocation3 + $0x7c0] sm:$0xff]  ;;  %v956_v20 = vld [vmem:[#allocation3 + $0x6b8] sm:$0xff]  ;;  %v939_v21 = vld [vmem:[#allocation3 + $0x630] sm:$0xff] }
 0x129   :  { %1255 = vmatpush.msra.mxu0 %v870_v9  ;;  %1275 = vmatpush.msra.mxu1 %v886_v32  ;;  %v955_v29 = vld [vmem:[#allocation3 + $0x6b0] sm:$0xff]  ;;  %v938_v9 = vld [vmem:[#allocation3 + $0x628] sm:$0xff] }
 0x12a   :  { %1295 = vmatpush.msra.mxu2 %v902_v40  ;;  %1315 = vmatpush.msra.mxu3 %v918_v31  ;;  %v954_v32 = vld [vmem:[#allocation3 + $0x6a8] sm:$0xff] }
 0x12b   :  { %1256 = vmatpush.msra.mxu0 %v869_v7  ;;  %1276 = vmatpush.msra.mxu1 %v885_v39  ;;  %v970_v40 = vld [vmem:[#allocation3 + $0x728] sm:$0xff]  ;;  %v937_v7 = vld [vmem:[#allocation3 + $0x620] sm:$0xff] }
 0x12c   :  { %1296 = vmatpush.msra.mxu2 %v901_v15  ;;  %1316 = vmatpush.msra.mxu3 %v917_v0  ;;  %v986_v31 = vld [vmem:[#allocation3 + $0x7a8] sm:$0xff]  ;;  %v953_v39 = vld [vmem:[#allocation3 + $0x6a0] sm:$0xff]  ;;  %v936_v15 = vld [vmem:[#allocation3 + $0x618] sm:$0xff] }
 0x12d   :  { %1257 = vmatmul.f32.vlgmr.msra.gmra.mxu0 %v1050_v27  ;;  %1277 = vmatmul.f32.vlgmr.msra.gmra.mxu1 %v1052_v48  ;;  %v952_v0 = vld [vmem:[#allocation3 + $0x698] sm:$0xff]  ;;  %v934_v27 = vld [vmem:[#allocation3 + $0x608] sm:$0xff] }
 0x12e   :  { %1297 = vmatmul.f32.vlgmr.msra.gmra.mxu2 %v1054_v51  ;;  %1317 = vmatmul.f32.vlgmr.msra.gmra.mxu3 %v1056_v55  ;;  %v950_v48 = vld [vmem:[#allocation3 + $0x688] sm:$0xff]  ;;  %v933_v51 = vld [vmem:[#allocation3 + $0x600] sm:$0xff] }
 0x12f   :  { %1321 = vmatpush.msrb.mxu0 %v948_v42  ;;  %1341 = vmatpush.msrb.mxu1 %v964_v3  ;;  %v966_v42 = vld [vmem:[#allocation3 + $0x708] sm:$0xff]  ;;  %v949_v55 = vld [vmem:[#allocation3 + $0x680] sm:$0xff] }
 0x130   :  { %1361 = vmatpush.msrb.mxu2 %v980_v24  ;;  %1381 = vmatpush.msrb.mxu3 %v996_v52  ;;  %v982_v3 = vld [vmem:[#allocation3 + $0x788] sm:$0xff]  ;;  %v965_v24 = vld [vmem:[#allocation3 + $0x700] sm:$0xff] }
 0x131   :  { %1322 = vmatpush.msrb.mxu0 %v947_v8  ;;  %1342 = vmatpush.msrb.mxu1 %v963_v22  ;;  %v981_v52 = vld [vmem:[#allocation3 + $0x780] sm:$0xff] }
 0x132   :  { %1362 = vmatpush.msrb.mxu2 %v979_v44  ;;  %1382 = vmatpush.msrb.mxu3 %v995_v17  ;;  %v1425_v8 = vld [vmem:[#allocation6] ss:$0 sm:$0xff] }
 0x133   :  { %1323 = vmatpush.msrb.mxu0 %v946_v43  ;;  %1343 = vmatpush.msrb.mxu1 %v962_v61 }
 0x134   :  { %1363 = vmatpush.msrb.mxu2 %v978_v46  ;;  %1383 = vmatpush.msrb.mxu3 %v994_v33 }
 0x135   :  { %1324 = vmatpush.msrb.mxu0 %v945_v38  ;;  %1344 = vmatpush.msrb.mxu1 %v961_v47 }
 0x136   :  { %1364 = vmatpush.msrb.mxu2 %v977_v5  ;;  %1384 = vmatpush.msrb.mxu3 %v993_v11 }
 0x137   :  { %1325 = vmatpush.msrb.mxu0 %v944_v25  ;;  %1345 = vmatpush.msrb.mxu1 %v960_v13 }
 0x138   :  { %1365 = vmatpush.msrb.mxu2 %v976_v56  ;;  %1385 = vmatpush.msrb.mxu3 %v992_v23 }
 0x139   :  { %1326 = vmatpush.msrb.mxu0 %v943_v60  ;;  %1346 = vmatpush.msrb.mxu1 %v959_v16 }
 0x13a   :  { %1366 = vmatpush.msrb.mxu2 %v975_v45  ;;  %1386 = vmatpush.msrb.mxu3 %v991_v12 }
 0x13b   :  { %1327 = vmatpush.msrb.mxu0 %v942_v18  ;;  %1347 = vmatpush.msrb.mxu1 %v958_v35 }
 0x13c   :  { %1367 = vmatpush.msrb.mxu2 %v974_v30  ;;  %1387 = vmatpush.msrb.mxu3 %v990_v1 }
 0x13d   :  { %1328 = vmatpush.msrb.mxu0 %v941_v19  ;;  %1348 = vmatpush.msrb.mxu1 %v957_v59 }
 0x13e   :  { %1368 = vmatpush.msrb.mxu2 %v973_v34  ;;  %1388 = vmatpush.msrb.mxu3 %v989_v62 }
 0x13f   :  { %1329 = vmatpush.msrb.mxu0 %v940_v14  ;;  %1349 = vmatpush.msrb.mxu1 %v956_v20 }
 0x140   :  { %1369 = vmatpush.msrb.mxu2 %v972_v4  ;;  %1389 = vmatpush.msrb.mxu3 %v988_v58 }
 0x141   :  { %1330 = vmatpush.msrb.mxu0 %v939_v21  ;;  %1350 = vmatpush.msrb.mxu1 %v955_v29 }
 0x142   :  { %1370 = vmatpush.msrb.mxu2 %v971_v53  ;;  %1390 = vmatpush.msrb.mxu3 %v987_v26 }
 0x143   :  { %1331 = vmatpush.msrb.mxu0 %v938_v9  ;;  %1351 = vmatpush.msrb.mxu1 %v954_v32 }
 0x144   :  { %1371 = vmatpush.msrb.mxu2 %v970_v40  ;;  %1391 = vmatpush.msrb.mxu3 %v986_v31 }
 0x145   :  { %1332 = vmatpush.msrb.mxu0 %v937_v7  ;;  %1352 = vmatpush.msrb.mxu1 %v953_v39 }
 0x146   :  { %1372 = vmatpush.msrb.mxu2 %v969_v2  ;;  %1392 = vmatpush.msrb.mxu3 %v985_v36 }
 0x147   :  { %1333 = vmatpush.msrb.mxu0 %v936_v15  ;;  %1353 = vmatpush.msrb.mxu1 %v952_v0 }
 0x148   :  { %1373 = vmatpush.msrb.mxu2 %v968_v63  ;;  %1393 = vmatpush.msrb.mxu3 %v984_v41 }
 0x149   :  { %1334 = vmatpush.msrb.mxu0 %v935_v37  ;;  %1354 = vmatpush.msrb.mxu1 %v951_v50 }
 0x14a   :  { %1374 = vmatpush.msrb.mxu2 %v967_v28  ;;  %1394 = vmatpush.msrb.mxu3 %v983_v57 }
 0x14b   :  { %1335 = vmatpush.msrb.mxu0 %v934_v27  ;;  %1355 = vmatpush.msrb.mxu1 %v950_v48 }
 0x14c   :  { %1375 = vmatpush.msrb.mxu2 %v966_v42  ;;  %1395 = vmatpush.msrb.mxu3 %v982_v3 }
 0x14d   :  { %1336 = vmatpush.msrb.mxu0 %v933_v51  ;;  %1356 = vmatpush.msrb.mxu1 %v949_v55 }
 0x14e   :  { %1376 = vmatpush.msrb.mxu2 %v965_v24  ;;  %1396 = vmatpush.msrb.mxu3 %v981_v52 }
 0x14f   :  { %1337 = vmatmul.f32.vlgmr.msrb.gmra.mxu0 %v2178_v54  ;;  %1357 = vmatmul.f32.vlgmr.msrb.gmra.mxu1 %v2187_v49 }
 0x150   :  { %1377 = vmatmul.f32.vlgmr.msrb.gmra.mxu2 %v2191_v6  ;;  %1397 = vmatmul.f32.vlgmr.msrb.gmra.mxu3 %v2196_v10 }
 0x186   :  { %v1098_v22 = vpop.f32.mrf.mxu0  ;;  %v1118_v17 = vpop.f32.mrf.mxu1 }
 0x187   :  { %v1099_v44 = vadd.f32 %v1425_v8, %v1098_v22 }
 0x189   :  { %v1119_v61 = vadd.f32 %v1118_v17, %v1099_v44 }
 0x18d   :  { %v1138_v43 = vpop.f32.mrf.mxu2  ;;  %v1158_v33 = vpop.f32.mrf.mxu3 }
 0x18e   :  { %v1139_v46 = vadd.f32 %v1138_v43, %v1119_v61 }
 0x190   :  { %v1159_v38 = vadd.f32 %v1158_v33, %v1139_v46  ;;  %v1178_v47 = vpop.f32.mrf.mxu0  ;;  %v1198_v11 = vpop.f32.mrf.mxu1 }
 0x192   :  { %v1179_v5 = vadd.f32 %v1178_v47, %v1159_v38 }
 0x194   :  { %v1199_v25 = vadd.f32 %v1198_v11, %v1179_v5 }
 0x197   :  { %v1218_v54 = vpop.f32.mrf.mxu2  ;;  %v1238_v49 = vpop.f32.mrf.mxu3 }
 0x198   :  { %v1219_v13 = vadd.f32 %v1218_v54, %v1199_v25 }
 0x19a   :  { %v1239_v6 = vadd.f32 %v1238_v49, %v1219_v13 }
 0x1aa   :  { %v1258_v56 = vpop.f32.mrf.mxu0  ;;  %v1278_v10 = vpop.f32.mrf.mxu1 }
 0x1ab   :  { %v1259_v23 = vadd.f32 %v1258_v56, %v1239_v6 }
 0x1ad   :  { %v1279_v16 = vadd.f32 %v1278_v10, %v1259_v23 }
 0x1b1   :  { %v1298_v60 = vpop.f32.mrf.mxu2  ;;  %v1318_v12 = vpop.f32.mrf.mxu3 }
 0x1b2   :  { %v1299_v45 = vadd.f32 %v1298_v60, %v1279_v16 }
 0x1b4   :  { %v1319_v18 = vadd.f32 %v1318_v12, %v1299_v45 }
 0x1cc   :  { %v1338_v35 = vpop.f32.mrf.mxu0  ;;  %v1358_v1 = vpop.f32.mrf.mxu1 }
 0x1cd   :  { %v1339_v30 = vadd.f32 %v1338_v35, %v1319_v18 }
 0x1cf   :  { %v1359_v19 = vadd.f32 %v1358_v1, %v1339_v30 }
 0x1d3   :  { %v1378_v59 = vpop.f32.mrf.mxu2  ;;  %v1398_v62 = vpop.f32.mrf.mxu3 }
 0x1d4   :  { %v1379_v34 = vadd.f32 %v1378_v59, %v1359_v19 }
 0x1d6   :  { %v1399_v14 = vadd.f32 %v1398_v62, %v1379_v34 }
 0x1d8   :  { %1401 = vst [vmem:[#allocation8] sm:$0x3] %v1399_v14 }
 0x1d9   :  { %1412 = dma.vmem_to_hbm [thread:$0]  %s1408_s28, 32, %s1410_s4, [#allocation5]  }
 0x1da   :  { %1504 = dma.done.wait [#allocation5], 32  }
 0x1db   :  { %1505 = vsyncadd [#allocation5], 4294967264 }
 0x1dc   :  { %1417 = vsyncpa [#allocation4], 1 }
 0x1dd   :  { %1418 = vsyncpa [#allocation7], 1 }
 0x1de   :  { %1419 = vsyncpa [#allocation5], 1 }

// kernel: encoder_cnn_forward.4
= control target key start
LH: loop header
LB: loop body
LE: loop exit
PB: predicated region body
PF: predicated region fallthrough
CT: control target
= control target key end

     0   :  { %8 = vsyncpa [#allocation4], 0  ;;  %s6169_s0 = inlined_call_operand.vmem [shape: bf16[32,576], index: 0, kind: input, shape index: {}]   ;;  %s6170_s1 = inlined_call_operand.hbm [shape: bf16[576,2048], index: 1, kind: input, shape index: {}]   ;;  %s6171_s2 = inlined_call_operand.hbm [shape: f32[1,2048], index: 2, kind: input, shape index: {}]   ;;  %s6172_s3 = inlined_call_operand.vmem [shape: bf16[32,2048], index: 3, kind: output, shape index: {}]  }
   0x1   :  { %10 = vsyncpa [#allocation4 + $0x1], 0 }
   0x2   :  { %11 = vsyncpa [#allocation6], 0 }
   0x3   :  { %13 = vsyncpa [#allocation6 + $0x1], 0  ;;  %s5050_s12 = smov 0   ;;  %s5052_s13 = smov 0  }
   0x4   :  { %s5054_s14 = smov 0   ;;  %s5056_s15 = smov 0  }
   0x5   :  { %s5058_s16 = smov 0   ;;  %s5060_s17 = smov 0  }
   0x6 LB: > { %s3320_s18 = sadd.s32 4294967295, %s5025_s17   ;;  %s34_s19 = sadd.s32 1, %s5021_s16  ;;  %s5025_s17 = sphi %s5060_s17, %s19_s17   ;;  %s5021_s16 = sphi %s5058_s16, %s6181_s16   ;;  %s5017_s15 = sphi %s5056_s15, %s6180_s15   ;;  %s5013_s14 = sphi %s5054_s14, %s6179_s14   ;;  %s5009_s13 = sphi %s5052_s13, %s6178_s13   ;;  %s5005_s12 = sphi %s5050_s12, %s6177_s12  }
   0x7   : > { %p36_p0 = scmp.ge.s32.totalorder %s34_s19, 2  ;;  %s75_s20 = sadd.s32 1, %s5013_s14 }
   0x8   : > { %p82_p1 = scmp.ne.s32.totalorder %s5013_s14, %s5009_s13  ;;  %p83_p2 = scmp.eq.s32.totalorder %s5025_s17, 0 }
   0x9   : > { %s6183_s19 = smov (%p36_p0, %s34_s19), 0  ;;  %p88_p4 = scmp.ne.s32.totalorder %s5009_s13, %s5005_s12 }
   0xa   : > { %p5086_p3 = por %p83_p2, %p82_p1  ;;  %s71_s22 = ssub.s32 %s5021_s16, %s6183_s19 }
   0xb   : > { %p89_p5 = scmp.eq.s32.totalorder %s3320_s18, 0  ;;  %p73_p6 = scmp.eq.s32.totalorder %s71_s22, 0 }
   0xc   : > { %p140_p7 = scmp.eq.s32.totalorder %s3320_s18, 1  ;;  %p4858_p10 = scmp.lt.s32.totalorder %s5025_s17, 2 }
   0xd   : > { %p5093_p8 = por %p89_p5, %p88_p4  ;;  %s5106_s26 = sand.u32 1, %s5013_s14  }
   0xe   : > { %s5098_s24 = scalar_select %p73_p6, %s5013_s14, %s75_s20  }
   0xf   : > { %p5100_p9 = por %p140_p7, %p82_p1  ;;  %s4545_s27 = sshll.u32 %s5021_s16, 5 }
  0x10   : > { %s4845_s28 = smul.u32 2304, %s5106_s26  ;;  %s193_s4 = scalar_lea.hbm %s6170_s1, %s4545_s27 }
  0x11   : > { %p5115_p11 = pnand %p4858_p10, %p5086_p3  ;;  %s194_s6 = sshll.u32 %s193_s4, 4  ;;  %s195_s6 = int_to_ptr.hbm [resolvable:$true] %s194_s6 }
  0x12   : > { %s185_s7 = scalar_lea.vmem [#allocation3], %s4845_s28  ;;  %p3329_p12 = scmp.ge.s32.totalorder %s5025_s17, 1 }
  0x13   : > { %s196_s8 = sshll.u32 %s185_s7, 4  ;;  %s182_s9 = scalar_lea.sflag [#allocation4], %s5106_s26  ;;  %s197_s8 = int_to_ptr.vmem [resolvable:$true] %s196_s8 }
  0x14   : > { %s5027_s10 = smov 1024   ;;  %s5028_s11 = smov 512  }
  0x15   : > { %s5029_s12 = smov 32   ;;  %p223_p13 = scmp.lt.s32.totalorder %s5025_s17, 3 }
  0x16   : > { %4854 = dma.hbm_to_vmem [thread:$0]  (!%p5115_p11), %s195_s6, 36864, %s197_s8, %s182_s9, %s5027_s10, %s5028_s11, %s5029_s12  }
  0x17   : > { %s3327_s18 = sshll.u32 %s5106_s26, 3  ;;  %s3328_s20 = sshll.u32 %s5021_s16, 3 }
  0x18   : > { %p224_p0 = pnand %p3329_p12, %p223_p13  ;;  %s214_s27 = scalar_lea.hbm %s6171_s2, %s3328_s20 }
  0x19   : > { %s210_s28 = scalar_lea.vmem [#allocation5], %s3327_s18  ;;  %s216_s30 = sshll.u32 %s214_s27, 4  ;;  %s217_s30 = int_to_ptr.hbm [resolvable:$true] %s216_s30 }
  0x1a   : > { %s218_s29 = sshll.u32 %s210_s28, 4  ;;  %s207_s4 = scalar_lea.sflag [#allocation6], %s5106_s26  ;;  %s219_s29 = int_to_ptr.vmem [resolvable:$true] %s218_s29 }
  0x1b   : > { %4857 = dma.hbm_to_vmem [thread:$0]  (!%p5115_p11), %s217_s30, 128, %s219_s29, %s207_s4  }
  0x1c   : > { %227 = sbr.rel (%p224_p0) target bundleno = 573 (0x23d), region = 32  ;;  %s5133_s6 = sand.u32 (!%p224_p0), 1, %s5009_s13  }
  0x1d   : > { %s4846_s7 = smul.u32 (!%p224_p0), 2304, %s5133_s6  ;;  %s230_s8 = scalar_lea.sflag (!%p224_p0), [#allocation4], %s5133_s6 }
  0x1f   : > { %s5137_s9 = scalar_lea.vmem (!%p224_p0), [#allocation3], %s4846_s7 }
  0x21   : > { %4996 = dma.done.wait (%p5093_p8), %s230_s8, 36864  }
  0x22   : > { %4998 = vsyncadd (%p5093_p8), %s230_s8, 4294930432  ;;  %s3330_s26 = sshll.u32 %s5133_s6, 3  ;;  %s240_s5 = scalar_lea.sflag [#allocation6], %s5133_s6 }
  0x23   : > { %s5145_s10 = scalar_lea.vmem [#allocation5], %s3330_s26 }
  0x24   : > { %5000 = dma.done.wait (%p5093_p8), %s240_s5, 128  }
  0x25   : > { %5002 = vsyncadd (%p5093_p8), %s240_s5, 4294967168  ;;  %v3598_v0 = vld [vmem:[%s5137_s9 + $0x1c0] sm:$0xf]  ;;  %vm2157_vm0 = vcmask 523264   ;;  %s3331_s28 = sshll.u32 %s5133_s6, 7  ;;  %s4844_s6 = sshll.u32 (%p5100_p9), %s5017_s15, 5 }
  0x26   : > { %v4616_v1 = vld [vmem:[%s5137_s9 + $0x1dc] sm:$0xf0]  ;;  %s5874_s29 = scalar_lea.vmem [#allocation7], %s3331_s28  ;;  %s3149_s30 = scalar_lea.vmem (%p5100_p9), %s6172_s3, %s4844_s6 }
  0x27   : > { %v3854_v2 = vld [vmem:[%s5137_s9 + $0x3c0] sm:$0xf]  ;;  %v3599_v3 = vor.u32 %v4616_v1, %v3598_v0 }
  0x28   : > { %v4680_v4 = vld [vmem:[%s5137_s9 + $0x3dc] sm:$0xf0] }
  0x29   : > { %v4110_v5 = vld [vmem:[%s5137_s9 + $0x5c0] sm:$0xf]  ;;  %v3855_v7 = vor.u32 %v4680_v4, %v3854_v2  ;;  %2164 = vmatpush.bf16.msra.mxu0 %v3599_v3 }
  0x2a   : > { %v4744_v6 = vld [vmem:[%s5137_s9 + $0x5dc] sm:$0xf0] }
  0x2b   : > { %v4111_v8 = vor.u32 %v4744_v6, %v4110_v5  ;;  %v4366_v9 = vld [vmem:[%s5137_s9 + $0x7c0] sm:$0xf]  ;;  %2183 = vmatpush.bf16.msra.mxu1 %v3855_v7 }
  0x2c   : > { %v4808_v10 = vld [vmem:[%s5137_s9 + $0x7dc] sm:$0xf0] }
  0x2d   : > { %v3566_v11 = vld [vmem:[%s5137_s9 + $0x180] sm:$0xf]  ;;  %v4367_v12 = vor.u32 %v4808_v10, %v4366_v9  ;;  %2202 = vmatpush.bf16.msra.mxu2 %v4111_v8 }
  0x2e   : > { %v4608_v13 = vld [vmem:[%s5137_s9 + $0x19c] sm:$0xf0] }
  0x2f   : > { %v3822_v14 = vld [vmem:[%s5137_s9 + $0x380] sm:$0xf]  ;;  %v3567_v16 = vor.u32 %v4608_v13, %v3566_v11  ;;  %2221 = vmatpush.bf16.msra.mxu3 %v4367_v12 }
  0x30   : > { %v4672_v15 = vld [vmem:[%s5137_s9 + $0x39c] sm:$0xf0] }
  0x31   : > { %v3823_v17 = vor.u32 %v4672_v15, %v3822_v14  ;;  %v4078_v18 = vld [vmem:[%s5137_s9 + $0x580] sm:$0xf]  ;;  %2165 = vmatpush.bf16.msra.mxu0 %v3567_v16 }
  0x32   : > { %v4736_v19 = vld [vmem:[%s5137_s9 + $0x59c] sm:$0xf0] }
  0x33   : > { %v4334_v20 = vld [vmem:[%s5137_s9 + $0x780] sm:$0xf]  ;;  %v4079_v21 = vor.u32 %v4736_v19, %v4078_v18  ;;  %2184 = vmatpush.bf16.msra.mxu1 %v3823_v17 }
  0x34   : > { %v4800_v22 = vld [vmem:[%s5137_s9 + $0x79c] sm:$0xf0] }
  0x35   : > { %v3534_v23 = vld [vmem:[%s5137_s9 + $0x140] sm:$0xf]  ;;  %v4335_v25 = vor.u32 %v4800_v22, %v4334_v20  ;;  %2203 = vmatpush.bf16.msra.mxu2 %v4079_v21 }
  0x36   : > { %v4600_v24 = vld [vmem:[%s5137_s9 + $0x15c] sm:$0xf0] }
  0x37   : > { %v3790_v26 = vld [vmem:[%s5137_s9 + $0x340] sm:$0xf]  ;;  %v3535_v29 = vor.u32 %v4600_v24, %v3534_v23  ;;  %2222 = vmatpush.bf16.msra.mxu3 %v4335_v25 }
  0x38   : > { %v4664_v27 = vld [vmem:[%s5137_s9 + $0x35c] sm:$0xf0] }
  0x39   : > { %v4046_v28 = vld [vmem:[%s5137_s9 + $0x540] sm:$0xf]  ;;  %v3791_v33 = vor.u32 %v4664_v27, %v3790_v26  ;;  %2166 = vmatpush.bf16.msra.mxu0 %v3535_v29  ;;  %v4548_v29 = vld [vmem:[%s6169_s0 + $0x10] sm:$0xf0] }
  0x3a   : > { %v4728_v30 = vld [vmem:[%s5137_s9 + $0x55c] sm:$0xf0] }
  0x3b   : > { %v4302_v31 = vld [vmem:[%s5137_s9 + $0x740] sm:$0xf]  ;;  %v4047_v34 = vor.u32 %v4728_v30, %v4046_v28  ;;  %2185 = vmatpush.bf16.msra.mxu1 %v3791_v33  ;;  %v4546_v30 = vld [vmem:[%s6169_s0 + $0x4] sm:$0xf] }
  0x3c   : > { %v4792_v32 = vld [vmem:[%s5137_s9 + $0x75c] sm:$0xf0]  ;;  %v3856_v33 = vld [vmem:[%s5137_s9 + $0x3e0] sm:$0xf0] }
  0x3d   : > { %v3502_v35 = vld [vmem:[%s5137_s9 + $0x100] sm:$0xf]  ;;  %v4303_v38 = vor.u32 %v4792_v32, %v4302_v31  ;;  %2204 = vmatpush.bf16.msra.mxu2 %v4047_v34  ;;  %v3336_v31 = vld [vmem:[%s6169_s0 + $0x14] sm:$0xf0]  ;;  %v4676_v32 = vld [vmem:[%s5137_s9 + $0x3c4] sm:$0xf] }
  0x3e   : > { %v4592_v36 = vld [vmem:[%s5137_s9 + $0x11c] sm:$0xf0] }
  0x3f   : > { %v3758_v37 = vld [vmem:[%s5137_s9 + $0x300] sm:$0xf]  ;;  %v3503_v44 = vor.u32 %v4592_v36, %v3502_v35  ;;  %2223 = vmatpush.bf16.msra.mxu3 %v4303_v38  ;;  %v3342_v35 = vld [vmem:[%s6169_s0 + $0x8] sm:$0xf]  ;;  %v4612_v36 = vld [vmem:[%s5137_s9 + $0x1c4] sm:$0xf] }
  0x40   : > { %v4656_v39 = vld [vmem:[%s5137_s9 + $0x31c] sm:$0xf0] }
  0x41   : > { %v4014_v40 = vld [vmem:[%s5137_s9 + $0x500] sm:$0xf]  ;;  %v3759_v45 = vor.u32 %v4656_v39, %v3758_v37  ;;  %2167 = vmatpush.bf16.msra.mxu0 %v3503_v44  ;;  %v3600_v37 = vld [vmem:[%s5137_s9 + $0x1e0] sm:$0xf0]  ;;  %v3859_v44 = vor.u32 %v4676_v32, %v3856_v33 }
  0x42   : > { %v4720_v41 = vld [vmem:[%s5137_s9 + $0x51c] sm:$0xf0]  ;;  %v3472_v32 = vld [vmem:[%s5137_s9 + $0xe0] sm:$0xf0] }
  0x43   : > { %v4270_v42 = vld [vmem:[%s5137_s9 + $0x700] sm:$0xf]  ;;  %v4015_v46 = vor.u32 %v4720_v41, %v4014_v40  ;;  %2186 = vmatpush.bf16.msra.mxu1 %v3759_v45  ;;  %v4549_v40 = vld [vmem:[%s6169_s0 + $0x18] sm:$0xf0]  ;;  %v4547_v41 = vld [vmem:[%s6169_s0 + $0xc] sm:$0xf] }
  0x44   : > { %v4784_v43 = vld [vmem:[%s5137_s9 + $0x71c] sm:$0xf0]  ;;  %v4740_v45 = vld [vmem:[%s5137_s9 + $0x5c4] sm:$0xf] }
  0x45   : > { %v3470_v47 = vld [vmem:[%s5137_s9 + $0xc0] sm:$0xf]  ;;  %v4271_v50 = vor.u32 %v4784_v43, %v4270_v42  ;;  %2205 = vmatpush.bf16.msra.mxu2 %v4015_v46 }
  0x46   : > { %v4584_v48 = vld [vmem:[%s5137_s9 + $0xdc] sm:$0xf0] }
  0x47   : > { %v3726_v49 = vld [vmem:[%s5137_s9 + $0x2c0] sm:$0xf]  ;;  %v3471_v56 = vor.u32 %v4584_v48, %v3470_v47  ;;  %2224 = vmatpush.bf16.msra.mxu3 %v4271_v50  ;;  %v4112_v50 = vld [vmem:[%s5137_s9 + $0x5e0] sm:$0xf0] }
  0x48   : > { %v4648_v51 = vld [vmem:[%s5137_s9 + $0x2dc] sm:$0xf0] }
  0x49   : > { %v3982_v52 = vld [vmem:[%s5137_s9 + $0x4c0] sm:$0xf]  ;;  %v3727_v57 = vor.u32 %v4648_v51, %v3726_v49  ;;  %2168 = vmatpush.bf16.msra.mxu0 %v3471_v56  ;;  %v3603_v49 = vor.u32 %v4612_v36, %v3600_v37  ;;  %v4668_v51 = vld [vmem:[%s5137_s9 + $0x384] sm:$0xf]  ;;  %v4552_v36 = vld [vmem:[%s6169_s0 + $0x34] sm:$0xf] }
  0x4a   : > { %v4712_v53 = vld [vmem:[%s5137_s9 + $0x4dc] sm:$0xf0]  ;;  %v3568_v56 = vld [vmem:[%s5137_s9 + $0x1a0] sm:$0xf0] }
  0x4b   : > { %v4238_v54 = vld [vmem:[%s5137_s9 + $0x6c0] sm:$0xf]  ;;  %v3983_v58 = vor.u32 %v4712_v53, %v3982_v52  ;;  %2187 = vmatpush.bf16.msra.mxu1 %v3727_v57  ;;  %v3824_v52 = vld [vmem:[%s5137_s9 + $0x3a0] sm:$0xf0]  ;;  %v5251_v53 = vor.u32 %v4546_v30, %v3336_v31 }
  0x4c   : > { %v4776_v55 = vld [vmem:[%s5137_s9 + $0x6dc] sm:$0xf0]  ;;  %v4580_v31 = vld [vmem:[%s5137_s9 + $0xc4] sm:$0xf] }
  0x4d   : > { %v3438_v59 = vld [vmem:[%s5137_s9 + $0x80] sm:$0xf]  ;;  %v4239_v62 = vor.u32 %v4776_v55, %v4238_v54  ;;  %2206 = vmatpush.bf16.msra.mxu2 %v3983_v58  ;;  %v5253_v54 = vor.u32 %v4549_v40, %v3342_v35  ;;  %v4604_v55 = vld [vmem:[%s5137_s9 + $0x184] sm:$0xf] }
  0x4e   : > { %v4576_v60 = vld [vmem:[%s5137_s9 + $0x9c] sm:$0xf0]  ;;  %v4554_v35 = vld [vmem:[%s6169_s0 + $0x40] sm:$0xf0] }
  0x4f   : > { %v3694_v61 = vld [vmem:[%s5137_s9 + $0x280] sm:$0xf]  ;;  %v3439_v4 = vor.u32 %v4576_v60, %v3438_v59  ;;  %2225 = vmatpush.bf16.msra.mxu3 %v4239_v62  ;;  %v4115_v59 = vor.u32 %v4740_v45, %v4112_v50  ;;  %v3827_v60 = vor.u32 %v4668_v51, %v3824_v52  ;;  %v4636_v45 = vld [vmem:[%s5137_s9 + $0x284] sm:$0xf] }
  0x50   : > { %v4640_v63 = vld [vmem:[%s5137_s9 + $0x29c] sm:$0xf0]  ;;  %v3440_v51 = vld [vmem:[%s5137_s9 + $0xa0] sm:$0xf0] }
  0x51   : > { %v3950_v0 = vld [vmem:[%s5137_s9 + $0x480] sm:$0xf]  ;;  %v3695_v5 = vor.u32 %v4640_v63, %v3694_v61  ;;  %2169 = vmatpush.bf16.msra.mxu0 %v3439_v4  ;;  %v4732_v61 = vld [vmem:[%s5137_s9 + $0x584] sm:$0xf] }
  0x52   : > { %v4704_v1 = vld [vmem:[%s5137_s9 + $0x49c] sm:$0xf0]  ;;  %v4596_v4 = vld [vmem:[%s5137_s9 + $0x144] sm:$0xf] }
  0x53   : > { %v4206_v2 = vld [vmem:[%s5137_s9 + $0x680] sm:$0xf]  ;;  %v3951_v6 = vor.u32 %v4704_v1, %v3950_v0  ;;  %2188 = vmatpush.bf16.msra.mxu1 %v3695_v5  ;;  %v3571_v0 = vor.u32 %v4604_v55, %v3568_v56  ;;  %v4080_v1 = vld [vmem:[%s5137_s9 + $0x5a0] sm:$0xf0] }
  0x54   : > { %v4768_v3 = vld [vmem:[%s5137_s9 + $0x69c] sm:$0xf0]  ;;  %v3536_v5 = vld [vmem:[%s5137_s9 + $0x160] sm:$0xf0] }
  0x55   : > { %v3406_v7 = vld [vmem:[%s5137_s9 + $0x40] sm:$0xf]  ;;  %v4207_v10 = vor.u32 %v4768_v3, %v4206_v2  ;;  %2207 = vmatpush.bf16.msra.mxu2 %v3951_v6  ;;  %v4660_v2 = vld [vmem:[%s5137_s9 + $0x344] sm:$0xf] }
  0x56   : > { %v4568_v8 = vld [vmem:[%s5137_s9 + $0x5c] sm:$0xf0]  ;;  %v3792_v3 = vld [vmem:[%s5137_s9 + $0x360] sm:$0xf0] }
  0x57   : > { %v3662_v9 = vld [vmem:[%s5137_s9 + $0x240] sm:$0xf]  ;;  %v3407_v17 = vor.u32 %v4568_v8, %v3406_v7  ;;  %2226 = vmatpush.bf16.msra.mxu3 %v4207_v10  ;;  %v4083_v7 = vor.u32 %v4732_v61, %v4080_v1  ;;  %v3795_v8 = vor.u32 %v4660_v2, %v3792_v3  ;;  %v4048_v10 = vld [vmem:[%s5137_s9 + $0x560] sm:$0xf0] }
  0x58   : > { %v4632_v11 = vld [vmem:[%s5137_s9 + $0x25c] sm:$0xf0]  ;;  %v4804_v52 = vld [vmem:[%s5137_s9 + $0x7c4] sm:$0xf] }
  0x59   : > { %v3918_v12 = vld [vmem:[%s5137_s9 + $0x440] sm:$0xf]  ;;  %v3663_v21 = vor.u32 %v4632_v11, %v3662_v9  ;;  %2170 = vmatpush.bf16.msra.mxu0 %v3407_v17  ;;  %v4724_v9 = vld [vmem:[%s5137_s9 + $0x544] sm:$0xf] }
  0x5a   : > { %v4696_v13 = vld [vmem:[%s5137_s9 + $0x45c] sm:$0xf0]  ;;  %v4652_v11 = vld [vmem:[%s5137_s9 + $0x304] sm:$0xf] }
  0x5b   : > { %v4174_v14 = vld [vmem:[%s5137_s9 + $0x640] sm:$0xf]  ;;  %v3919_v22 = vor.u32 %v4696_v13, %v3918_v12  ;;  %2189 = vmatpush.bf16.msra.mxu1 %v3663_v21  ;;  %v3539_v12 = vor.u32 %v4596_v4, %v3536_v5  ;;  %v3760_v13 = vld [vmem:[%s5137_s9 + $0x320] sm:$0xf0] }
  0x5c   : > { %v4760_v15 = vld [vmem:[%s5137_s9 + $0x65c] sm:$0xf0]  ;;  %v3504_v17 = vld [vmem:[%s5137_s9 + $0x120] sm:$0xf0]  ;;  %v3763_v21 = vor.u32 %v4652_v11, %v3760_v13 }
  0x5d   : > { %v3374_v16 = vld [vmem:[%s5137_s9] sm:$0xf]  ;;  %v4175_v26 = vor.u32 %v4760_v15, %v4174_v14  ;;  %2208 = vmatpush.bf16.msra.mxu2 %v3919_v22  ;;  %v4016_v22 = vld [vmem:[%s5137_s9 + $0x520] sm:$0xf0] }
  0x5e   : > { %v4560_v18 = vld [vmem:[%s5137_s9 + $0x1c] sm:$0xf0]  ;;  %v4368_v55 = vld [vmem:[%s5137_s9 + $0x7e0] sm:$0xf0] }
  0x5f   : > { %v3630_v19 = vld [vmem:[%s5137_s9 + $0x200] sm:$0xf]  ;;  %v3375_v34 = vor.u32 %v4560_v18, %v3374_v16  ;;  %2227 = vmatpush.bf16.msra.mxu3 %v4175_v26  ;;  %v4588_v16 = vld [vmem:[%s5137_s9 + $0x104] sm:$0xf]  ;;  %v4551_v26 = vld [vmem:[%s6169_s0 + $0x2c] sm:$0xf] }
  0x60   : > { %v4624_v20 = vld [vmem:[%s5137_s9 + $0x21c] sm:$0xf0]  ;;  %v4716_v18 = vld [vmem:[%s5137_s9 + $0x504] sm:$0xf] }
  0x61   : > { %v3886_v23 = vld [vmem:[%s5137_s9 + $0x400] sm:$0xf]  ;;  %v3631_v38 = vor.u32 %v4624_v20, %v3630_v19  ;;  %2171 = vmatpush.bf16.msra.mxu0 %v3375_v34  ;;  %v4051_v20 = vor.u32 %v4724_v9, %v4048_v10  ;;  %v3362_v34 = vld [vmem:[%s6169_s0 + $0x30] sm:$0xf]  ;;  %v4700_v61 = vld [vmem:[%s5137_s9 + $0x484] sm:$0xf] }
  0x62   : > { %v4688_v24 = vld [vmem:[%s5137_s9 + $0x41c] sm:$0xf0]  ;;  %v5320_v50 = vor.u32 %v4554_v35, %v3362_v34  ;;  %v4628_v1 = vld [vmem:[%s5137_s9 + $0x244] sm:$0xf]  ;;  %v4681_v34 = vld [vmem:[%s5137_s9 + $0x3e4] sm:$0xf0] }
  0x63   : > { %v4142_v25 = vld [vmem:[%s5137_s9 + $0x600] sm:$0xf]  ;;  %v3887_v39 = vor.u32 %v4688_v24, %v3886_v23  ;;  %2190 = vmatpush.bf16.msra.mxu1 %v3631_v38  ;;  %v3354_v23 = vld [vmem:[%s6169_s0 + $0x28] sm:$0xf]  ;;  %v4553_v24 = vld [vmem:[%s6169_s0 + $0x38] sm:$0xf0]  ;;  %v4019_v38 = vor.u32 %v4716_v18, %v4016_v22 }
  0x64   : > { %v4752_v27 = vld [vmem:[%s5137_s9 + $0x61c] sm:$0xf0]  ;;  %v3664_v2 = vld [vmem:[%s5137_s9 + $0x260] sm:$0xf0]  ;;  %v3606_v18 = vld [vmem:[%s5137_s9 + $0x1c8] sm:$0xf] }
  0x65   : > { %v3334_v28 = vld [vmem:[%s6169_s0] sm:$0xf]  ;;  %v4143_v43 = vor.u32 %v4752_v27, %v4142_v25  ;;  %2209 = vmatpush.bf16.msra.mxu2 %v3887_v39  ;;  %v3507_v25 = vor.u32 %v4588_v16, %v3504_v17  ;;  %v3364_v39 = vld [vmem:[%s6169_s0 + $0x44] sm:$0xf0]  ;;  %v4336_v3 = vld [vmem:[%s5137_s9 + $0x7a0] sm:$0xf0]  ;;  %v3667_v9 = vor.u32 %v4628_v1, %v3664_v2 }
  0x66   : > { %v3344_v42 = vld [vmem:[%s6169_s0 + $0x1c] sm:$0xf0]  ;;  %v5246_v48 = vor.u32 %v4548_v29, %v3334_v28  ;;  %2191 = vmatmul.bf16.vlgmr.msra.gmra.mxu1 %v5251_v53  ;;  %v4644_v28 = vld [vmem:[%s5137_s9 + $0x2c4] sm:$0xf]  ;;  %v5325_v56 = vor.u32 %v4552_v36, %v3364_v39  ;;  %v4609_v39 = vld [vmem:[%s5137_s9 + $0x1a4] sm:$0xf0] }
  0x67   : > { %v4494_v46 = vld [vmem:[%s5137_s9 + $0x8c0] sm:$0xf]  ;;  %v5257_v57 = vor.u32 %v4547_v41, %v3344_v42  ;;  %2228 = vmatpush.bf16.msra.mxu3 %v4143_v43  ;;  %2259 = vmatpush.bf16.msrb.mxu1 %v3603_v49  ;;  %v3728_v29 = vld [vmem:[%s5137_s9 + $0x2e0] sm:$0xf0]  ;;  %v5313_v43 = vor.u32 %v4553_v24, %v3354_v23  ;;  %v3798_v2 = vld [vmem:[%s5137_s9 + $0x348] sm:$0xf] }
  0x68   : > { %v4840_v47 = vld [vmem:[%s5137_s9 + $0x8dc] sm:$0xf0]  ;;  %2172 = vmatmul.bf16.vlgmr.msra.gmra.mxu0 %v5246_v48  ;;  %2210 = vmatmul.bf16.vlgmr.msra.gmra.mxu2 %v5253_v54  ;;  %v3731_v40 = vor.u32 %v4644_v28, %v3728_v29  ;;  %v4708_v41 = vld [vmem:[%s5137_s9 + $0x4c4] sm:$0xf] }
  0x69   : > { %v4495_v58 = vor.u32 %v4840_v47, %v4494_v46  ;;  %2278 = vmatpush.bf16.msrb.mxu2 %v3859_v44  ;;  %v4462_v62 = vld [vmem:[%s5137_s9 + $0x880] sm:$0xf]  ;;  %v3984_v42 = vld [vmem:[%s5137_s9 + $0x4e0] sm:$0xf0]  ;;  %v3475_v44 = vor.u32 %v4580_v31, %v3472_v32 }
  0x6a   : > { %v4832_v63 = vld [vmem:[%s5137_s9 + $0x89c] sm:$0xf0]  ;;  %2229 = vmatmul.bf16.vlgmr.msra.gmra.mxu3 %v5257_v57  ;;  %v3696_v46 = vld [vmem:[%s5137_s9 + $0x2a0] sm:$0xf0] }
  0x6b   : > { %2244 = vmatpush.bf16.msrb.mxu0 %v4495_v58  ;;  %v4463_v6 = vor.u32 %v4832_v63, %v4462_v62  ;;  %2297 = vmatpush.bf16.msrb.mxu3 %v4115_v59  ;;  %v4430_v14 = vld [vmem:[%s5137_s9 + $0x840] sm:$0xf]  ;;  %v4572_v47 = vld [vmem:[%s5137_s9 + $0x84] sm:$0xf]  ;;  %v4371_v58 = vor.u32 %v4804_v52, %v4368_v55  ;;  %v3987_v59 = vor.u32 %v4708_v41, %v3984_v42  ;;  %v3542_v55 = vld [vmem:[%s5137_s9 + $0x148] sm:$0xf] }
  0x6c   : > { %2260 = vmatpush.bf16.msrb.mxu1 %v3571_v0  ;;  %v4824_v15 = vld [vmem:[%s5137_s9 + $0x85c] sm:$0xf0]  ;;  %v3952_v62 = vld [vmem:[%s5137_s9 + $0x4a0] sm:$0xf0]  ;;  %v3443_v0 = vor.u32 %v4572_v47, %v3440_v51  ;;  %v3830_v47 = vld [vmem:[%s5137_s9 + $0x388] sm:$0xf] }
  0x6d   : > { %2279 = vmatpush.bf16.msrb.mxu2 %v3827_v60  ;;  %v4431_v19 = vor.u32 %v4824_v15, %v4430_v14  ;;  %v3356_v27 = vld [vmem:[%s6169_s0 + $0x3c] sm:$0xf0]  ;;  %v3699_v60 = vor.u32 %v4636_v45, %v3696_v46  ;;  %v4796_v63 = vld [vmem:[%s5137_s9 + $0x784] sm:$0xf]  ;;  %v4673_v51 = vld [vmem:[%s5137_s9 + $0x3a4] sm:$0xf0] }
  0x6e   : > { %v4398_v30 = vld [vmem:[%s5137_s9 + $0x800] sm:$0xf]  ;;  %v5318_v49 = vor.u32 %v4551_v26, %v3356_v27  ;;  %v4564_v4 = vld [vmem:[%s5137_s9 + $0x44] sm:$0xf] }
  0x6f   : > { %2245 = vmatpush.bf16.msrb.mxu0 %v4463_v6  ;;  %2298 = vmatpush.bf16.msrb.mxu3 %v4083_v7  ;;  %v4816_v33 = vld [vmem:[%s5137_s9 + $0x81c] sm:$0xf0]  ;;  %v3408_v5 = vld [vmem:[%s5137_s9 + $0x60] sm:$0xf0]  ;;  %v4339_v7 = vor.u32 %v4796_v63, %v4336_v3  ;;  %v4665_v3 = vld [vmem:[%s5137_s9 + $0x364] sm:$0xf0] }
  0x70   : > { %2261 = vmatpush.bf16.msrb.mxu1 %v3539_v12  ;;  %v4399_v37 = vor.u32 %v4816_v33, %v4398_v30  ;;  %v4692_v6 = vld [vmem:[%s5137_s9 + $0x444] sm:$0xf]  ;;  %v3411_v13 = vor.u32 %v4564_v4, %v3408_v5  ;;  %v3350_v30 = vld [vmem:[%s6169_s0 + $0x10] sm:$0xf]  ;;  %v3862_v33 = vld [vmem:[%s5137_s9 + $0x3c8] sm:$0xf] }
  0x71   : > { %2280 = vmatpush.bf16.msrb.mxu2 %v3795_v8  ;;  %v3955_v8 = vor.u32 %v4700_v61, %v3952_v62  ;;  %v3920_v10 = vld [vmem:[%s5137_s9 + $0x460] sm:$0xf0]  ;;  %v3863_v42 = vor.u32 %v4681_v34, %v3862_v33  ;;  %v3831_v62 = vor.u32 %v4673_v51, %v3830_v47  ;;  %v3510_v5 = vld [vmem:[%s5137_s9 + $0x108] sm:$0xf] }
  0x72   : > { %v4788_v11 = vld [vmem:[%s5137_s9 + $0x744] sm:$0xf]  ;;  %v3923_v23 = vor.u32 %v4692_v6, %v3920_v10  ;;  %v4593_v6 = vld [vmem:[%s5137_s9 + $0x124] sm:$0xf0] }
  0x73   : > { %2246 = vmatpush.bf16.msrb.mxu0 %v4431_v19  ;;  %2299 = vmatpush.bf16.msrb.mxu3 %v4051_v20  ;;  %v4304_v12 = vld [vmem:[%s5137_s9 + $0x760] sm:$0xf0]  ;;  %v4617_v19 = vld [vmem:[%s5137_s9 + $0x1e4] sm:$0xf0] }
  0x74   : > { %2262 = vmatpush.bf16.msrb.mxu1 %v3507_v25  ;;  %v4620_v14 = vld [vmem:[%s5137_s9 + $0x204] sm:$0xf]  ;;  %v4307_v22 = vor.u32 %v4788_v11, %v4304_v12  ;;  %v3607_v31 = vor.u32 %v4617_v19, %v3606_v18  ;;  %v3799_v11 = vor.u32 %v4665_v3, %v3798_v2  ;;  %v3511_v18 = vor.u32 %v4593_v6, %v3510_v5  ;;  %v3478_v19 = vld [vmem:[%s5137_s9 + $0xc8] sm:$0xf] }
  0x75   : > { %2281 = vmatpush.bf16.msrb.mxu2 %v3763_v21  ;;  %v3632_v15 = vld [vmem:[%s5137_s9 + $0x220] sm:$0xf0]  ;;  %v4577_v33 = vld [vmem:[%s5137_s9 + $0xa4] sm:$0xf0] }
  0x76   : > { %2196 = vmatmul.bf16.gmra.mxu1 %v5318_v49  ;;  %v4556_v16 = vld [vmem:[%s5137_s9 + $0x4] sm:$0xf]  ;;  %v3635_v24 = vor.u32 %v4620_v14, %v3632_v15  ;;  %v4657_v15 = vld [vmem:[%s5137_s9 + $0x324] sm:$0xf0] }
  0x77   : > { %2247 = vmatpush.bf16.msrb.mxu0 %v4399_v37  ;;  %2300 = vmatpush.bf16.msrb.mxu3 %v4019_v38  ;;  %v3376_v17 = vld [vmem:[%s5137_s9 + $0x20] sm:$0xf0]  ;;  %v3574_v38 = vld [vmem:[%s5137_s9 + $0x188] sm:$0xf] }
  0x78   : > { %2177 = vmatmul.bf16.gmra.mxu0 %v5313_v43  ;;  %2263 = vmatpush.bf16.msrb.mxu1 %v3475_v44  ;;  %v4836_v20 = vld [vmem:[%s5137_s9 + $0x8c4] sm:$0xf]  ;;  %v3379_v27 = vor.u32 %v4556_v16, %v3376_v17  ;;  %v3575_v52 = vor.u32 %v4609_v39, %v3574_v38  ;;  %v4374_v16 = vld [vmem:[%s5137_s9 + $0x7c8] sm:$0xf] }
  0x79   : > { %2282 = vmatpush.bf16.msrb.mxu2 %v3731_v40  ;;  %v4496_v21 = vld [vmem:[%s5137_s9 + $0x8e0] sm:$0xf0]  ;;  %v4809_v17 = vld [vmem:[%s5137_s9 + $0x7e4] sm:$0xf0] }
  0x7a   : > { %2215 = vmatmul.bf16.gmra.mxu2 %v5320_v50  ;;  %2234 = vmatmul.bf16.gmra.mxu3 %v5325_v56  ;;  %v4780_v25 = vld [vmem:[%s5137_s9 + $0x704] sm:$0xf]  ;;  %v4499_v35 = vor.u32 %v4836_v20, %v4496_v21  ;;  %v4585_v20 = vld [vmem:[%s5137_s9 + $0xe4] sm:$0xf0] }
  0x7b   : > { %2316 = vmatpush.bf16.msra.mxu0 %v4371_v58  ;;  %2301 = vmatpush.bf16.msrb.mxu3 %v3987_v59  ;;  %v4272_v26 = vld [vmem:[%s5137_s9 + $0x720] sm:$0xf0]  ;;  %v4601_v58 = vld [vmem:[%s5137_s9 + $0x164] sm:$0xf0] }
  0x7c   : > { %2264 = vmatpush.bf16.msrb.mxu1 %v3443_v0  ;;  %v4684_v28 = vld [vmem:[%s5137_s9 + $0x404] sm:$0xf]  ;;  %v4275_v36 = vor.u32 %v4780_v25, %v4272_v26  ;;  %v3543_v4 = vor.u32 %v4601_v58, %v3542_v55  ;;  %v4745_v38 = vld [vmem:[%s5137_s9 + $0x5e4] sm:$0xf0] }
  0x7d   : > { %2283 = vmatpush.bf16.msrb.mxu2 %v3699_v60  ;;  %v3888_v29 = vld [vmem:[%s5137_s9 + $0x420] sm:$0xf0]  ;;  %v4342_v39 = vld [vmem:[%s5137_s9 + $0x788] sm:$0xf] }
  0x7e   : > { %v4550_v32 = vld [vmem:[%s6169_s0 + $0x20] sm:$0xf0]  ;;  %v3891_v37 = vor.u32 %v4684_v28, %v3888_v29  ;;  %v4555_v28 = vld [vmem:[%s6169_s0 + $0x48] sm:$0xf0]  ;;  %v3734_v29 = vld [vmem:[%s5137_s9 + $0x2c8] sm:$0xf] }
  0x7f   : > { %2317 = vmatpush.bf16.msra.mxu0 %v4339_v7  ;;  %2302 = vmatpush.bf16.msrb.mxu3 %v3955_v8  ;;  %v4828_v40 = vld [vmem:[%s5137_s9 + $0x884] sm:$0xf]  ;;  %v5366_v41 = vor.u32 %v4550_v32, %v3350_v30  ;;  %v3766_v7 = vld [vmem:[%s5137_s9 + $0x308] sm:$0xf] }
  0x80   : > { %2265 = vmatpush.bf16.msrb.mxu1 %v3411_v13  ;;  %v4464_v44 = vld [vmem:[%s5137_s9 + $0x8a0] sm:$0xf0]  ;;  %v4649_v30 = vld [vmem:[%s5137_s9 + $0x2e4] sm:$0xf0] }
  0x81   : > { %2284 = vmatpush.bf16.msrb.mxu2 %v3667_v9  ;;  %v4772_v45 = vld [vmem:[%s5137_s9 + $0x6c4] sm:$0xf]  ;;  %v4467_v59 = vor.u32 %v4828_v40, %v4464_v44  ;;  %v3446_v32 = vld [vmem:[%s5137_s9 + $0x88] sm:$0xf] }
  0x82   : > { %v4240_v46 = vld [vmem:[%s5137_s9 + $0x6e0] sm:$0xf0]  ;;  %v4801_v40 = vld [vmem:[%s5137_s9 + $0x7a4] sm:$0xf0] }
  0x83   : > { %2318 = vmatpush.bf16.msra.mxu0 %v4307_v22  ;;  %2303 = vmatpush.bf16.msrb.mxu3 %v3923_v23  ;;  %v4243_v60 = vor.u32 %v4772_v45, %v4240_v46  ;;  %v4820_v61 = vld [vmem:[%s5137_s9 + $0x844] sm:$0xf]  ;;  %v3767_v23 = vor.u32 %v4657_v15, %v3766_v7  ;;  %v4641_v44 = vld [vmem:[%s5137_s9 + $0x2a4] sm:$0xf0]  ;;  %v3447_v45 = vor.u32 %v4577_v33, %v3446_v32  ;;  %v4613_v15 = vld [vmem:[%s5137_s9 + $0x1cc] sm:$0xf] }
  0x84   : > { %2266 = vmatpush.bf16.msrb.mxu1 %v3379_v27  ;;  %v4432_v63 = vld [vmem:[%s5137_s9 + $0x860] sm:$0xf0]  ;;  %v4375_v27 = vor.u32 %v4809_v17, %v4374_v16  ;;  %v3414_v46 = vld [vmem:[%s5137_s9 + $0x48] sm:$0xf]  ;;  %v4343_v55 = vor.u32 %v4801_v40, %v4342_v39  ;;  %v3608_v16 = vld [vmem:[%s5137_s9 + $0x1e8] sm:$0xf0] }
  0x85   : > { %2285 = vmatpush.bf16.msrb.mxu2 %v3635_v24  ;;  %v4764_v0 = vld [vmem:[%s5137_s9 + $0x684] sm:$0xf]  ;;  %v4435_v8 = vor.u32 %v4820_v61, %v4432_v63  ;;  %v3370_v24 = vld [vmem:[%s6169_s0 + $0x38] sm:$0xf]  ;;  %v4569_v47 = vld [vmem:[%s5137_s9 + $0x64] sm:$0xf0] }
  0x86   : > { %v4208_v1 = vld [vmem:[%s5137_s9 + $0x6a0] sm:$0xf0]  ;;  %v4793_v61 = vld [vmem:[%s5137_s9 + $0x764] sm:$0xf0] }
  0x87   : > { %2319 = vmatpush.bf16.msra.mxu0 %v4275_v36  ;;  %2304 = vmatpush.bf16.msrb.mxu3 %v3891_v37  ;;  %v4211_v9 = vor.u32 %v4764_v0, %v4208_v1  ;;  %v4756_v10 = vld [vmem:[%s5137_s9 + $0x644] sm:$0xf]  ;;  %v5411_v36 = vor.u32 %v4555_v28, %v3370_v24  ;;  %v3735_v37 = vor.u32 %v4649_v30, %v3734_v29  ;;  %v4633_v63 = vld [vmem:[%s5137_s9 + $0x264] sm:$0xf0]  ;;  %v4605_v28 = vld [vmem:[%s5137_s9 + $0x18c] sm:$0xf] }
  0x88   : > { %2339 = vmatpush.bf16.msra.mxu1 %v4499_v35  ;;  %4524 = vmatmul.msk.bf16.vlgmr.msrb.gmra.mxu0 %vm2157_vm0, %v5366_v41  ;;  %v4176_v12 = vld [vmem:[%s5137_s9 + $0x660] sm:$0xf0]  ;;  %v4118_v35 = vld [vmem:[%s5137_s9 + $0x5c8] sm:$0xf]  ;;  %v3415_v0 = vor.u32 %v4569_v47, %v3414_v46  ;;  %v3576_v29 = vld [vmem:[%s5137_s9 + $0x1a8] sm:$0xf0] }
  0x89   : > { %2354 = vmatpush.bf16.msra.mxu2 %v3607_v31  ;;  %2267 = vmatmul.bf16.vlgmr.msrb.gmra.mxu1 %v5246_v48  ;;  %v4812_v13 = vld [vmem:[%s5137_s9 + $0x804] sm:$0xf]  ;;  %v4179_v21 = vor.u32 %v4756_v10, %v4176_v12  ;;  %v3479_v31 = vor.u32 %v4585_v20, %v3478_v19  ;;  %v4119_v51 = vor.u32 %v4745_v38, %v4118_v35  ;;  %v3382_v1 = vld [vmem:[%s5137_s9 + $0x8] sm:$0xf] }
  0x8a   : > { %2286 = vmatmul.bf16.vlgmr.msrb.gmra.mxu2 %v5251_v53  ;;  %2305 = vmatmul.bf16.vlgmr.msrb.gmra.mxu3 %v5253_v54  ;;  %v4400_v14 = vld [vmem:[%s5137_s9 + $0x820] sm:$0xf0]  ;;  %v4561_v2 = vld [vmem:[%s5137_s9 + $0x24] sm:$0xf0]  ;;  %v3579_v40 = vor.u32 %v4605_v28, %v3576_v29  ;;  %v4733_v28 = vld [vmem:[%s5137_s9 + $0x58c] sm:$0xf] }
  0x8b   : > { %2373 = vmatpush.bf16.msra.mxu3 %v3863_v42  ;;  %2320 = vmatpush.bf16.msra.mxu0 %v4243_v60  ;;  %v4403_v22 = vor.u32 %v4812_v13, %v4400_v14  ;;  %v4748_v25 = vld [vmem:[%s5137_s9 + $0x604] sm:$0xf]  ;;  %v3702_v42 = vld [vmem:[%s5137_s9 + $0x288] sm:$0xf]  ;;  %v3383_v14 = vor.u32 %v4561_v2, %v3382_v1  ;;  %v3512_v2 = vld [vmem:[%s5137_s9 + $0x128] sm:$0xf0] }
  0x8c   : > { %2340 = vmatpush.bf16.msra.mxu1 %v4467_v59  ;;  %v4144_v26 = vld [vmem:[%s5137_s9 + $0x620] sm:$0xf0]  ;;  %v3703_v58 = vor.u32 %v4641_v44, %v3702_v42  ;;  %v4737_v59 = vld [vmem:[%s5137_s9 + $0x5a4] sm:$0xf0]  ;;  %v4597_v42 = vld [vmem:[%s5137_s9 + $0x14c] sm:$0xf] }
  0x8d   : > { %2355 = vmatpush.bf16.msra.mxu2 %v3575_v52  ;;  %v4147_v34 = vor.u32 %v4748_v25, %v4144_v26  ;;  %v4086_v52 = vld [vmem:[%s5137_s9 + $0x588] sm:$0xf]  ;;  %v3611_v25 = vor.u32 %v4613_v15, %v3608_v16  ;;  %v3544_v44 = vld [vmem:[%s5137_s9 + $0x168] sm:$0xf0] }
  0x8e   : > { %v4310_v60 = vld [vmem:[%s5137_s9 + $0x748] sm:$0xf]  ;;  %v4087_v5 = vor.u32 %v4737_v59, %v4086_v52  ;;  %v4581_v15 = vld [vmem:[%s5137_s9 + $0xcc] sm:$0xf] }
  0x8f   : > { %2374 = vmatpush.bf16.msra.mxu3 %v3831_v62  ;;  %2321 = vmatpush.bf16.msra.mxu0 %v4211_v9  ;;  %v3670_v62 = vld [vmem:[%s5137_s9 + $0x248] sm:$0xf]  ;;  %v4311_v6 = vor.u32 %v4793_v61, %v4310_v60  ;;  %v4805_v61 = vld [vmem:[%s5137_s9 + $0x7cc] sm:$0xf] }
  0x90   : > { %2341 = vmatpush.bf16.msra.mxu1 %v4435_v8  ;;  %v3638_v3 = vld [vmem:[%s5137_s9 + $0x208] sm:$0xf]  ;;  %v3671_v7 = vor.u32 %v4633_v63, %v3670_v62  ;;  %v4376_v62 = vld [vmem:[%s5137_s9 + $0x7e8] sm:$0xf0]  ;;  %v3547_v63 = vor.u32 %v4597_v42, %v3544_v44 }
  0x91   : > { %2356 = vmatpush.bf16.msra.mxu2 %v3543_v4  ;;  %v4502_v4 = vld [vmem:[%s5137_s9 + $0x8c8] sm:$0xf]  ;;  %v3480_v16 = vld [vmem:[%s5137_s9 + $0xe8] sm:$0xf0] }
  0x92   : > { %v4841_v8 = vld [vmem:[%s5137_s9 + $0x8e4] sm:$0xf0]  ;;  %v4088_v29 = vld [vmem:[%s5137_s9 + $0x5a8] sm:$0xf0] }
  0x93   : > { %2375 = vmatpush.bf16.msra.mxu3 %v3799_v11  ;;  %2322 = vmatpush.bf16.msra.mxu0 %v4179_v21  ;;  %v4054_v9 = vld [vmem:[%s5137_s9 + $0x548] sm:$0xf]  ;;  %v4503_v17 = vor.u32 %v4841_v8, %v4502_v4  ;;  %v4725_v44 = vld [vmem:[%s5137_s9 + $0x54c] sm:$0xf] }
  0x94   : > { %2342 = vmatpush.bf16.msra.mxu1 %v4403_v22  ;;  %v4729_v10 = vld [vmem:[%s5137_s9 + $0x564] sm:$0xf0] }
  0x95   : > { %2357 = vmatpush.bf16.msra.mxu2 %v3511_v18  ;;  %v4625_v11 = vld [vmem:[%s5137_s9 + $0x224] sm:$0xf0]  ;;  %v4055_v19 = vor.u32 %v4729_v10, %v4054_v9  ;;  %v4379_v9 = vor.u32 %v4805_v61, %v4376_v62  ;;  %v4741_v10 = vld [vmem:[%s5137_s9 + $0x5cc] sm:$0xf] }
  0x96   : > { %v4278_v12 = vld [vmem:[%s5137_s9 + $0x708] sm:$0xf]  ;;  %v3639_v20 = vor.u32 %v4625_v11, %v3638_v3  ;;  %v4120_v11 = vld [vmem:[%s5137_s9 + $0x5e8] sm:$0xf0] }
  0x97   : > { %2376 = vmatpush.bf16.msra.mxu3 %v3767_v23  ;;  %2323 = vmatpush.bf16.msra.mxu0 %v4147_v34  ;;  %v4785_v13 = vld [vmem:[%s5137_s9 + $0x724] sm:$0xf0]  ;;  %v3800_v61 = vld [vmem:[%s5137_s9 + $0x368] sm:$0xf0] }
  0x98   : > { %2411 = vmatpush.bf16.msrb.mxu1 %v4375_v27  ;;  %4525 = vmatmul.msk.bf16.gmra.mxu0 %vm2157_vm0, %v5411_v36  ;;  %v4470_v18 = vld [vmem:[%s5137_s9 + $0x888] sm:$0xf]  ;;  %v4279_v24 = vor.u32 %v4785_v13, %v4278_v12  ;;  %v4797_v12 = vld [vmem:[%s5137_s9 + $0x78c] sm:$0xf] }
  0x99   : > { %2358 = vmatpush.bf16.msra.mxu2 %v3479_v31  ;;  %2272 = vmatmul.bf16.gmra.mxu1 %v5313_v43  ;;  %v4833_v21 = vld [vmem:[%s5137_s9 + $0x8a4] sm:$0xf0]  ;;  %v4344_v13 = vld [vmem:[%s5137_s9 + $0x7a8] sm:$0xf0] }
  0x9a   : > { %2291 = vmatmul.bf16.gmra.mxu2 %v5318_v49  ;;  %2310 = vmatmul.bf16.gmra.mxu3 %v5320_v50  ;;  %v4022_v22 = vld [vmem:[%s5137_s9 + $0x508] sm:$0xf]  ;;  %v4471_v30 = vor.u32 %v4833_v21, %v4470_v18  ;;  %v4573_v21 = vld [vmem:[%s5137_s9 + $0x8c] sm:$0xf] }
  0x9b   : > { %2377 = vmatpush.bf16.msra.mxu3 %v3735_v37  ;;  %2392 = vmatpush.bf16.msrb.mxu0 %v4119_v51  ;;  %v4721_v23 = vld [vmem:[%s5137_s9 + $0x524] sm:$0xf0] }
  0x9c   : > { %2412 = vmatpush.bf16.msrb.mxu1 %v4343_v55  ;;  %v4246_v26 = vld [vmem:[%s5137_s9 + $0x6c8] sm:$0xf]  ;;  %v4023_v31 = vor.u32 %v4721_v23, %v4022_v22  ;;  %v3483_v22 = vor.u32 %v4581_v15, %v3480_v16  ;;  %v3448_v23 = vld [vmem:[%s5137_s9 + $0xa8] sm:$0xf0] }
  0x9d   : > { %2359 = vmatpush.bf16.msra.mxu2 %v3447_v45  ;;  %v4777_v27 = vld [vmem:[%s5137_s9 + $0x6e4] sm:$0xf0]  ;;  %v4645_v15 = vld [vmem:[%s5137_s9 + $0x2cc] sm:$0xf] }
  0x9e   : > { %v4438_v32 = vld [vmem:[%s5137_s9 + $0x848] sm:$0xf]  ;;  %v4247_v35 = vor.u32 %v4777_v27, %v4246_v26  ;;  %v4677_v26 = vld [vmem:[%s5137_s9 + $0x3cc] sm:$0xf] }
  0x9f   : > { %2378 = vmatpush.bf16.msra.mxu3 %v3703_v58  ;;  %2393 = vmatpush.bf16.msrb.mxu0 %v4087_v5  ;;  %v4825_v33 = vld [vmem:[%s5137_s9 + $0x864] sm:$0xf0]  ;;  %v3864_v27 = vld [vmem:[%s5137_s9 + $0x3e8] sm:$0xf0] }
  0xa0   : > { %2413 = vmatpush.bf16.msrb.mxu1 %v4311_v6  ;;  %v3990_v34 = vld [vmem:[%s5137_s9 + $0x4c8] sm:$0xf]  ;;  %v4439_v45 = vor.u32 %v4825_v33, %v4438_v32  ;;  %v3451_v33 = vor.u32 %v4573_v21, %v3448_v23  ;;  %v4709_v16 = vld [vmem:[%s5137_s9 + $0x4cc] sm:$0xf] }
  0xa1   : > { %2360 = vmatpush.bf16.msra.mxu2 %v3415_v0  ;;  %v4713_v37 = vld [vmem:[%s5137_s9 + $0x4e4] sm:$0xf0]  ;;  %v4589_v0 = vld [vmem:[%s5137_s9 + $0x10c] sm:$0xf] }
  0xa2   : > { %v4214_v38 = vld [vmem:[%s5137_s9 + $0x688] sm:$0xf]  ;;  %v3991_v46 = vor.u32 %v4713_v37, %v3990_v34  ;;  %v4565_v34 = vld [vmem:[%s5137_s9 + $0x4c] sm:$0xf]  ;;  %v3867_v37 = vor.u32 %v4677_v26, %v3864_v27 }
  0xa3   : > { %2379 = vmatpush.bf16.msra.mxu3 %v3671_v7  ;;  %2394 = vmatpush.bf16.msrb.mxu0 %v4055_v19  ;;  %v4769_v39 = vld [vmem:[%s5137_s9 + $0x6a4] sm:$0xf0]  ;;  %v4123_v19 = vor.u32 %v4741_v10, %v4120_v11  ;;  %v4829_v11 = vld [vmem:[%s5137_s9 + $0x88c] sm:$0xf] }
  0xa4   : > { %2414 = vmatpush.bf16.msrb.mxu1 %v4279_v24  ;;  %v3958_v47 = vld [vmem:[%s5137_s9 + $0x488] sm:$0xf]  ;;  %v4215_v51 = vor.u32 %v4769_v39, %v4214_v38  ;;  %v4669_v38 = vld [vmem:[%s5137_s9 + $0x38c] sm:$0xf] }
  0xa5   : > { %2361 = vmatpush.bf16.msra.mxu2 %v3383_v14  ;;  %v4406_v52 = vld [vmem:[%s5137_s9 + $0x808] sm:$0xf]  ;;  %v3515_v14 = vor.u32 %v4589_v0, %v3512_v2  ;;  %v3832_v39 = vld [vmem:[%s5137_s9 + $0x3a8] sm:$0xf0] }
  0xa6   : > { %v4817_v55 = vld [vmem:[%s5137_s9 + $0x824] sm:$0xf0]  ;;  %v4504_v0 = vld [vmem:[%s5137_s9 + $0x8e8] sm:$0xf0] }
  0xa7   : > { %2380 = vmatpush.bf16.msra.mxu3 %v3639_v20  ;;  %2395 = vmatpush.bf16.msrb.mxu0 %v4023_v31  ;;  %v4705_v58 = vld [vmem:[%s5137_s9 + $0x4a4] sm:$0xf0]  ;;  %v4407_v1 = vor.u32 %v4817_v55, %v4406_v52  ;;  %v4347_v20 = vor.u32 %v4797_v12, %v4344_v13  ;;  %v4312_v31 = vld [vmem:[%s5137_s9 + $0x768] sm:$0xf0] }
  0xa8   : > { %2324 = vmatmul.bf16.vlgmr.msra.gmra.mxu0 %v5257_v57  ;;  %2415 = vmatpush.bf16.msrb.mxu1 %v4247_v35  ;;  %v4182_v59 = vld [vmem:[%s5137_s9 + $0x648] sm:$0xf]  ;;  %v3959_v3 = vor.u32 %v4705_v58, %v3958_v47  ;;  %v3416_v35 = vld [vmem:[%s5137_s9 + $0x68] sm:$0xf0]  ;;  %v3835_v58 = vor.u32 %v4669_v38, %v3832_v39  ;;  %v4382_v38 = vld [vmem:[%s5137_s9 + $0x7d0] sm:$0xf] }
  0xa9   : > { %2434 = vmatpush.bf16.msrb.mxu2 %v4503_v17  ;;  %4526 = vmatmul.msk.bf16.vlgmr.msra.gmra.mxu1 %vm2157_vm0, %v5366_v41  ;;  %v4761_v60 = vld [vmem:[%s5137_s9 + $0x664] sm:$0xf0]  ;;  %v4280_v47 = vld [vmem:[%s5137_s9 + $0x728] sm:$0xf0]  ;;  %v4810_v39 = vld [vmem:[%s5137_s9 + $0x7ec] sm:$0xf0] }
  0xaa   : > { %2362 = vmatmul.bf16.vlgmr.msra.gmra.mxu2 %v5246_v48  ;;  %2381 = vmatmul.bf16.vlgmr.msra.gmra.mxu3 %v5251_v53  ;;  %v3926_v4 = vld [vmem:[%s5137_s9 + $0x448] sm:$0xf]  ;;  %v4183_v6 = vor.u32 %v4761_v60, %v4182_v59  ;;  %v4557_v52 = vld [vmem:[%s5137_s9 + $0xc] sm:$0xf] }
  0xab   : > { %2449 = vmatpush.bf16.msrb.mxu3 %v3611_v25  ;;  %2396 = vmatpush.bf16.msrb.mxu0 %v3991_v46  ;;  %v4697_v5 = vld [vmem:[%s5137_s9 + $0x464] sm:$0xf0]  ;;  %v4781_v46 = vld [vmem:[%s5137_s9 + $0x70c] sm:$0xf] }
  0xac   : > { %2416 = vmatpush.bf16.msrb.mxu1 %v4215_v51  ;;  %v4150_v7 = vld [vmem:[%s5137_s9 + $0x608] sm:$0xf]  ;;  %v3927_v17 = vor.u32 %v4697_v5, %v3926_v4  ;;  %v3419_v51 = vor.u32 %v4565_v34, %v3416_v35  ;;  %v3384_v55 = vld [vmem:[%s5137_s9 + $0x28] sm:$0xf0] }
  0xad   : > { %2435 = vmatpush.bf16.msrb.mxu2 %v4471_v30  ;;  %v4753_v8 = vld [vmem:[%s5137_s9 + $0x624] sm:$0xf0]  ;;  %v4789_v30 = vld [vmem:[%s5137_s9 + $0x74c] sm:$0xf]  ;;  %v3387_v5 = vor.u32 %v4557_v52, %v3384_v55 }
  0xae   : > { %v4151_v18 = vor.u32 %v4753_v8, %v4150_v7  ;;  %v3894_v24 = vld [vmem:[%s5137_s9 + $0x408] sm:$0xf]  ;;  %v4315_v42 = vor.u32 %v4789_v30, %v4312_v31  ;;  %v4837_v59 = vld [vmem:[%s5137_s9 + $0x8cc] sm:$0xf] }
  0xaf   : > { %2450 = vmatpush.bf16.msrb.mxu3 %v3579_v40  ;;  %2397 = vmatpush.bf16.msrb.mxu0 %v3959_v3  ;;  %v4689_v25 = vld [vmem:[%s5137_s9 + $0x424] sm:$0xf0]  ;;  %v4091_v40 = vor.u32 %v4733_v28, %v4088_v29  ;;  %v4661_v60 = vld [vmem:[%s5137_s9 + $0x34c] sm:$0xf]  ;;  %v4507_v7 = vor.u32 %v4837_v59, %v4504_v0  ;;  %v4746_v59 = vld [vmem:[%s5137_s9 + $0x5ec] sm:$0xf0] }
  0xb0   : > { %2417 = vmatpush.bf16.msrb.mxu1 %v4183_v6  ;;  %v3895_v32 = vor.u32 %v4689_v25, %v3894_v24  ;;  %v4024_v2 = vld [vmem:[%s5137_s9 + $0x528] sm:$0xf0]  ;;  %v3803_v6 = vor.u32 %v4661_v60, %v3800_v61  ;;  %v4383_v60 = vor.u32 %v4810_v39, %v4382_v38  ;;  %v3550_v38 = vld [vmem:[%s5137_s9 + $0x150] sm:$0xf] }
  0xb1   : > { %2436 = vmatpush.bf16.msrb.mxu2 %v4439_v45  ;;  %v4056_v45 = vld [vmem:[%s5137_s9 + $0x568] sm:$0xf0]  ;;  %v4602_v39 = vld [vmem:[%s5137_s9 + $0x16c] sm:$0xf0] }
  0xb2   : > { %v4059_v62 = vor.u32 %v4725_v44, %v4056_v45  ;;  %v4773_v3 = vld [vmem:[%s5137_s9 + $0x6cc] sm:$0xf] }
  0xb3   : > { %2451 = vmatpush.bf16.msrb.mxu3 %v3547_v63  ;;  %2398 = vmatpush.bf16.msrb.mxu0 %v3927_v17  ;;  %v4283_v63 = vor.u32 %v4781_v46, %v4280_v47  ;;  %v4248_v4 = vld [vmem:[%s5137_s9 + $0x6e8] sm:$0xf0] }
  0xb4   : > { %2418 = vmatpush.bf16.msrb.mxu1 %v4151_v18  ;;  %v4653_v8 = vld [vmem:[%s5137_s9 + $0x30c] sm:$0xf]  ;;  %v4251_v13 = vor.u32 %v4773_v3, %v4248_v4 }
  0xb5   : > { %2437 = vmatpush.bf16.msrb.mxu2 %v4407_v1  ;;  %v4717_v1 = vld [vmem:[%s5137_s9 + $0x50c] sm:$0xf] }
  0xb6   : > { %v4027_v10 = vor.u32 %v4717_v1, %v4024_v2  ;;  %v4472_v12 = vld [vmem:[%s5137_s9 + $0x8a8] sm:$0xf0] }
  0xb7   : > { %2452 = vmatpush.bf16.msrb.mxu3 %v3515_v14  ;;  %2399 = vmatpush.bf16.msrb.mxu0 %v3895_v32  ;;  %v3992_v17 = vld [vmem:[%s5137_s9 + $0x4e8] sm:$0xf0]  ;;  %v4475_v18 = vor.u32 %v4829_v11, %v4472_v12 }
  0xb8   : > { %2487 = vmatpush.bf16.msra.mxu1 %v4123_v19  ;;  %2329 = vmatmul.bf16.gmra.mxu0 %v5325_v56  ;;  %v3736_v19 = vld [vmem:[%s5137_s9 + $0x2e8] sm:$0xf0]  ;;  %v3995_v24 = vor.u32 %v4709_v16, %v3992_v17  ;;  %v3838_v17 = vld [vmem:[%s5137_s9 + $0x390] sm:$0xf] }
  0xb9   : > { %2506 = vmatpush.bf16.msra.mxu2 %v4379_v9  ;;  %4527 = vmatmul.msk.bf16.gmra.mxu1 %vm2157_vm0, %v5411_v36  ;;  %v3768_v9 = vld [vmem:[%s5137_s9 + $0x328] sm:$0xf0]  ;;  %v3739_v25 = vor.u32 %v4645_v15, %v3736_v19  ;;  %v4618_v15 = vld [vmem:[%s5137_s9 + $0x1ec] sm:$0xf0] }
  0xba   : > { %2367 = vmatmul.bf16.gmra.mxu2 %v5313_v43  ;;  %2386 = vmatmul.bf16.gmra.mxu3 %v5318_v49  ;;  %v3771_v14 = vor.u32 %v4653_v8, %v3768_v9  ;;  %v4216_v21 = vld [vmem:[%s5137_s9 + $0x6a8] sm:$0xf0]  ;;  %v4682_v8 = vld [vmem:[%s5137_s9 + $0x3ec] sm:$0xf0] }
  0xbb   : > { %2453 = vmatpush.bf16.msrb.mxu3 %v3483_v22  ;;  %2468 = vmatpush.bf16.msra.mxu0 %v3867_v37  ;;  %v4821_v22 = vld [vmem:[%s5137_s9 + $0x84c] sm:$0xf]  ;;  %v4094_v9 = vld [vmem:[%s5137_s9 + $0x590] sm:$0xf] }
  0xbc   : > { %2488 = vmatpush.bf16.msra.mxu1 %v4091_v40  ;;  %v4440_v23 = vld [vmem:[%s5137_s9 + $0x868] sm:$0xf0]  ;;  %v4674_v19 = vld [vmem:[%s5137_s9 + $0x3ac] sm:$0xf0] }
  0xbd   : > { %2507 = vmatpush.bf16.msra.mxu2 %v4347_v20  ;;  %v4765_v20 = vld [vmem:[%s5137_s9 + $0x68c] sm:$0xf]  ;;  %v4443_v30 = vor.u32 %v4821_v22, %v4440_v23  ;;  %v4062_v22 = vld [vmem:[%s5137_s9 + $0x550] sm:$0xf] }
  0xbe   : > { %v4219_v26 = vor.u32 %v4765_v20, %v4216_v21  ;;  %v4637_v27 = vld [vmem:[%s5137_s9 + $0x28c] sm:$0xf]  ;;  %v4318_v20 = vld [vmem:[%s5137_s9 + $0x750] sm:$0xf] }
  0xbf   : > { %2454 = vmatpush.bf16.msrb.mxu3 %v3451_v33  ;;  %2469 = vmatpush.bf16.msra.mxu0 %v3835_v58  ;;  %v4701_v28 = vld [vmem:[%s5137_s9 + $0x48c] sm:$0xf]  ;;  %v4126_v58 = vld [vmem:[%s5137_s9 + $0x5d0] sm:$0xf] }
  0xc0   : > { %2489 = vmatpush.bf16.msra.mxu1 %v4059_v62  ;;  %v3960_v29 = vld [vmem:[%s5137_s9 + $0x4a8] sm:$0xf0]  ;;  %v4350_v62 = vld [vmem:[%s5137_s9 + $0x790] sm:$0xf] }
  0xc1   : > { %2508 = vmatpush.bf16.msra.mxu2 %v4315_v42  ;;  %v3704_v31 = vld [vmem:[%s5137_s9 + $0x2a8] sm:$0xf0]  ;;  %v3963_v37 = vor.u32 %v4701_v28, %v3960_v29  ;;  %v4794_v21 = vld [vmem:[%s5137_s9 + $0x76c] sm:$0xf0] }
  0xc2   : > { %v4757_v32 = vld [vmem:[%s5137_s9 + $0x64c] sm:$0xf]  ;;  %v3707_v40 = vor.u32 %v4637_v27, %v3704_v31  ;;  %v4730_v23 = vld [vmem:[%s5137_s9 + $0x56c] sm:$0xf0]  ;;  %v3839_v27 = vor.u32 %v4674_v19, %v3838_v17  ;;  %v4319_v29 = vor.u32 %v4794_v21, %v4318_v20 }
  0xc3   : > { %2455 = vmatpush.bf16.msrb.mxu3 %v3419_v51  ;;  %2470 = vmatpush.bf16.msra.mxu0 %v3803_v6  ;;  %v4184_v33 = vld [vmem:[%s5137_s9 + $0x668] sm:$0xf0]  ;;  %v4127_v6 = vor.u32 %v4746_v59, %v4126_v58  ;;  %v3806_v28 = vld [vmem:[%s5137_s9 + $0x350] sm:$0xf]  ;;  %v3551_v58 = vor.u32 %v4602_v39, %v3550_v38 }
  0xc4   : > { %2490 = vmatpush.bf16.msra.mxu1 %v4027_v10  ;;  %v4813_v34 = vld [vmem:[%s5137_s9 + $0x80c] sm:$0xf]  ;;  %v4187_v42 = vor.u32 %v4757_v32, %v4184_v33  ;;  %v4738_v10 = vld [vmem:[%s5137_s9 + $0x5ac] sm:$0xf0] }
  0xc5   : > { %2509 = vmatpush.bf16.msra.mxu2 %v4283_v63  ;;  %v4408_v35 = vld [vmem:[%s5137_s9 + $0x828] sm:$0xf0]  ;;  %v4802_v63 = vld [vmem:[%s5137_s9 + $0x7ac] sm:$0xf0] }
  0xc6   : > { %v4629_v44 = vld [vmem:[%s5137_s9 + $0x24c] sm:$0xf]  ;;  %v4411_v51 = vor.u32 %v4813_v34, %v4408_v35  ;;  %v4351_v11 = vor.u32 %v4802_v63, %v4350_v62  ;;  %v4666_v31 = vld [vmem:[%s5137_s9 + $0x36c] sm:$0xf0] }
  0xc7   : > { %2456 = vmatpush.bf16.msrb.mxu3 %v3387_v5  ;;  %2471 = vmatpush.bf16.msra.mxu0 %v3771_v14  ;;  %v4693_v45 = vld [vmem:[%s5137_s9 + $0x44c] sm:$0xf]  ;;  %v3614_v14 = vld [vmem:[%s5137_s9 + $0x1d0] sm:$0xf] }
  0xc8   : > { %2400 = vmatmul.bf16.vlgmr.msrb.gmra.mxu0 %v5253_v54  ;;  %2491 = vmatpush.bf16.msra.mxu1 %v3995_v24  ;;  %v3928_v46 = vld [vmem:[%s5137_s9 + $0x468] sm:$0xf0]  ;;  %v3615_v24 = vor.u32 %v4618_v15, %v3614_v14  ;;  %v4286_v32 = vld [vmem:[%s5137_s9 + $0x710] sm:$0xf] }
  0xc9   : > { %2510 = vmatpush.bf16.msra.mxu2 %v4251_v13  ;;  %2419 = vmatmul.bf16.vlgmr.msrb.gmra.mxu1 %v5257_v57  ;;  %v3672_v47 = vld [vmem:[%s5137_s9 + $0x268] sm:$0xf0]  ;;  %v3931_v61 = vor.u32 %v4693_v45, %v3928_v46  ;;  %v4786_v33 = vld [vmem:[%s5137_s9 + $0x72c] sm:$0xf0] }
  0xca   : > { %4528 = vmatmul.msk.bf16.vlgmr.msrb.gmra.mxu2 %vm2157_vm0, %v5366_v41  ;;  %2457 = vmatmul.bf16.vlgmr.msrb.gmra.mxu3 %v5246_v48  ;;  %v4749_v52 = vld [vmem:[%s5137_s9 + $0x60c] sm:$0xf]  ;;  %v3675_v0 = vor.u32 %v4629_v44, %v3672_v47  ;;  %v4030_v34 = vld [vmem:[%s5137_s9 + $0x510] sm:$0xf]  ;;  %v4287_v44 = vor.u32 %v4786_v33, %v4286_v32  ;;  %v4742_v32 = vld [vmem:[%s5137_s9 + $0x5d4] sm:$0xf] }
  0xcb   : > { %2529 = vmatpush.bf16.msra.mxu3 %v4507_v7  ;;  %2472 = vmatpush.bf16.msra.mxu0 %v3739_v25  ;;  %v4152_v55 = vld [vmem:[%s5137_s9 + $0x628] sm:$0xf0]  ;;  %v3870_v7 = vld [vmem:[%s5137_s9 + $0x3d0] sm:$0xf] }
  0xcc   : > { %2492 = vmatpush.bf16.msra.mxu1 %v3963_v37  ;;  %v4155_v1 = vor.u32 %v4749_v52, %v4152_v55  ;;  %v4621_v2 = vld [vmem:[%s5137_s9 + $0x20c] sm:$0xf]  ;;  %v3871_v16 = vor.u32 %v4682_v8, %v3870_v7  ;;  %v3582_v25 = vld [vmem:[%s5137_s9 + $0x190] sm:$0xf] }
  0xcd   : > { %2511 = vmatpush.bf16.msra.mxu2 %v4219_v26  ;;  %v4685_v3 = vld [vmem:[%s5137_s9 + $0x40c] sm:$0xf]  ;;  %v4610_v26 = vld [vmem:[%s5137_s9 + $0x1ac] sm:$0xf0] }
  0xce   : > { %v3896_v4 = vld [vmem:[%s5137_s9 + $0x428] sm:$0xf0]  ;;  %v4722_v35 = vld [vmem:[%s5137_s9 + $0x52c] sm:$0xf0]  ;;  %v3583_v37 = vor.u32 %v4610_v26, %v3582_v25 }
  0xcf   : > { %2530 = vmatpush.bf16.msra.mxu3 %v4475_v18  ;;  %2473 = vmatpush.bf16.msra.mxu0 %v3707_v40  ;;  %v3640_v5 = vld [vmem:[%s5137_s9 + $0x228] sm:$0xf0]  ;;  %v3899_v12 = vor.u32 %v4685_v3, %v3896_v4  ;;  %v4095_v18 = vor.u32 %v4738_v10, %v4094_v9  ;;  %v3807_v40 = vor.u32 %v4666_v31, %v3806_v28  ;;  %v4658_v46 = vld [vmem:[%s5137_s9 + $0x32c] sm:$0xf0] }
  0xd0   : > { %2493 = vmatpush.bf16.msra.mxu1 %v3931_v61  ;;  %v3643_v13 = vor.u32 %v4621_v2, %v3640_v5  ;;  %v4031_v45 = vor.u32 %v4722_v35, %v4030_v34  ;;  %v4254_v47 = vld [vmem:[%s5137_s9 + $0x6d0] sm:$0xf]  ;;  %v4678_v34 = vld [vmem:[%s5137_s9 + $0x3d4] sm:$0xf] }
  0xd1   : > { %2512 = vmatpush.bf16.msra.mxu2 %v4187_v42  ;;  %v3774_v42 = vld [vmem:[%s5137_s9 + $0x310] sm:$0xf]  ;;  %v3872_v35 = vld [vmem:[%s5137_s9 + $0x3f0] sm:$0xf0] }
  0xd2   : > { %v3998_v52 = vld [vmem:[%s5137_s9 + $0x4d0] sm:$0xf]  ;;  %v3775_v61 = vor.u32 %v4658_v46, %v3774_v42 }
  0xd3   : > { %2531 = vmatpush.bf16.msra.mxu3 %v4443_v30  ;;  %2474 = vmatpush.bf16.msra.mxu0 %v3675_v0  ;;  %v4063_v30 = vor.u32 %v4730_v23, %v4062_v22  ;;  %v4714_v55 = vld [vmem:[%s5137_s9 + $0x4ec] sm:$0xf0] }
  0xd4   : > { %2494 = vmatpush.bf16.msra.mxu1 %v3899_v12  ;;  %v3518_v59 = vld [vmem:[%s5137_s9 + $0x110] sm:$0xf]  ;;  %v3999_v0 = vor.u32 %v4714_v55, %v3998_v52 }
  0xd5   : > { %2513 = vmatpush.bf16.msra.mxu2 %v4155_v1  ;;  %v3742_v62 = vld [vmem:[%s5137_s9 + $0x2d0] sm:$0xf] }
  0xd6   : > { %v4650_v1 = vld [vmem:[%s5137_s9 + $0x2ec] sm:$0xf0] }
  0xd7   : > { %2532 = vmatpush.bf16.msra.mxu3 %v4411_v51  ;;  %2475 = vmatpush.bf16.msra.mxu0 %v3643_v13  ;;  %v4778_v51 = vld [vmem:[%s5137_s9 + $0x6ec] sm:$0xf0]  ;;  %v3743_v9 = vor.u32 %v4650_v1, %v3742_v62  ;;  %v4096_v62 = vld [vmem:[%s5137_s9 + $0x5b0] sm:$0xf0] }
  0xd8   : > { %2563 = vmatpush.bf16.msrb.mxu1 %v3871_v16  ;;  %2405 = vmatmul.bf16.gmra.mxu0 %v5320_v50  ;;  %v4255_v63 = vor.u32 %v4778_v51, %v4254_v47  ;;  %v4222_v2 = vld [vmem:[%s5137_s9 + $0x690] sm:$0xf]  ;;  %v4614_v51 = vld [vmem:[%s5137_s9 + $0x1d4] sm:$0xf] }
  0xd9   : > { %2582 = vmatpush.bf16.msrb.mxu2 %v4127_v6  ;;  %2424 = vmatmul.bf16.gmra.mxu1 %v5325_v56  ;;  %v4770_v3 = vld [vmem:[%s5137_s9 + $0x6ac] sm:$0xf0]  ;;  %v4670_v1 = vld [vmem:[%s5137_s9 + $0x394] sm:$0xf] }
  0xda   : > { %4529 = vmatmul.msk.bf16.gmra.mxu2 %vm2157_vm0, %v5411_v36  ;;  %2462 = vmatmul.bf16.gmra.mxu3 %v5313_v43  ;;  %v3966_v4 = vld [vmem:[%s5137_s9 + $0x490] sm:$0xf] }
  0xdb   : > { %2601 = vmatpush.bf16.msrb.mxu3 %v4383_v60  ;;  %2544 = vmatpush.bf16.msrb.mxu0 %v3615_v24  ;;  %v4594_v60 = vld [vmem:[%s5137_s9 + $0x12c] sm:$0xf0] }
  0xdc   : > { %2564 = vmatpush.bf16.msrb.mxu1 %v3839_v27  ;;  %v4706_v5 = vld [vmem:[%s5137_s9 + $0x4ac] sm:$0xf0]  ;;  %v3519_v6 = vor.u32 %v4594_v60, %v3518_v59  ;;  %v3875_v59 = vor.u32 %v4678_v34, %v3872_v35  ;;  %v3616_v60 = vld [vmem:[%s5137_s9 + $0x1f0] sm:$0xf0] }
  0xdd   : > { %2583 = vmatpush.bf16.msrb.mxu2 %v4095_v18  ;;  %v3486_v7 = vld [vmem:[%s5137_s9 + $0xd0] sm:$0xf]  ;;  %v3967_v12 = vor.u32 %v4706_v5, %v3966_v4  ;;  %v3776_v34 = vld [vmem:[%s5137_s9 + $0x330] sm:$0xf0] }
  0xde   : > { %v4586_v8 = vld [vmem:[%s5137_s9 + $0xec] sm:$0xf0] }
  0xdf   : > { %2602 = vmatpush.bf16.msrb.mxu3 %v4351_v11  ;;  %2545 = vmatpush.bf16.msrb.mxu0 %v3583_v37  ;;  %v3710_v10 = vld [vmem:[%s5137_s9 + $0x290] sm:$0xf]  ;;  %v4223_v11 = vor.u32 %v4770_v3, %v4222_v2  ;;  %v3487_v20 = vor.u32 %v4586_v8, %v3486_v7  ;;  %v4128_v37 = vld [vmem:[%s5137_s9 + $0x5f0] sm:$0xf0] }
  0xe0   : > { %2565 = vmatpush.bf16.msrb.mxu1 %v3807_v40  ;;  %v4642_v13 = vld [vmem:[%s5137_s9 + $0x2ac] sm:$0xf0]  ;;  %v4131_v52 = vor.u32 %v4742_v32, %v4128_v37  ;;  %v3840_v2 = vld [vmem:[%s5137_s9 + $0x3b0] sm:$0xf0] }
  0xe1   : > { %2584 = vmatpush.bf16.msrb.mxu2 %v4063_v30  ;;  %v4190_v14 = vld [vmem:[%s5137_s9 + $0x650] sm:$0xf]  ;;  %v3711_v23 = vor.u32 %v4642_v13, %v3710_v10  ;;  %v3843_v10 = vor.u32 %v4670_v1, %v3840_v2  ;;  %v4718_v37 = vld [vmem:[%s5137_s9 + $0x514] sm:$0xf] }
  0xe2   : > { %v4762_v15 = vld [vmem:[%s5137_s9 + $0x66c] sm:$0xf0] }
  0xe3   : > { %2603 = vmatpush.bf16.msrb.mxu3 %v4319_v29  ;;  %2546 = vmatpush.bf16.msrb.mxu0 %v3551_v58  ;;  %v3934_v17 = vld [vmem:[%s5137_s9 + $0x450] sm:$0xf]  ;;  %v5609_v19 = vpop.f32.mrf.mxu1  ;;  %v4191_v25 = vor.u32 %v4762_v15, %v4190_v14  ;;  %v4662_v15 = vld [vmem:[%s5137_s9 + $0x354] sm:$0xf] }
  0xe4   : > { %2566 = vmatpush.bf16.msrb.mxu1 %v3775_v61  ;;  %v4698_v18 = vld [vmem:[%s5137_s9 + $0x46c] sm:$0xf0]  ;;  %v4734_v61 = vld [vmem:[%s5137_s9 + $0x594] sm:$0xf] }
  0xe5   : > { %2585 = vmatpush.bf16.msrb.mxu2 %v4031_v45  ;;  %v5605_v16 = vpop.f32.mrf.mxu0  ;;  %v3454_v21 = vld [vmem:[%s5137_s9 + $0x90] sm:$0xf]  ;;  %v3935_v26 = vor.u32 %v4698_v18, %v3934_v17  ;;  %v3808_v17 = vld [vmem:[%s5137_s9 + $0x370] sm:$0xf0] }
  0xe6   : > { %v4578_v22 = vld [vmem:[%s5137_s9 + $0xac] sm:$0xf0]  ;;  %v4726_v18 = vld [vmem:[%s5137_s9 + $0x554] sm:$0xf] }
  0xe7   : > { %2604 = vmatpush.bf16.msrb.mxu3 %v4287_v44  ;;  %2547 = vmatpush.bf16.msrb.mxu0 %v3519_v6  ;;  %v3678_v24 = vld [vmem:[%s5137_s9 + $0x250] sm:$0xf]  ;;  %v3455_v33 = vor.u32 %v4578_v22, %v3454_v21  ;;  %v3619_v6 = vor.u32 %v4614_v51, %v3616_v60  ;;  %v4064_v22 = vld [vmem:[%s5137_s9 + $0x570] sm:$0xf0] }
  0xe8   : > { %2567 = vmatpush.bf16.msrb.mxu1 %v3743_v9  ;;  %2476 = vmatmul.bf16.vlgmr.msra.gmra.mxu0 %v5251_v53  ;;  %v4634_v27 = vld [vmem:[%s5137_s9 + $0x26c] sm:$0xf0]  ;;  %v4099_v9 = vor.u32 %v4734_v61, %v4096_v62  ;;  %v4646_v51 = vld [vmem:[%s5137_s9 + $0x2d4] sm:$0xf] }
  0xe9   : > { %2586 = vmatpush.bf16.msrb.mxu2 %v3999_v0  ;;  %v4158_v28 = vld [vmem:[%s5137_s9 + $0x610] sm:$0xf]  ;;  %2495 = vmatmul.bf16.vlgmr.msra.gmra.mxu1 %v5253_v54  ;;  %v3679_v40 = vor.u32 %v4634_v27, %v3678_v24  ;;  %v4598_v27 = vld [vmem:[%s5137_s9 + $0x154] sm:$0xf] }
  0xea   : > { %v4754_v29 = vld [vmem:[%s5137_s9 + $0x62c] sm:$0xf0]  ;;  %2514 = vmatmul.bf16.vlgmr.msra.gmra.mxu2 %v5257_v57  ;;  %4530 = vmatmul.msk.bf16.vlgmr.msra.gmra.mxu3 %vm2157_vm0, %v5366_v41  ;;  %v4710_v62 = vld [vmem:[%s5137_s9 + $0x4d4] sm:$0xf] }
  0xeb   : > { %2605 = vmatpush.bf16.msrb.mxu3 %v4255_v63  ;;  %v3902_v30 = vld [vmem:[%s5137_s9 + $0x410] sm:$0xf]  ;;  %2548 = vmatpush.bf16.msrb.mxu0 %v3487_v20  ;;  %v4159_v42 = vor.u32 %v4754_v29, %v4158_v28  ;;  %v5630_v44 = vpop.f32.mrf.mxu2  ;;  %v5642_v63 = vpop.f32.mrf.mxu1  ;;  %v3552_v28 = vld [vmem:[%s5137_s9 + $0x170] sm:$0xf0] }
  0xec   : > { %v4690_v31 = vld [vmem:[%s5137_s9 + $0x42c] sm:$0xf0]  ;;  %2568 = vmatpush.bf16.msrb.mxu1 %v3711_v23  ;;  %v3555_v35 = vor.u32 %v4598_v27, %v3552_v28 }
  0xed   : > { %2587 = vmatpush.bf16.msrb.mxu2 %v3967_v12  ;;  %v3422_v38 = vld [vmem:[%s5137_s9 + $0x50] sm:$0xf]  ;;  %v3903_v45 = vor.u32 %v4690_v31, %v3902_v30  ;;  %v5635_v55 = vpop.f32.mrf.mxu3  ;;  %v5637_v58 = vpop.f32.mrf.mxu0  ;;  %v3584_v12 = vld [vmem:[%s5137_s9 + $0x1b0] sm:$0xf0]  ;;  %v3811_v30 = vor.u32 %v4662_v15, %v3808_v17  ;;  %v4067_v31 = vor.u32 %v4726_v18, %v4064_v22 }
  0xee   : > { %v4570_v39 = vld [vmem:[%s5137_s9 + $0x6c] sm:$0xf0]  ;;  %v4630_v22 = vld [vmem:[%s5137_s9 + $0x254] sm:$0xf] }
  0xef   : > { %2606 = vmatpush.bf16.msrb.mxu3 %v4223_v11  ;;  %v3646_v46 = vld [vmem:[%s5137_s9 + $0x210] sm:$0xf]  ;;  %2549 = vmatpush.bf16.msrb.mxu0 %v3455_v33  ;;  %v3423_v0 = vor.u32 %v4570_v39, %v3422_v38  ;;  %v4606_v11 = vld [vmem:[%s5137_s9 + $0x194] sm:$0xf] }
  0xf0   : > { %v4626_v47 = vld [vmem:[%s5137_s9 + $0x22c] sm:$0xf0]  ;;  %2569 = vmatpush.bf16.msrb.mxu1 %v3679_v40  ;;  %v3587_v21 = vor.u32 %v4606_v11, %v3584_v12  ;;  %v4654_v33 = vld [vmem:[%s5137_s9 + $0x314] sm:$0xf] }
  0xf1   : > { %2588 = vmatpush.bf16.msrb.mxu2 %v3935_v26  ;;  %v3390_v3 = vld [vmem:[%s5137_s9 + $0x10] sm:$0xf]  ;;  %v3647_v5 = vor.u32 %v4626_v47, %v3646_v46  ;;  %v4032_v38 = vld [vmem:[%s5137_s9 + $0x530] sm:$0xf0] }
  0xf2   : > { %v4562_v4 = vld [vmem:[%s5137_s9 + $0x2c] sm:$0xf0]  ;;  %v4590_v39 = vld [vmem:[%s5137_s9 + $0x114] sm:$0xf]  ;;  %v4035_v47 = vor.u32 %v4718_v37, %v4032_v38 }
  0xf3   : > { %2607 = vmatpush.bf16.msrb.mxu3 %v4191_v25  ;;  %v4510_v7 = vld [vmem:[%s5137_s9 + $0x8d0] sm:$0xf]  ;;  %2550 = vmatpush.bf16.msrb.mxu0 %v3423_v0  ;;  %v3391_v13 = vor.u32 %v4562_v4, %v3390_v3  ;;  %v5655_v20 = vpop.f32.mrf.mxu2  ;;  %v5666_v29 = vpop.f32.mrf.mxu1  ;;  %v3520_v40 = vld [vmem:[%s5137_s9 + $0x130] sm:$0xf0] }
  0xf4   : > { %v4842_v8 = vld [vmem:[%s5137_s9 + $0x8ec] sm:$0xf0]  ;;  %2570 = vmatpush.bf16.msrb.mxu1 %v3647_v5  ;;  %v3523_v61 = vor.u32 %v4590_v39, %v3520_v40  ;;  %v4000_v0 = vld [vmem:[%s5137_s9 + $0x4f0] sm:$0xf0] }
  0xf5   : > { %2589 = vmatpush.bf16.msrb.mxu2 %v3903_v45  ;;  %v4511_v14 = vor.u32 %v4842_v8, %v4510_v7  ;;  %v4478_v23 = vld [vmem:[%s5137_s9 + $0x890] sm:$0xf]  ;;  %v5660_v25 = vpop.f32.mrf.mxu3  ;;  %v5662_v26 = vpop.f32.mrf.mxu0  ;;  %v4582_v3 = vld [vmem:[%s5137_s9 + $0xd4] sm:$0xf]  ;;  %v4003_v7 = vor.u32 %v4710_v62, %v4000_v0 }
  0xf6   : > { %v4834_v24 = vld [vmem:[%s5137_s9 + $0x8ac] sm:$0xf0]  ;;  %v3488_v4 = vld [vmem:[%s5137_s9 + $0xf0] sm:$0xf0] }
  0xf7   : > { %2608 = vmatpush.bf16.msrb.mxu3 %v4159_v42  ;;  %2551 = vmatpush.bf16.msrb.mxu0 %v3391_v13  ;;  %v4479_v32 = vor.u32 %v4834_v24, %v4478_v23  ;;  %v3779_v42 = vor.u32 %v4654_v33, %v3776_v34  ;;  %v4446_v45 = vld [vmem:[%s5137_s9 + $0x850] sm:$0xf]  ;;  %v4638_v8 = vld [vmem:[%s5137_s9 + $0x294] sm:$0xf] }
  0xf8   : > { %2639 = vmatpush.bf16.msra.mxu1 %v3619_v6  ;;  %2481 = vmatmul.bf16.gmra.mxu0 %v5318_v49  ;;  %v4826_v46 = vld [vmem:[%s5137_s9 + $0x86c] sm:$0xf0]  ;;  %v4702_v11 = vld [vmem:[%s5137_s9 + $0x494] sm:$0xf] }
  0xf9   : > { %2658 = vmatpush.bf16.msra.mxu2 %v3875_v59  ;;  %2500 = vmatmul.bf16.gmra.mxu1 %v5320_v50  ;;  %v4447_v59 = vor.u32 %v4826_v46, %v4446_v45  ;;  %v3968_v12 = vld [vmem:[%s5137_s9 + $0x4b0] sm:$0xf0]  ;;  %v4414_v17 = vld [vmem:[%s5137_s9 + $0x810] sm:$0xf] }
  0xfa   : > { %2519 = vmatmul.bf16.gmra.mxu2 %v5325_v56  ;;  %4531 = vmatmul.msk.bf16.gmra.mxu3 %vm2157_vm0, %v5411_v36  ;;  %v4574_v13 = vld [vmem:[%s5137_s9 + $0x94] sm:$0xf]  ;;  %v4818_v18 = vld [vmem:[%s5137_s9 + $0x82c] sm:$0xf0] }
  0xfb   : > { %2677 = vmatpush.bf16.msra.mxu3 %v4131_v52  ;;  %2624 = vmatpush.bf16.msra.mxu0 %v4511_v14  ;;  %v3744_v52 = vld [vmem:[%s5137_s9 + $0x2f0] sm:$0xf0]  ;;  %v5693_v5 = vpop.f32.mrf.mxu1  ;;  %v4415_v24 = vor.u32 %v4818_v18, %v4414_v17 }
  0xfc   : > { %2640 = vmatpush.bf16.msra.mxu1 %v3587_v21  ;;  %v3747_v6 = vor.u32 %v4646_v51, %v3744_v52  ;;  %v3456_v14 = vld [vmem:[%s5137_s9 + $0xb0] sm:$0xf0]  ;;  %v3971_v21 = vor.u32 %v4702_v11, %v3968_v12 }
  0xfd   : > { %2659 = vmatpush.bf16.msra.mxu2 %v3843_v10  ;;  %v5683_v60 = vpop.f32.mrf.mxu2  ;;  %v5687_v1 = vpop.f32.mrf.mxu3  ;;  %v3491_v10 = vor.u32 %v4582_v3, %v3488_v4  ;;  %v3680_v23 = vld [vmem:[%s5137_s9 + $0x270] sm:$0xf0]  ;;  %v3459_v28 = vor.u32 %v4574_v13, %v3456_v14  ;;  %v3878_v3 = vld [vmem:[%s5137_s9 + $0x3d8] sm:$0xf] }
  0xfe   : > { %v5689_v2 = vpop.f32.mrf.mxu0  ;;  %v4566_v34 = vld [vmem:[%s5137_s9 + $0x54] sm:$0xf]  ;;  %v3683_v38 = vor.u32 %v4630_v22, %v3680_v23  ;;  %v3590_v13 = vld [vmem:[%s5137_s9 + $0x198] sm:$0xf] }
  0xff   : > { %2678 = vmatpush.bf16.msra.mxu3 %v4099_v9  ;;  %2625 = vmatpush.bf16.msra.mxu0 %v4479_v32  ;;  %v3712_v9 = vld [vmem:[%s5137_s9 + $0x2b0] sm:$0xf0]  ;;  %v4611_v14 = vld [vmem:[%s5137_s9 + $0x1b4] sm:$0xf0] }
 0x100   : > { %2641 = vmatpush.bf16.msra.mxu1 %v3555_v35  ;;  %v3715_v15 = vor.u32 %v4638_v8, %v3712_v9  ;;  %v3424_v35 = vld [vmem:[%s5137_s9 + $0x70] sm:$0xf0]  ;;  %v3846_v22 = vld [vmem:[%s5137_s9 + $0x398] sm:$0xf] }
 0x101   : > { %2660 = vmatpush.bf16.msra.mxu2 %v3811_v30  ;;  %v4694_v30 = vld [vmem:[%s5137_s9 + $0x454] sm:$0xf]  ;;  %v3427_v51 = vor.u32 %v4566_v34, %v3424_v35  ;;  %v4675_v23 = vld [vmem:[%s5137_s9 + $0x3b4] sm:$0xf0] }
 0x102   : > { %v4622_v39 = vld [vmem:[%s5137_s9 + $0x214] sm:$0xf]  ;;  %v3847_v35 = vor.u32 %v4675_v23, %v3846_v22  ;;  %v3494_v22 = vld [vmem:[%s5137_s9 + $0xd8] sm:$0xf] }
 0x103   : > { %2679 = vmatpush.bf16.msra.mxu3 %v4067_v31  ;;  %2626 = vmatpush.bf16.msra.mxu0 %v4447_v59  ;;  %v3936_v31 = vld [vmem:[%s5137_s9 + $0x470] sm:$0xf0]  ;;  %v3622_v59 = vld [vmem:[%s5137_s9 + $0x1d8] sm:$0xf] }
 0x104   : > { %2642 = vmatpush.bf16.msra.mxu1 %v3523_v61  ;;  %v3648_v40 = vld [vmem:[%s5137_s9 + $0x230] sm:$0xf0]  ;;  %v4619_v61 = vld [vmem:[%s5137_s9 + $0x1f4] sm:$0xf0] }
 0x105   : > { %2661 = vmatpush.bf16.msra.mxu2 %v3779_v42  ;;  %v5705_v27 = vpop.f32.mrf.mxu2  ;;  %v5709_v32 = vpop.f32.mrf.mxu3  ;;  %v3939_v42 = vor.u32 %v4694_v30, %v3936_v31  ;;  %v4558_v45 = vld [vmem:[%s5137_s9 + $0x14] sm:$0xf]  ;;  %v3651_v4 = vor.u32 %v4622_v39, %v3648_v40  ;;  %v3623_v9 = vor.u32 %v4619_v61, %v3622_v59  ;;  %v3591_v30 = vor.u32 %v4611_v14, %v3590_v13  ;;  %v4603_v40 = vld [vmem:[%s5137_s9 + $0x174] sm:$0xf0] }
 0x106   : > { %v5711_v33 = vpop.f32.mrf.mxu0  ;;  %v5715_v37 = vpop.f32.mrf.mxu1  ;;  %v3392_v46 = vld [vmem:[%s5137_s9 + $0x30] sm:$0xf0] }
 0x107   : > { %2680 = vmatpush.bf16.msra.mxu3 %v4035_v47  ;;  %2627 = vmatpush.bf16.msra.mxu0 %v4415_v24  ;;  %v4686_v47 = vld [vmem:[%s5137_s9 + $0x414] sm:$0xf]  ;;  %v3395_v11 = vor.u32 %v4558_v45, %v3392_v46 }
 0x108   : > { %2643 = vmatpush.bf16.msra.mxu1 %v3491_v10  ;;  %2552 = vmatmul.bf16.vlgmr.msrb.gmra.mxu0 %v5246_v48  ;;  %v3904_v52 = vld [vmem:[%s5137_s9 + $0x430] sm:$0xf0] }
 0x109   : > { %2662 = vmatpush.bf16.msra.mxu2 %v3747_v6  ;;  %2571 = vmatmul.bf16.vlgmr.msrb.gmra.mxu1 %v5251_v53  ;;  %v4806_v62 = vld [vmem:[%s5137_s9 + $0x7d4] sm:$0xf]  ;;  %v3907_v8 = vor.u32 %v4686_v47, %v3904_v52  ;;  %v3814_v47 = vld [vmem:[%s5137_s9 + $0x358] sm:$0xf] }
 0x10a   : > { %2590 = vmatmul.bf16.vlgmr.msrb.gmra.mxu2 %v5253_v54  ;;  %v4384_v0 = vld [vmem:[%s5137_s9 + $0x7f0] sm:$0xf0]  ;;  %2609 = vmatmul.bf16.vlgmr.msrb.gmra.mxu3 %v5257_v57 }
 0x10b   : > { %2681 = vmatpush.bf16.msra.mxu3 %v4003_v7  ;;  %v4387_v6 = vor.u32 %v4806_v62, %v4384_v0  ;;  %v4683_v7 = vld [vmem:[%s5137_s9 + $0x3f4] sm:$0xf0]  ;;  %v4838_v31 = vld [vmem:[%s5137_s9 + $0x8d4] sm:$0xf] }
 0x10c   : > { %2644 = vmatpush.bf16.msra.mxu1 %v3459_v28  ;;  %v3879_v12 = vor.u32 %v4683_v7, %v3878_v3  ;;  %v4512_v34 = vld [vmem:[%s5137_s9 + $0x8f0] sm:$0xf0]  ;;  %v3526_v62 = vld [vmem:[%s5137_s9 + $0x118] sm:$0xf] }
 0x10d   : > { %2663 = vmatpush.bf16.msra.mxu2 %v3715_v15  ;;  %v5733_v10 = vpop.f32.mrf.mxu2  ;;  %2696 = vmatpush.bf16.msrb.mxu0 %v4387_v6  ;;  %v4798_v15 = vld [vmem:[%s5137_s9 + $0x794] sm:$0xf]  ;;  %v5738_v17 = vpop.f32.mrf.mxu3  ;;  %v4515_v39 = vor.u32 %v4838_v31, %v4512_v34  ;;  %v4595_v0 = vld [vmem:[%s5137_s9 + $0x134] sm:$0xf0] }
 0x10e   : > { %v5740_v18 = vpop.f32.mrf.mxu0  ;;  %v5745_v24 = vpop.f32.mrf.mxu1  ;;  %v4320_v45 = vld [vmem:[%s5137_s9 + $0x770] sm:$0xf0]  ;;  %v3527_v13 = vor.u32 %v4595_v0, %v3526_v62  ;;  %v4643_v0 = vld [vmem:[%s5137_s9 + $0x2b4] sm:$0xf0] }
 0x10f   : > { %2682 = vmatpush.bf16.msra.mxu3 %v3971_v21  ;;  %v4352_v21 = vld [vmem:[%s5137_s9 + $0x7b0] sm:$0xf0] }
 0x110   : > { %2645 = vmatpush.bf16.msra.mxu1 %v3427_v51  ;;  %v4355_v28 = vor.u32 %v4798_v15, %v4352_v21  ;;  %v4667_v51 = vld [vmem:[%s5137_s9 + $0x374] sm:$0xf0]  ;;  %v4782_v3 = vld [vmem:[%s5137_s9 + $0x714] sm:$0xf] }
 0x111   : > { %2664 = vmatpush.bf16.msra.mxu2 %v3683_v38  ;;  %v3558_v38 = vld [vmem:[%s5137_s9 + $0x158] sm:$0xf]  ;;  %v3815_v61 = vor.u32 %v4667_v51, %v3814_v47  ;;  %v4288_v7 = vld [vmem:[%s5137_s9 + $0x730] sm:$0xf0] }
 0x112   : > { %2697 = vmatpush.bf16.msrb.mxu0 %v4355_v28  ;;  %v3559_v52 = vor.u32 %v4603_v40, %v3558_v38  ;;  %v4830_v14 = vld [vmem:[%s5137_s9 + $0x894] sm:$0xf]  ;;  %v4587_v28 = vld [vmem:[%s5137_s9 + $0xf4] sm:$0xf0] }
 0x113   : > { %2683 = vmatpush.bf16.msra.mxu3 %v3939_v42  ;;  %v4790_v42 = vld [vmem:[%s5137_s9 + $0x754] sm:$0xf]  ;;  %v4651_v38 = vld [vmem:[%s5137_s9 + $0x2f4] sm:$0xf0]  ;;  %v3495_v40 = vor.u32 %v4587_v28, %v3494_v22 }
 0x114   : > { %2646 = vmatpush.bf16.msra.mxu1 %v3395_v11  ;;  %v4323_v46 = vor.u32 %v4790_v42, %v4320_v45  ;;  %v4480_v15 = vld [vmem:[%s5137_s9 + $0x8b0] sm:$0xf0]  ;;  %v4579_v47 = vld [vmem:[%s5137_s9 + $0xb4] sm:$0xf0] }
 0x115   : > { %2665 = vmatpush.bf16.msra.mxu2 %v3651_v4  ;;  %v5755_v59 = vpop.f32.mrf.mxu2  ;;  %v5760_v4 = vpop.f32.mrf.mxu3  ;;  %v4483_v23 = vor.u32 %v4830_v14, %v4480_v15  ;;  %v4256_v31 = vld [vmem:[%s5137_s9 + $0x6f0] sm:$0xf0]  ;;  %v3430_v15 = vld [vmem:[%s5137_s9 + $0x58] sm:$0xf] }
 0x116   : > { %v5762_v6 = vpop.f32.mrf.mxu0  ;;  %2698 = vmatpush.bf16.msrb.mxu0 %v4323_v46  ;;  %v5767_v11 = vpop.f32.mrf.mxu1  ;;  %v3462_v46 = vld [vmem:[%s5137_s9 + $0x98] sm:$0xf]  ;;  %v4766_v51 = vld [vmem:[%s5137_s9 + $0x694] sm:$0xf] }
 0x117   : > { %2684 = vmatpush.bf16.msra.mxu3 %v3907_v8  ;;  %v3782_v8 = vld [vmem:[%s5137_s9 + $0x318] sm:$0xf]  ;;  %v4758_v28 = vld [vmem:[%s5137_s9 + $0x654] sm:$0xf] }
 0x118   : > { %2719 = vmatpush.bf16.msrb.mxu1 %v4515_v39  ;;  %2557 = vmatmul.bf16.gmra.mxu0 %v5313_v43  ;;  %v2193_v39 = vadd.f32 %v5609_v19, %v5605_v16  ;;  %v4224_v16 = vld [vmem:[%s5137_s9 + $0x6b0] sm:$0xf0]  ;;  %v3718_v19 = vld [vmem:[%s5137_s9 + $0x298] sm:$0xf] }
 0x119   : > { %2734 = vmatpush.bf16.msrb.mxu2 %v3623_v9  ;;  %v4659_v9 = vld [vmem:[%s5137_s9 + $0x334] sm:$0xf0]  ;;  %2576 = vmatmul.bf16.gmra.mxu1 %v5318_v49  ;;  %v3719_v14 = vor.u32 %v4643_v0, %v3718_v19  ;;  %v4750_v19 = vld [vmem:[%s5137_s9 + $0x614] sm:$0xf] }
 0x11a   : > { %v3783_v21 = vor.u32 %v4659_v9, %v3782_v8  ;;  %2595 = vmatmul.bf16.gmra.mxu2 %v5320_v50  ;;  %2614 = vmatmul.bf16.gmra.mxu3 %v5325_v56  ;;  %v5799_v8 = vld [vmem:[%s5145_s10] sm:$0xff]  ;;  %v2288_v9 = vadd.f32 %v5733_v10, %v5715_v37  ;;  %v2195_v37 = vadd.f32 %v5642_v63, %v5637_v58  ;;  %v4416_v58 = vld [vmem:[%s5137_s9 + $0x830] sm:$0xf0]  ;;  %v3398_v63 = vld [vmem:[%s5137_s9 + $0x18] sm:$0xf] }
 0x11b   : > { %2753 = vmatpush.bf16.msrb.mxu3 %v3879_v12  ;;  %v4291_v12 = vor.u32 %v4782_v3, %v4288_v7  ;;  %v4227_v7 = vor.u32 %v4766_v51, %v4224_v16  ;;  %v4563_v16 = vld [vmem:[%s5137_s9 + $0x34] sm:$0xf0]  ;;  %v4160_v0 = vld [vmem:[%s5137_s9 + $0x630] sm:$0xf0] }
 0x11c   : > { %2720 = vmatpush.bf16.msrb.mxu1 %v4483_v23  ;;  %v4571_v23 = vld [vmem:[%s5137_s9 + $0x74] sm:$0xf0] }
 0x11d   : > { %2735 = vmatpush.bf16.msrb.mxu2 %v3591_v30  ;;  %v4774_v30 = vld [vmem:[%s5137_s9 + $0x6d4] sm:$0xf]  ;;  %2699 = vmatpush.bf16.msrb.mxu0 %v4291_v12  ;;  %v5783_v42 = vpop.f32.mrf.mxu2 }
 0x11e   : > { %v4259_v34 = vor.u32 %v4774_v30, %v4256_v31  ;;  %v5791_v62 = vpop.f32.mrf.mxu0  ;;  %v5796_v3 = vpop.f32.mrf.mxu1  ;;  %v4822_v12 = vld [vmem:[%s5137_s9 + $0x854] sm:$0xf] }
 0x11f   : > { %2754 = vmatpush.bf16.msrb.mxu3 %v3847_v35  ;;  %v3750_v35 = vld [vmem:[%s5137_s9 + $0x2d8] sm:$0xf]  ;;  %v4192_v30 = vld [vmem:[%s5137_s9 + $0x670] sm:$0xf0] }
 0x120   : > { %v3751_v45 = vor.u32 %v4651_v38, %v3750_v35  ;;  %v4195_v31 = vor.u32 %v4758_v28, %v4192_v30  ;;  %v4635_v35 = vld [vmem:[%s5137_s9 + $0x274] sm:$0xf0]  ;;  %v5816_v38 = vperm.slane %v5799_v8, 0 }
 0x121   : > { %2736 = vmatpush.bf16.msrb.mxu2 %v3559_v52  ;;  %v2212_v52 = vadd.f32 %v5630_v44, %v2193_v39  ;;  %2700 = vmatpush.bf16.msrb.mxu0 %v4259_v34  ;;  %v3463_v44 = vor.u32 %v4579_v47, %v3462_v46  ;;  %v3686_v34 = vld [vmem:[%s5137_s9 + $0x258] sm:$0xf]  ;;  %v2307_v39 = vadd.f32 %v5738_v17, %v2288_v9  ;;  %v4814_v46 = vld [vmem:[%s5137_s9 + $0x814] sm:$0xf] }
 0x122   : > { %v4163_v9 = vor.u32 %v4750_v19, %v4160_v0  ;;  %v4747_v28 = vld [vmem:[%s5137_s9 + $0x5f4] sm:$0xf0] }
 0x123   : > { %2755 = vmatpush.bf16.msrb.mxu3 %v3815_v61  ;;  %v5789_v61 = vpop.f32.mrf.mxu3  ;;  %v4390_v30 = vld [vmem:[%s5137_s9 + $0x7d8] sm:$0xf] }
 0x124   : > { %v4739_v19 = vld [vmem:[%s5137_s9 + $0x5b4] sm:$0xf0] }
 0x125   : > { %2737 = vmatpush.bf16.msrb.mxu2 %v3527_v13  ;;  %v4448_v13 = vld [vmem:[%s5137_s9 + $0x870] sm:$0xf0]  ;;  %2701 = vmatpush.bf16.msrb.mxu0 %v4227_v7 }
 0x126   : > { %v4451_v22 = vor.u32 %v4822_v12, %v4448_v13  ;;  %v2325_v51 = vpop.f32.mrf.mxu0  ;;  %v2344_v17 = vpop.f32.mrf.mxu1  ;;  %v3654_v12 = vld [vmem:[%s5137_s9 + $0x218] sm:$0xf] }
 0x127   : > { %2756 = vmatpush.bf16.msrb.mxu3 %v3783_v21  ;;  %v2231_v21 = vadd.f32 %v5635_v55, %v2212_v52  ;;  %v3431_v55 = vor.u32 %v4571_v23, %v3430_v15  ;;  %v4419_v52 = vor.u32 %v4814_v46, %v4416_v58  ;;  %v2326_v7 = vadd.f32 %v2325_v51, %v2307_v39  ;;  %v4627_v13 = vld [vmem:[%s5137_s9 + $0x234] sm:$0xf0] }
 0x128   : > { %2721 = vmatpush.bf16.msrb.mxu1 %v4451_v22  ;;  %v2290_v15 = vadd.f32 %v5755_v59, %v5745_v24  ;;  %4532 = vmatmul.msk.bf16.vlgmr.msra.gmra.mxu0 %vm2157_vm0, %v5366_v41  ;;  %v3655_v22 = vor.u32 %v4627_v13, %v3654_v12  ;;  %v4134_v23 = vld [vmem:[%s5137_s9 + $0x5d8] sm:$0xf]  ;;  %v4615_v24 = vld [vmem:[%s5137_s9 + $0x1dc] sm:$0xf] }
 0x129   : > { %2738 = vmatpush.bf16.msrb.mxu2 %v3495_v40  ;;  %v2250_v10 = vadd.f32 %v5711_v33, %v2231_v21  ;;  %v5819_v40 = vpop.f32.mrf.mxu2  ;;  %v2214_v33 = vadd.f32 %v5655_v20, %v2195_v37  ;;  %2702 = vmatpush.bf16.msrb.mxu0 %v4195_v31  ;;  %v2345_v21 = vadd.f32 %v2344_v17, %v2326_v7  ;;  %v3624_v59 = vld [vmem:[%s5137_s9 + $0x1f8] sm:$0xf0]  ;;  %v4358_v7 = vld [vmem:[%s5137_s9 + $0x798] sm:$0xf] }
 0x12a   : > { %2647 = vmatmul.bf16.vlgmr.msra.gmra.mxu1 %v5246_v48  ;;  %2666 = vmatmul.bf16.vlgmr.msra.gmra.mxu2 %v5251_v53 }
 0x12b   : > { %2757 = vmatpush.bf16.msrb.mxu3 %v3751_v45  ;;  %v3687_v45 = vor.u32 %v4635_v35, %v3686_v34  ;;  %v5825_v47 = vpop.f32.mrf.mxu3  ;;  %v3041_v20 = vadd.f32 %v5816_v38, %v2250_v10  ;;  %v2233_v31 = vadd.f32 %v5660_v25, %v2214_v33  ;;  %v4135_v34 = vor.u32 %v4747_v28, %v4134_v23  ;;  %v4811_v35 = vld [vmem:[%s5137_s9 + $0x7f4] sm:$0xf0] }
 0x12c   : > { %2722 = vmatpush.bf16.msrb.mxu1 %v4419_v52  ;;  %2685 = vmatmul.bf16.vlgmr.msra.gmra.mxu3 %v5253_v54  ;;  %v4518_v10 = vld [vmem:[%s5137_s9 + $0x8d8] sm:$0xf]  ;;  %v4391_v39 = vor.u32 %v4811_v35, %v4390_v30  ;;  %v3627_v25 = vor.u32 %v4615_v24, %v3624_v59  ;;  %v2309_v33 = vadd.f32 %v5760_v4, %v2290_v15 }
 0x12d   : > { %2739 = vmatpush.bf16.msrb.mxu2 %v3463_v44  ;;  %v5831_v44 = vperm.slane %v5799_v8, 1  ;;  %2703 = vmatpush.bf16.msrb.mxu0 %v4163_v9  ;;  %v3073_v58 = vmax.f32 %v3041_v20, 0.0  ;;  %v4607_v20 = vld [vmem:[%s5137_s9 + $0x19c] sm:$0xf]  ;;  %v4070_v23 = vld [vmem:[%s5137_s9 + $0x558] sm:$0xf] }
 0x12e   : > { %v2346_v12 = vpop.f32.mrf.mxu1  ;;  %v4731_v28 = vld [vmem:[%s5137_s9 + $0x574] sm:$0xf0] }
 0x12f   : > { %2758 = vmatpush.bf16.msrb.mxu3 %v3719_v14  ;;  %v3399_v14 = vor.u32 %v4563_v16, %v3398_v63  ;;  %v3042_v37 = vadd.f32 %v5831_v44, %v2345_v21  ;;  %v2252_v63 = vadd.f32 %v5740_v18, %v2233_v31  ;;  %v4102_v16 = vld [vmem:[%s5137_s9 + $0x598] sm:$0xf]  ;;  %v4071_v35 = vor.u32 %v4731_v28, %v4070_v23 }
 0x130   : > { %2791 = vmatpush.bf16.msra.mxu1 %v4391_v39  ;;  %v4103_v0 = vor.u32 %v4739_v19, %v4102_v16  ;;  %v4803_v18 = vld [vmem:[%s5137_s9 + $0x7b4] sm:$0xf0]  ;;  %v2200_v39 = vadd.f32 %v5693_v5, %v5689_v2 }
 0x131   : > { %2740 = vmatpush.bf16.msrb.mxu2 %v3431_v55  ;;  %v4843_v55 = vld [vmem:[%s5137_s9 + $0x8f4] sm:$0xf0]  ;;  %2772 = vmatpush.bf16.msra.mxu0 %v4135_v34  ;;  %v3074_v51 = vmax.f32 %v3042_v37, 0.0  ;;  %v5858_v52 = vpop.f32.mrf.mxu2  ;;  %v4359_v13 = vor.u32 %v4803_v18, %v4358_v7  ;;  %v3049_v21 = vadd.f32 %v5816_v38, %v2252_v63 }
 0x132   : > { %v4519_v46 = vor.u32 %v4843_v55, %v4518_v10  ;;  %v4326_v30 = vld [vmem:[%s5137_s9 + $0x758] sm:$0xf]  ;;  %v4599_v10 = vld [vmem:[%s5137_s9 + $0x15c] sm:$0xf] }
 0x133   : > { %2759 = vmatpush.bf16.msrb.mxu3 %v3687_v45  ;;  %v2198_v45 = vadd.f32 %v5666_v29, %v5662_v26  ;;  %v5862_v26 = vpop.f32.mrf.mxu3  ;;  %v2327_v29 = vpop.f32.mrf.mxu0  ;;  %v3105_v17 = vpack.c.bf16 %v3074_v51, %v3073_v58  ;;  %v4486_v31 = vld [vmem:[%s5137_s9 + $0x898] sm:$0xf]  ;;  %v3560_v55 = vld [vmem:[%s5137_s9 + $0x178] sm:$0xf0] }
 0x134   : > { %v2328_v9 = vadd.f32 %v2327_v29, %v2309_v33  ;;  %2792 = vmatpush.bf16.msra.mxu1 %v4359_v13  ;;  %v4835_v34 = vld [vmem:[%s5137_s9 + $0x8b4] sm:$0xf0]  ;;  %v2295_v13 = vadd.f32 %v5819_v40, %v5796_v3 }
 0x135   : > { %2741 = vmatpush.bf16.msrb.mxu2 %v3399_v14  ;;  %v2217_v4 = vadd.f32 %v5683_v60, %v2198_v45  ;;  %v3592_v14 = vld [vmem:[%s5137_s9 + $0x1b8] sm:$0xf0]  ;;  %2773 = vmatpush.bf16.msra.mxu0 %v4103_v0  ;;  %3121 = vst [vmem:[%s5874_s29] sm:$0xff] %v3105_v17  ;;  %v4795_v24 = vld [vmem:[%s5137_s9 + $0x774] sm:$0xf0]  ;;  %v3081_v45 = vmax.f32 %v3049_v21, 0.0 }
 0x136   : > { %v3595_v15 = vor.u32 %v4607_v20, %v3592_v14  ;;  %v2347_v60 = vadd.f32 %v2346_v12, %v2328_v9  ;;  %v4327_v37 = vor.u32 %v4795_v24, %v4326_v30  ;;  %v4038_v33 = vld [vmem:[%s5137_s9 + $0x518] sm:$0xf]  ;;  %v2349_v18 = vpop.f32.mrf.mxu1  ;;  %v3528_v17 = vld [vmem:[%s5137_s9 + $0x138] sm:$0xf0] }
 0x137   : > { %2760 = vmatpush.bf16.msrb.mxu3 %v3655_v22  ;;  %v2293_v22 = vadd.f32 %v5783_v42, %v5767_v11  ;;  %v2236_v59 = vadd.f32 %v5687_v1, %v2217_v4  ;;  %v4487_v42 = vor.u32 %v4835_v34, %v4486_v31  ;;  %v4723_v51 = vld [vmem:[%s5137_s9 + $0x534] sm:$0xf0]  ;;  %v3496_v31 = vld [vmem:[%s5137_s9 + $0xf8] sm:$0xf0] }
 0x138   : > { %v3050_v11 = vadd.f32 %v5831_v44, %v2347_v60  ;;  %2793 = vmatpush.bf16.msra.mxu1 %v4327_v37  ;;  %v4039_v5 = vor.u32 %v4723_v51, %v4038_v33  ;;  %v4294_v19 = vld [vmem:[%s5137_s9 + $0x718] sm:$0xf]  ;;  %4533 = vmatmul.msk.bf16.gmra.mxu0 %vm2157_vm0, %v5411_v36  ;;  %v4583_v60 = vld [vmem:[%s5137_s9 + $0xdc] sm:$0xf] }
 0x139   : > { %2814 = vmatpush.bf16.msra.mxu2 %v4519_v46  ;;  %2774 = vmatpush.bf16.msra.mxu0 %v4071_v35  ;;  %v2255_v46 = vadd.f32 %v5762_v6, %v2236_v59  ;;  %v2312_v1 = vadd.f32 %v5789_v61, %v2293_v22  ;;  %v5891_v63 = vpop.f32.mrf.mxu2  ;;  %v4787_v29 = vld [vmem:[%s5137_s9 + $0x734] sm:$0xf0]  ;;  %v4591_v6 = vld [vmem:[%s5137_s9 + $0x11c] sm:$0xf]  ;;  %v2219_v61 = vadd.f32 %v5705_v27, %v2200_v39 }
 0x13a   : > { %v3082_v58 = vmax.f32 %v3050_v11, 0.0  ;;  %v4295_v4 = vor.u32 %v4787_v29, %v4294_v19  ;;  %v3531_v9 = vor.u32 %v4591_v6, %v3528_v17  ;;  %v4006_v27 = vld [vmem:[%s5137_s9 + $0x4d8] sm:$0xf]  ;;  %2652 = vmatmul.bf16.gmra.mxu1 %v5313_v43  ;;  %2671 = vmatmul.bf16.gmra.mxu2 %v5318_v49  ;;  %v3499_v35 = vor.u32 %v4583_v60, %v3496_v31  ;;  %v3464_v51 = vld [vmem:[%s5137_s9 + $0xb8] sm:$0xf0] }
 0x13b   : > { %2829 = vmatpush.bf16.msra.mxu3 %v3627_v25  ;;  %v3563_v25 = vor.u32 %v4599_v10, %v3560_v55  ;;  %v5895_v16 = vpop.f32.mrf.mxu3  ;;  %v2330_v2 = vpop.f32.mrf.mxu0  ;;  %v3057_v12 = vadd.f32 %v5816_v38, %v2255_v46  ;;  %v4715_v14 = vld [vmem:[%s5137_s9 + $0x4f4] sm:$0xf0]  ;;  %v2238_v3 = vadd.f32 %v5709_v32, %v2219_v61  ;;  %v2314_v59 = vadd.f32 %v5825_v47, %v2295_v13  ;;  %v3432_v13 = vld [vmem:[%s5137_s9 + $0x78] sm:$0xf0] }
 0x13c   : > { %v3109_v0 = vpack.c.bf16 %v3082_v58, %v3081_v45  ;;  %v2331_v7 = vadd.f32 %v2330_v2, %v2312_v1  ;;  %2794 = vmatpush.bf16.msra.mxu1 %v4295_v4  ;;  %v4262_v21 = vld [vmem:[%s5137_s9 + $0x6d8] sm:$0xf]  ;;  %2690 = vmatmul.bf16.gmra.mxu3 %v5320_v50 }
 0x13d   : > { %2815 = vmatpush.bf16.msra.mxu2 %v4487_v42  ;;  %2775 = vmatpush.bf16.msra.mxu0 %v4039_v5  ;;  %v4779_v22 = vld [vmem:[%s5137_s9 + $0x6f4] sm:$0xf0]  ;;  %v3089_v24 = vmax.f32 %v3057_v12, 0.0  ;;  %v2257_v32 = vadd.f32 %v5791_v62, %v2238_v3  ;;  %v4575_v62 = vld [vmem:[%s5137_s9 + $0x9c] sm:$0xf] }
 0x13e   : > { %3125 = vst [vmem:[%s5874_s29 + $0x20] sm:$0xff] %v3109_v0  ;;  %v2350_v20 = vadd.f32 %v2349_v18, %v2331_v7  ;;  %v4454_v23 = vld [vmem:[%s5137_s9 + $0x858] sm:$0xf]  ;;  %v4263_v30 = vor.u32 %v4779_v22, %v4262_v21  ;;  %v2351_v58 = vpop.f32.mrf.mxu1  ;;  %v3467_v2 = vor.u32 %v4575_v62, %v3464_v51  ;;  %v4567_v12 = vld [vmem:[%s5137_s9 + $0x5c] sm:$0xf] }
 0x13f   : > { %2830 = vmatpush.bf16.msra.mxu3 %v3595_v15  ;;  %v4007_v15 = vor.u32 %v4715_v14, %v4006_v27  ;;  %v4827_v28 = vld [vmem:[%s5137_s9 + $0x874] sm:$0xf0]  ;;  %v3065_v5 = vadd.f32 %v5816_v38, %v2257_v32  ;;  %v4807_v32 = vld [vmem:[%s5137_s9 + $0x7dc] sm:$0xf] }
 0x140   : > { %v3058_v40 = vadd.f32 %v5831_v44, %v2350_v20  ;;  %v4455_v34 = vor.u32 %v4827_v28, %v4454_v23  ;;  %2795 = vmatpush.bf16.msra.mxu1 %v4263_v30  ;;  %v3974_v37 = vld [vmem:[%s5137_s9 + $0x498] sm:$0xf]  ;;  %v3435_v20 = vor.u32 %v4567_v12, %v3432_v13  ;;  %v4559_v28 = vld [vmem:[%s5137_s9 + $0x1c] sm:$0xf] }
 0x141   : > { %2776 = vmatpush.bf16.msra.mxu0 %v4007_v15  ;;  %v5923_v42 = vpop.f32.mrf.mxu2  ;;  %v4707_v10 = vld [vmem:[%s5137_s9 + $0x4b4] sm:$0xf0]  ;;  %v3097_v27 = vmax.f32 %v3065_v5, 0.0  ;;  %v4520_v62 = vld [vmem:[%s5137_s9 + $0x8f8] sm:$0xf0] }
 0x142   : > { %v3090_v11 = vmax.f32 %v3058_v40, 0.0  ;;  %2816 = vmatpush.bf16.msra.mxu2 %v4455_v34  ;;  %v4230_v45 = vld [vmem:[%s5137_s9 + $0x698] sm:$0xf]  ;;  %v4360_v51 = vld [vmem:[%s5137_s9 + $0x7b8] sm:$0xf0] }
 0x143   : > { %2831 = vmatpush.bf16.msra.mxu3 %v3563_v25  ;;  %v5927_v55 = vpop.f32.mrf.mxu3  ;;  %v2332_v39 = vpop.f32.mrf.mxu0  ;;  %v3975_v25 = vor.u32 %v4707_v10, %v3974_v37  ;;  %v4771_v46 = vld [vmem:[%s5137_s9 + $0x6b4] sm:$0xf0]  ;;  %v4679_v37 = vld [vmem:[%s5137_s9 + $0x3dc] sm:$0xf] }
 0x144   : > { %v3113_v47 = vpack.c.bf16 %v3090_v11, %v3089_v24  ;;  %v2333_v1 = vadd.f32 %v2332_v39, %v2314_v59  ;;  %v4231_v33 = vor.u32 %v4771_v46, %v4230_v45  ;;  %v3942_v29 = vld [vmem:[%s5137_s9 + $0x458] sm:$0xf]  ;;  %v4392_v59 = vld [vmem:[%s5137_s9 + $0x7f8] sm:$0xf0] }
 0x145   : > { %2777 = vmatpush.bf16.msra.mxu0 %v3975_v25  ;;  %v4699_v6 = vld [vmem:[%s5137_s9 + $0x474] sm:$0xf0]  ;;  %v4395_v11 = vor.u32 %v4807_v32, %v4392_v59  ;;  %v3880_v10 = vld [vmem:[%s5137_s9 + $0x3f8] sm:$0xf0] }
 0x146   : > { %3129 = vst [vmem:[%s5874_s29 + $0x40] sm:$0xff] %v3113_v47  ;;  %v2352_v19 = vadd.f32 %v2351_v58, %v2333_v1  ;;  %2796 = vmatpush.bf16.msra.mxu1 %v4231_v33  ;;  %v4422_v61 = vld [vmem:[%s5137_s9 + $0x818] sm:$0xf]  ;;  %v3943_v7 = vor.u32 %v4699_v6, %v3942_v29  ;;  %v5955_v31 = vpop.f32.mrf.mxu1  ;;  %v4743_v39 = vld [vmem:[%s5137_s9 + $0x5dc] sm:$0xf]  ;;  %v3883_v25 = vor.u32 %v4679_v37, %v3880_v10 }
 0x147   : > { %2832 = vmatpush.bf16.msra.mxu3 %v3531_v9  ;;  %v4819_v0 = vld [vmem:[%s5137_s9 + $0x834] sm:$0xf0]  ;;  %v4136_v45 = vld [vmem:[%s5137_s9 + $0x5f8] sm:$0xf0] }
 0x148   : > { %v4198_v18 = vld [vmem:[%s5137_s9 + $0x658] sm:$0xf]  ;;  %v3066_v4 = vadd.f32 %v5831_v44, %v2352_v19  ;;  %v4423_v17 = vor.u32 %v4819_v0, %v4422_v61  ;;  %2704 = vmatmul.bf16.vlgmr.msrb.gmra.mxu0 %v5257_v57  ;;  %v4839_v46 = vld [vmem:[%s5137_s9 + $0x8dc] sm:$0xf]  ;;  %v4139_v47 = vor.u32 %v4743_v39, %v4136_v45 }
 0x149   : > { %v4763_v9 = vld [vmem:[%s5137_s9 + $0x674] sm:$0xf0]  ;;  %2778 = vmatpush.bf16.msra.mxu0 %v3943_v7  ;;  %v5944_v15 = vpop.f32.mrf.mxu2  ;;  %v4523_v1 = vor.u32 %v4839_v46, %v4520_v62  ;;  %v4799_v33 = vld [vmem:[%s5137_s9 + $0x79c] sm:$0xf] }
 0x14a   : > { %v4199_v38 = vor.u32 %v4763_v9, %v4198_v18  ;;  %v3098_v14 = vmax.f32 %v3066_v4, 0.0  ;;  %2817 = vmatpush.bf16.msra.mxu2 %v4423_v17  ;;  %v3910_v21 = vld [vmem:[%s5137_s9 + $0x418] sm:$0xf]  ;;  %4534 = vmatmul.msk.bf16.vlgmr.msrb.gmra.mxu1 %vm2157_vm0, %v5366_v41  ;;  %v4363_v29 = vor.u32 %v4799_v33, %v4360_v51  ;;  %v3848_v6 = vld [vmem:[%s5137_s9 + $0x3b8] sm:$0xf0] }
 0x14b   : > { %2833 = vmatpush.bf16.msra.mxu3 %v3499_v35  ;;  %v4691_v44 = vld [vmem:[%s5137_s9 + $0x434] sm:$0xf0]  ;;  %v5948_v22 = vpop.f32.mrf.mxu3  ;;  %v5950_v60 = vpop.f32.mrf.mxu0  ;;  %v3400_v35 = vld [vmem:[%s5137_s9 + $0x38] sm:$0xf0]  ;;  %2742 = vmatmul.bf16.vlgmr.msrb.gmra.mxu2 %v5246_v48 }
 0x14c   : > { %2797 = vmatpush.bf16.msra.mxu1 %v4199_v38  ;;  %v3911_v3 = vor.u32 %v4691_v44, %v3910_v21  ;;  %v4166_v40 = vld [vmem:[%s5137_s9 + $0x618] sm:$0xf]  ;;  %v3117_v30 = vpack.c.bf16 %v3098_v14, %v3097_v27  ;;  %v3403_v24 = vor.u32 %v4559_v28, %v3400_v35  ;;  %2761 = vmatmul.bf16.vlgmr.msrb.gmra.mxu3 %v5251_v53  ;;  %v4735_v61 = vld [vmem:[%s5137_s9 + $0x59c] sm:$0xf] }
 0x14d   : > { %v4755_v23 = vld [vmem:[%s5137_s9 + $0x634] sm:$0xf0]  ;;  %v4104_v0 = vld [vmem:[%s5137_s9 + $0x5b8] sm:$0xf0] }
 0x14e   : > { %v4167_v34 = vor.u32 %v4755_v23, %v4166_v40  ;;  %2779 = vmatpush.bf16.msra.mxu0 %v3911_v3  ;;  %3133 = vst [vmem:[%s5874_s29 + $0x60] sm:$0xff] %v3117_v30  ;;  %2886 = vmatpush.bf16.msrb.mxu2 %v4395_v11  ;;  %v5984_v7 = vpop.f32.mrf.mxu1  ;;  %v4107_v4 = vor.u32 %v4735_v61, %v4104_v0  ;;  %v4791_v17 = vld [vmem:[%s5137_s9 + $0x75c] sm:$0xf] }
 0x14f   : > { %2834 = vmatpush.bf16.msra.mxu3 %v3467_v2  ;;  %v4671_v2 = vld [vmem:[%s5137_s9 + $0x39c] sm:$0xf] }
 0x150   : > { %2798 = vmatpush.bf16.msra.mxu1 %v4167_v34  ;;  %v3851_v18 = vor.u32 %v4671_v2, %v3848_v6  ;;  %v4328_v9 = vld [vmem:[%s5137_s9 + $0x778] sm:$0xf0] }
 0x151   : > { %v5972_v58 = vpop.f32.mrf.mxu2  ;;  %v4663_v12 = vld [vmem:[%s5137_s9 + $0x35c] sm:$0xf]  ;;  %v4331_v13 = vor.u32 %v4791_v17, %v4328_v9 }
 0x152   : > { %2848 = vmatpush.bf16.msrb.mxu0 %v3883_v25  ;;  %2887 = vmatpush.bf16.msrb.mxu2 %v4363_v29  ;;  %v3816_v38 = vld [vmem:[%s5137_s9 + $0x378] sm:$0xf0] }
 0x153   : > { %2835 = vmatpush.bf16.msra.mxu3 %v3435_v20  ;;  %v5977_v5 = vpop.f32.mrf.mxu3  ;;  %v5979_v19 = vpop.f32.mrf.mxu0  ;;  %v4727_v20 = vld [vmem:[%s5137_s9 + $0x55c] sm:$0xf]  ;;  %v3819_v27 = vor.u32 %v4663_v12, %v3816_v38 }
 0x154   : > { %2867 = vmatpush.bf16.msrb.mxu1 %v4139_v47  ;;  %v4072_v14 = vld [vmem:[%s5137_s9 + $0x578] sm:$0xf0] }
 0x155   : > { %v4075_v21 = vor.u32 %v4727_v20, %v4072_v14  ;;  %v4783_v3 = vld [vmem:[%s5137_s9 + $0x71c] sm:$0xf] }
 0x156   : > { %2849 = vmatpush.bf16.msrb.mxu0 %v3851_v18  ;;  %2888 = vmatpush.bf16.msrb.mxu2 %v4331_v13  ;;  %v4296_v40 = vld [vmem:[%s5137_s9 + $0x738] sm:$0xf0]  ;;  %v6004_v59 = vpop.f32.mrf.mxu1 }
 0x157   : > { %2836 = vmatpush.bf16.msra.mxu3 %v3403_v24  ;;  %v4655_v23 = vld [vmem:[%s5137_s9 + $0x31c] sm:$0xf]  ;;  %v4299_v34 = vor.u32 %v4783_v3, %v4296_v40 }
 0x158   : > { %2868 = vmatpush.bf16.msrb.mxu1 %v4107_v4  ;;  %v3784_v35 = vld [vmem:[%s5137_s9 + $0x338] sm:$0xf0]  ;;  %2709 = vmatmul.bf16.gmra.mxu0 %v5325_v56 }
 0x159   : > { %v5992_v44 = vpop.f32.mrf.mxu2  ;;  %v4719_v24 = vld [vmem:[%s5137_s9 + $0x51c] sm:$0xf]  ;;  %v3787_v11 = vor.u32 %v4655_v23, %v3784_v35 }
 0x15a   : > { %2850 = vmatpush.bf16.msrb.mxu0 %v3819_v27  ;;  %v4040_v32 = vld [vmem:[%s5137_s9 + $0x538] sm:$0xf0]  ;;  %2889 = vmatpush.bf16.msrb.mxu2 %v4299_v34 }
 0x15b   : > { %2909 = vmatpush.bf16.msrb.mxu3 %v4523_v1  ;;  %v5997_v28 = vpop.f32.mrf.mxu3  ;;  %v5999_v30 = vpop.f32.mrf.mxu0  ;;  %v4831_v37 = vld [vmem:[%s5137_s9 + $0x89c] sm:$0xf]  ;;  %v4043_v39 = vor.u32 %v4719_v24, %v4040_v32  ;;  %4535 = vmatmul.msk.bf16.gmra.mxu1 %vm2157_vm0, %v5411_v36 }
 0x15c   : > { %2869 = vmatpush.bf16.msrb.mxu1 %v4075_v21  ;;  %v4488_v10 = vld [vmem:[%s5137_s9 + $0x8b8] sm:$0xf0]  ;;  %2747 = vmatmul.bf16.gmra.mxu2 %v5313_v43 }
 0x15d   : > { %v4491_v25 = vor.u32 %v4831_v37, %v4488_v10  ;;  %v4775_v45 = vld [vmem:[%s5137_s9 + $0x6dc] sm:$0xf]  ;;  %2766 = vmatmul.bf16.gmra.mxu3 %v5318_v49 }
 0x15e   : > { %v4264_v46 = vld [vmem:[%s5137_s9 + $0x6f8] sm:$0xf0]  ;;  %2851 = vmatpush.bf16.msrb.mxu0 %v3787_v11  ;;  %v6031_v20 = vpop.f32.mrf.mxu1 }
 0x15f   : > { %v4647_v62 = vld [vmem:[%s5137_s9 + $0x2dc] sm:$0xf]  ;;  %v4267_v47 = vor.u32 %v4775_v45, %v4264_v46  ;;  %2910 = vmatpush.bf16.msrb.mxu3 %v4491_v25 }
 0x160   : > { %v3752_v1 = vld [vmem:[%s5137_s9 + $0x2f8] sm:$0xf0]  ;;  %2870 = vmatpush.bf16.msrb.mxu1 %v4043_v39  ;;  %v2383_v39 = vadd.f32 %v5862_v26, %v5858_v52 }
 0x161   : > { %v4711_v33 = vld [vmem:[%s5137_s9 + $0x4dc] sm:$0xf]  ;;  %v3755_v51 = vor.u32 %v4647_v62, %v3752_v1  ;;  %v6019_v6 = vpop.f32.mrf.mxu2  ;;  %2890 = vmatpush.bf16.msrb.mxu2 %v4267_v47 }
 0x162   : > { %v4008_v2 = vld [vmem:[%s5137_s9 + $0x4f8] sm:$0xf0]  ;;  %v2402_v1 = vadd.f32 %v5950_v60, %v2383_v39 }
 0x163   : > { %v4011_v29 = vor.u32 %v4711_v33, %v4008_v2  ;;  %v4767_v61 = vld [vmem:[%s5137_s9 + $0x69c] sm:$0xf]  ;;  %v6024_v4 = vpop.f32.mrf.mxu3  ;;  %v6026_v17 = vpop.f32.mrf.mxu0  ;;  %2852 = vmatpush.bf16.msrb.mxu0 %v3755_v51 }
 0x164   : > { %v4232_v0 = vld [vmem:[%s5137_s9 + $0x6b8] sm:$0xf0]  ;;  %v2421_v60 = vadd.f32 %v5955_v31, %v2402_v1 }
 0x165   : > { %v4639_v18 = vld [vmem:[%s5137_s9 + $0x29c] sm:$0xf]  ;;  %v4235_v9 = vor.u32 %v4767_v61, %v4232_v0  ;;  %2871 = vmatpush.bf16.msrb.mxu1 %v4011_v29 }
 0x166   : > { %v3720_v12 = vld [vmem:[%s5137_s9 + $0x2b8] sm:$0xf0]  ;;  %v2496_v52 = vpop.f32.mrf.mxu1 }
 0x167   : > { %v4703_v13 = vld [vmem:[%s5137_s9 + $0x49c] sm:$0xf]  ;;  %v3723_v27 = vor.u32 %v4639_v18, %v3720_v12  ;;  %2891 = vmatpush.bf16.msrb.mxu2 %v4235_v9 }
 0x168   : > { %v3976_v38 = vld [vmem:[%s5137_s9 + $0x4b8] sm:$0xf0]  ;;  %2780 = vmatmul.bf16.vlgmr.msra.gmra.mxu0 %v5253_v54 }
 0x169   : > { %v4823_v14 = vld [vmem:[%s5137_s9 + $0x85c] sm:$0xf]  ;;  %v3979_v3 = vor.u32 %v4703_v13, %v3976_v38  ;;  %2853 = vmatpush.bf16.msrb.mxu0 %v3723_v27  ;;  %v6043_v45 = vpop.f32.mrf.mxu2  ;;  %v2385_v27 = vadd.f32 %v5895_v16, %v5891_v63 }
 0x16a   : > { %v4456_v21 = vld [vmem:[%s5137_s9 + $0x878] sm:$0xf0] }
 0x16b   : > { %v4459_v40 = vor.u32 %v4823_v14, %v4456_v21  ;;  %v4759_v23 = vld [vmem:[%s5137_s9 + $0x65c] sm:$0xf]  ;;  %2872 = vmatpush.bf16.msrb.mxu1 %v3979_v3  ;;  %v6049_v33 = vpop.f32.mrf.mxu3  ;;  %v2477_v51 = vpop.f32.mrf.mxu0  ;;  %v6067_v14 = vperm.slane %v5799_v8, 2  ;;  %v2404_v31 = vadd.f32 %v5979_v19, %v2385_v27 }
 0x16c   : > { %v4200_v34 = vld [vmem:[%s5137_s9 + $0x678] sm:$0xf0]  ;;  %v2478_v13 = vadd.f32 %v2477_v51, %v5977_v5  ;;  %2799 = vmatmul.bf16.vlgmr.msra.gmra.mxu1 %v5257_v57  ;;  %4536 = vmatmul.msk.bf16.vlgmr.msra.gmra.mxu2 %vm2157_vm0, %v5366_v41  ;;  %v2440_v5 = vadd.f32 %v5972_v58, %v2421_v60 }
 0x16d   : > { %v4631_v35 = vld [vmem:[%s5137_s9 + $0x25c] sm:$0xf]  ;;  %v4203_v24 = vor.u32 %v4759_v23, %v4200_v34  ;;  %2911 = vmatpush.bf16.msrb.mxu3 %v4459_v40  ;;  %v3028_v34 = vperm.slane %v5799_v8, 3  ;;  %v2423_v16 = vadd.f32 %v5984_v7, %v2404_v31 }
 0x16e   : > { %v3688_v32 = vld [vmem:[%s5137_s9 + $0x278] sm:$0xf0]  ;;  %2837 = vmatmul.bf16.vlgmr.msra.gmra.mxu3 %v5246_v48  ;;  %v2497_v21 = vadd.f32 %v2496_v52, %v2478_v13  ;;  %v2498_v48 = vpop.f32.mrf.mxu1 }
 0x16f   : > { %v4695_v11 = vld [vmem:[%s5137_s9 + $0x45c] sm:$0xf]  ;;  %v3691_v37 = vor.u32 %v4631_v35, %v3688_v32  ;;  %2892 = vmatpush.bf16.msrb.mxu2 %v4203_v24  ;;  %v3043_v24 = vadd.f32 %v6067_v14, %v2440_v5  ;;  %v2442_v19 = vadd.f32 %v5992_v44, %v2423_v16  ;;  %v2390_v44 = vadd.f32 %v5948_v22, %v5944_v15 }
 0x170   : > { %v3944_v10 = vld [vmem:[%s5137_s9 + $0x478] sm:$0xf0] }
 0x171   : > { %v3947_v25 = vor.u32 %v4695_v11, %v3944_v10  ;;  %v4815_v46 = vld [vmem:[%s5137_s9 + $0x81c] sm:$0xf]  ;;  %2854 = vmatpush.bf16.msrb.mxu0 %v3691_v37  ;;  %v2515_v3 = vpop.f32.mrf.mxu2  ;;  %v2388_v11 = vadd.f32 %v5927_v55, %v5923_v42  ;;  %v3075_v37 = vmax.f32 %v3043_v24, 0.0 }
 0x172   : > { %v4424_v62 = vld [vmem:[%s5137_s9 + $0x838] sm:$0xf0]  ;;  %v2516_v40 = vadd.f32 %v2515_v3, %v2497_v21 }
 0x173   : > { %v4751_v47 = vld [vmem:[%s5137_s9 + $0x61c] sm:$0xf]  ;;  %v4427_v2 = vor.u32 %v4815_v46, %v4424_v62  ;;  %2873 = vmatpush.bf16.msrb.mxu1 %v3947_v25  ;;  %v2534_v23 = vpop.f32.mrf.mxu3  ;;  %v2479_v35 = vpop.f32.mrf.mxu0  ;;  %v2407_v46 = vadd.f32 %v5999_v30, %v2388_v11 }
 0x174   : > { %v4168_v29 = vld [vmem:[%s5137_s9 + $0x638] sm:$0xf0]  ;;  %v2535_v32 = vadd.f32 %v2534_v23, %v2516_v40  ;;  %v2480_v63 = vadd.f32 %v2479_v35, %v5997_v28 }
 0x175   : > { %v4623_v61 = vld [vmem:[%s5137_s9 + $0x21c] sm:$0xf]  ;;  %v4171_v26 = vor.u32 %v4751_v47, %v4168_v29  ;;  %2912 = vmatpush.bf16.msrb.mxu3 %v4427_v2  ;;  %v3051_v2 = vadd.f32 %v6067_v14, %v2442_v19  ;;  %v2426_v42 = vadd.f32 %v6004_v59, %v2407_v46  ;;  %v2409_v59 = vadd.f32 %v6026_v17, %v2390_v44 }
 0x176   : > { %v3656_v0 = vld [vmem:[%s5137_s9 + $0x238] sm:$0xf0]  ;;  %v3044_v58 = vadd.f32 %v3028_v34, %v2535_v32  ;;  %v2499_v39 = vadd.f32 %v2498_v48, %v2480_v63  ;;  %v2501_v28 = vpop.f32.mrf.mxu1 }
 0x177   : > { %v3659_v18 = vor.u32 %v4623_v61, %v3656_v0  ;;  %v4687_v9 = vld [vmem:[%s5137_s9 + $0x41c] sm:$0xf]  ;;  %2893 = vmatpush.bf16.msrb.mxu2 %v4171_v26  ;;  %v3083_v30 = vmax.f32 %v3051_v2, 0.0  ;;  %v2445_v61 = vadd.f32 %v6019_v6, %v2426_v42  ;;  %v2428_v22 = vadd.f32 %v6031_v20, %v2409_v59 }
 0x178   : > { %v3912_v12 = vld [vmem:[%s5137_s9 + $0x438] sm:$0xf0]  ;;  %v3076_v10 = vmax.f32 %v3044_v58, 0.0  ;;  %2785 = vmatmul.bf16.gmra.mxu0 %v5320_v50 }
 0x179   : > { %v3915_v38 = vor.u32 %v4687_v9, %v3912_v12  ;;  %2855 = vmatpush.bf16.msrb.mxu0 %v3659_v18  ;;  %v2517_v25 = vpop.f32.mrf.mxu2  ;;  %v2447_v27 = vadd.f32 %v6043_v45, %v2428_v22 }
 0x17a   : > { %v3106_v62 = vpack.c.bf16 %v3076_v10, %v3075_v37  ;;  %v2518_v47 = vadd.f32 %v2517_v25, %v2499_v39 }
 0x17b   : > { %2874 = vmatpush.bf16.msrb.mxu1 %v3915_v38  ;;  %v2536_v1 = vpop.f32.mrf.mxu3  ;;  %v2482_v51 = vpop.f32.mrf.mxu0  ;;  %v3059_v38 = vadd.f32 %v6067_v14, %v2445_v61  ;;  %v3067_v48 = vadd.f32 %v6067_v14, %v2447_v27 }
 0x17c   : > { %3122 = vst [vmem:[%s5874_s29 + $0x8] sm:$0xff] %v3106_v62  ;;  %v2537_v7 = vadd.f32 %v2536_v1, %v2518_v47  ;;  %v2483_v29 = vadd.f32 %v2482_v51, %v6024_v4  ;;  %2804 = vmatmul.bf16.gmra.mxu1 %v5325_v56  ;;  %4537 = vmatmul.msk.bf16.gmra.mxu2 %vm2157_vm0, %v5411_v36 }
 0x17d   : > { %v3091_v60 = vmax.f32 %v3059_v38, 0.0  ;;  %v3099_v45 = vmax.f32 %v3067_v48, 0.0  ;;  %v3030_v38 = vperm.slane %v5799_v8, 5 }
 0x17e   : > { %v3052_v55 = vadd.f32 %v3028_v34, %v2537_v7  ;;  %2842 = vmatmul.bf16.gmra.mxu3 %v5313_v43  ;;  %v2502_v0 = vadd.f32 %v2501_v28, %v2483_v29  ;;  %v2503_v13 = vpop.f32.mrf.mxu1 }
 0x180   : > { %v3084_v4 = vmax.f32 %v3052_v55, 0.0 }
 0x181   : > { %v2520_v52 = vpop.f32.mrf.mxu2 }
 0x182   : > { %v3110_v26 = vpack.c.bf16 %v3084_v4, %v3083_v30  ;;  %v2521_v18 = vadd.f32 %v2520_v52, %v2502_v0  ;;  %v3029_v0 = vperm.slane %v5799_v8, 4 }
 0x183   : > { %v2539_v9 = vpop.f32.mrf.mxu3  ;;  %v2484_v12 = vpop.f32.mrf.mxu0 }
 0x184   : > { %3126 = vst [vmem:[%s5874_s29 + $0x28] sm:$0xff] %v3110_v26  ;;  %v2540_v15 = vadd.f32 %v2539_v9, %v2521_v18  ;;  %v2485_v43 = vadd.f32 %v2484_v12, %v6049_v33 }
 0x186   : > { %v3060_v6 = vadd.f32 %v3028_v34, %v2540_v15  ;;  %v2504_v17 = vadd.f32 %v2503_v13, %v2485_v43  ;;  %v2572_v35 = vpop.f32.mrf.mxu1 }
 0x188   : > { %v3092_v5 = vmax.f32 %v3060_v6, 0.0  ;;  %2856 = vmatmul.bf16.vlgmr.msrb.gmra.mxu0 %v5251_v53 }
 0x189   : > { %v2522_v21 = vpop.f32.mrf.mxu2 }
 0x18a   : > { %v3114_v3 = vpack.c.bf16 %v3092_v5, %v3091_v60  ;;  %v2523_v31 = vadd.f32 %v2522_v21, %v2504_v17 }
 0x18b   : > { %v2541_v40 = vpop.f32.mrf.mxu3  ;;  %v2553_v23 = vpop.f32.mrf.mxu0 }
 0x18c   : > { %3130 = vst [vmem:[%s5874_s29 + $0x48] sm:$0xff] %v3114_v3  ;;  %v2542_v24 = vadd.f32 %v2541_v40, %v2523_v31  ;;  %2875 = vmatmul.bf16.vlgmr.msrb.gmra.mxu1 %v5253_v54  ;;  %2894 = vmatmul.bf16.vlgmr.msrb.gmra.mxu2 %v5257_v57  ;;  %v2573_v2 = vadd.f32 %v2572_v35, %v2553_v23 }
 0x18e   : > { %v3068_v20 = vadd.f32 %v3028_v34, %v2542_v24  ;;  %4538 = vmatmul.msk.bf16.vlgmr.msrb.gmra.mxu3 %vm2157_vm0, %v5366_v41  ;;  %v2574_v11 = vpop.f32.mrf.mxu1 }
 0x190   : > { %v3100_v33 = vmax.f32 %v3068_v20, 0.0 }
 0x191   : > { %v2591_v32 = vpop.f32.mrf.mxu2 }
 0x192   : > { %v3118_v63 = vpack.c.bf16 %v3100_v33, %v3099_v45  ;;  %v2592_v42 = vadd.f32 %v2591_v32, %v2573_v2 }
 0x193   : > { %v2610_v16 = vpop.f32.mrf.mxu3  ;;  %v2555_v58 = vpop.f32.mrf.mxu0 }
 0x194   : > { %3134 = vst [vmem:[%s5874_s29 + $0x68] sm:$0xff] %v3118_v63  ;;  %v2611_v30 = vadd.f32 %v2610_v16, %v2592_v42  ;;  %v2575_v61 = vadd.f32 %v2574_v11, %v2555_v58 }
 0x196   : > { %v2577_v53 = vpop.f32.mrf.mxu1 }
 0x198   : > { %2861 = vmatmul.bf16.gmra.mxu0 %v5318_v49 }
 0x199   : > { %v2593_v14 = vpop.f32.mrf.mxu2 }
 0x19a   : > { %v2594_v9 = vadd.f32 %v2593_v14, %v2575_v61 }
 0x19b   : > { %v2612_v37 = vpop.f32.mrf.mxu3  ;;  %v2558_v19 = vpop.f32.mrf.mxu0 }
 0x19c   : > { %2880 = vmatmul.bf16.gmra.mxu1 %v5320_v50  ;;  %2899 = vmatmul.bf16.gmra.mxu2 %v5325_v56  ;;  %v2613_v6 = vadd.f32 %v2612_v37, %v2594_v9  ;;  %v2578_v27 = vadd.f32 %v2577_v53, %v2558_v19 }
 0x19e   : > { %4539 = vmatmul.msk.bf16.gmra.mxu3 %vm2157_vm0, %v5411_v36  ;;  %v2579_v34 = vpop.f32.mrf.mxu1 }
 0x1a1   : > { %v2596_v54 = vpop.f32.mrf.mxu2 }
 0x1a2   : > { %v2597_v35 = vadd.f32 %v2596_v54, %v2578_v27 }
 0x1a3   : > { %v2615_v57 = vpop.f32.mrf.mxu3  ;;  %v2560_v41 = vpop.f32.mrf.mxu0 }
 0x1a4   : > { %v2616_v32 = vadd.f32 %v2615_v57, %v2597_v35  ;;  %v2580_v16 = vadd.f32 %v2579_v34, %v2560_v41 }
 0x1a7   : > { %v2648_v46 = vpop.f32.mrf.mxu1 }
 0x1a9   : > { %v2598_v10 = vpop.f32.mrf.mxu2 }
 0x1ab   : > { %v6109_v39 = vpop.f32.mrf.mxu3  ;;  %v2629_v25 = vpop.f32.mrf.mxu0 }
 0x1ac   : > { %v2630_v4 = vadd.f32 %v2629_v25, %v2611_v30 }
 0x1ae   : > { %v3045_v15 = vadd.f32 %v3029_v0, %v2630_v4 }
 0x1af   : > { %v2650_v49 = vpop.f32.mrf.mxu1 }
 0x1b0   : > { %v3077_v5 = vmax.f32 %v3045_v15, 0.0 }
 0x1b1   : > { %v2667_v62 = vpop.f32.mrf.mxu2 }
 0x1b2   : > { %v2668_v44 = vadd.f32 %v2667_v62, %v2648_v46  ;;  %v2599_v46 = vadd.f32 %v2598_v10, %v2580_v16 }
 0x1b3   : > { %v2686_v47 = vpop.f32.mrf.mxu3  ;;  %v2631_v1 = vpop.f32.mrf.mxu0 }
 0x1b4   : > { %v2687_v52 = vadd.f32 %v2686_v47, %v2668_v44  ;;  %v2632_v17 = vadd.f32 %v2631_v1, %v2613_v6  ;;  %v2618_v57 = vadd.f32 %v6109_v39, %v2599_v46 }
 0x1b6   : > { %v3053_v20 = vadd.f32 %v3029_v0, %v2632_v17 }
 0x1b7   : > { %v2653_v56 = vpop.f32.mrf.mxu1 }
 0x1b8   : > { %v3085_v58 = vmax.f32 %v3053_v20, 0.0 }
 0x1b9   : > { %v2669_v51 = vpop.f32.mrf.mxu2 }
 0x1ba   : > { %v2670_v43 = vadd.f32 %v2669_v51, %v2650_v49 }
 0x1bb   : > { %v2688_v50 = vpop.f32.mrf.mxu3  ;;  %v2634_v28 = vpop.f32.mrf.mxu0 }
 0x1bc   : > { %v2689_v21 = vadd.f32 %v2688_v50, %v2670_v43  ;;  %v2635_v11 = vadd.f32 %v2634_v28, %v2616_v32 }
 0x1be   : > { %v3061_v1 = vadd.f32 %v3029_v0, %v2635_v11 }
 0x1bf   : > { %v2655_v55 = vpop.f32.mrf.mxu1 }
 0x1c0   : > { %v3093_v41 = vmax.f32 %v3061_v1, 0.0 }
 0x1c1   : > { %v2672_v7 = vpop.f32.mrf.mxu2 }
 0x1c2   : > { %v2673_v45 = vadd.f32 %v2672_v7, %v2653_v56 }
 0x1c3   : > { %v2691_v36 = vpop.f32.mrf.mxu3  ;;  %v2636_v29 = vpop.f32.mrf.mxu0 }
 0x1c4   : > { %v2692_v14 = vadd.f32 %v2691_v36, %v2673_v45  ;;  %v2637_v34 = vadd.f32 %v2636_v29, %v2618_v57 }
 0x1c6   : > { %v3069_v30 = vadd.f32 %v3029_v0, %v2637_v34 }
 0x1c7   : > { %v2724_v13 = vpop.f32.mrf.mxu1 }
 0x1c8   : > { %v3101_v4 = vmax.f32 %v3069_v30, 0.0 }
 0x1c9   : > { %v2674_v59 = vpop.f32.mrf.mxu2 }
 0x1ca   : > { %v2675_v49 = vadd.f32 %v2674_v59, %v2655_v55 }
 0x1cb   : > { %v2693_v26 = vpop.f32.mrf.mxu3  ;;  %v2705_v18 = vpop.f32.mrf.mxu0 }
 0x1cc   : > { %v2706_v12 = vadd.f32 %v2705_v18, %v2687_v52  ;;  %v2694_v28 = vadd.f32 %v2693_v26, %v2675_v49 }
 0x1ce   : > { %v2725_v22 = vadd.f32 %v2724_v13, %v2706_v12 }
 0x1cf   : > { %v2726_v8 = vpop.f32.mrf.mxu1 }
 0x1d0   : > { %v3046_v60 = vadd.f32 %v3030_v38, %v2725_v22 }
 0x1d1   : > { %v6113_v31 = vpop.f32.mrf.mxu2 }
 0x1d2   : > { %v3078_v3 = vmax.f32 %v3046_v60, 0.0 }
 0x1d3   : > { %v6115_v40 = vpop.f32.mrf.mxu3  ;;  %v2707_v23 = vpop.f32.mrf.mxu0 }
 0x1d4   : > { %v3107_v48 = vpack.c.bf16 %v3078_v3, %v3077_v5  ;;  %v2708_v24 = vadd.f32 %v2707_v23, %v2689_v21  ;;  %v2763_v17 = vadd.f32 %v6115_v40, %v6113_v31 }
 0x1d6   : > { %3123 = vst [vmem:[%s5874_s29 + $0x10] sm:$0xff] %v3107_v48  ;;  %v2727_v33 = vadd.f32 %v2726_v8, %v2708_v24 }
 0x1d8   : > { %v3054_v63 = vadd.f32 %v3030_v38, %v2727_v33  ;;  %v2729_v47 = vpop.f32.mrf.mxu1  ;;  %v4910_v33 = vld [vmem:[%s5145_s10] sm:$0xff] }
 0x1d9   : > { %v2745_v19 = vpop.f32.mrf.mxu2  ;;  %v3031_v32 = vperm.slane %v4910_v33, 6 }
 0x1da   : > { %v3086_v37 = vmax.f32 %v3054_v63, 0.0 }
 0x1db   : > { %v2764_v53 = vpop.f32.mrf.mxu3  ;;  %v2710_v25 = vpop.f32.mrf.mxu0 }
 0x1dc   : > { %v3111_v54 = vpack.c.bf16 %v3086_v37, %v3085_v58  ;;  %v2711_v62 = vadd.f32 %v2710_v25, %v2692_v14  ;;  %v2765_v20 = vadd.f32 %v2764_v53, %v2745_v19  ;;  %v3032_v37 = vperm.slane %v4910_v33, 7 }
 0x1de   : > { %3127 = vst [vmem:[%s5874_s29 + $0x30] sm:$0xff] %v3111_v54  ;;  %v2730_v51 = vadd.f32 %v2729_v47, %v2711_v62 }
 0x1e0   : > { %v3062_v50 = vadd.f32 %v3030_v38, %v2730_v51  ;;  %v2731_v44 = vpop.f32.mrf.mxu1 }
 0x1e1   : > { %v2748_v2 = vpop.f32.mrf.mxu2 }
 0x1e2   : > { %v3094_v56 = vmax.f32 %v3062_v50, 0.0 }
 0x1e3   : > { %v2767_v7 = vpop.f32.mrf.mxu3  ;;  %v2712_v36 = vpop.f32.mrf.mxu0 }
 0x1e4   : > { %v3115_v10 = vpack.c.bf16 %v3094_v56, %v3093_v41  ;;  %v2713_v42 = vadd.f32 %v2712_v36, %v2694_v28  ;;  %v2768_v1 = vadd.f32 %v2767_v7, %v2748_v2 }
 0x1e6   : > { %3131 = vst [vmem:[%s5874_s29 + $0x50] sm:$0xff] %v3115_v10  ;;  %v2732_v55 = vadd.f32 %v2731_v44, %v2713_v42 }
 0x1e8   : > { %v3070_v61 = vadd.f32 %v3030_v38, %v2732_v55 }
 0x1e9   : > { %v2750_v59 = vpop.f32.mrf.mxu2  ;;  %v2800_v29 = vpop.f32.mrf.mxu1 }
 0x1ea   : > { %v3102_v52 = vmax.f32 %v3070_v61, 0.0 }
 0x1eb   : > { %v2769_v39 = vpop.f32.mrf.mxu3  ;;  %v2781_v18 = vpop.f32.mrf.mxu0 }
 0x1ec   : > { %v3119_v9 = vpack.c.bf16 %v3102_v52, %v3101_v4  ;;  %v2782_v3 = vadd.f32 %v2781_v18, %v2763_v17  ;;  %v2770_v61 = vadd.f32 %v2769_v39, %v2750_v59 }
 0x1ee   : > { %3135 = vst [vmem:[%s5874_s29 + $0x70] sm:$0xff] %v3119_v9  ;;  %v2801_v8 = vadd.f32 %v2800_v29, %v2782_v3 }
 0x1f1   : > { %v2819_v26 = vpop.f32.mrf.mxu2  ;;  %v2802_v15 = vpop.f32.mrf.mxu1 }
 0x1f2   : > { %v2820_v45 = vadd.f32 %v2819_v26, %v2801_v8 }
 0x1f3   : > { %v2838_v12 = vpop.f32.mrf.mxu3  ;;  %v2783_v13 = vpop.f32.mrf.mxu0 }
 0x1f4   : > { %v2784_v58 = vadd.f32 %v2783_v13, %v2765_v20  ;;  %v3047_v31 = vadd.f32 %v3031_v32, %v2820_v45 }
 0x1f6   : > { %v2803_v62 = vadd.f32 %v2802_v15, %v2784_v58  ;;  %v3079_v49 = vmax.f32 %v3047_v31, 0.0  ;;  %v3172_v58 = vld [vmem:[%s5874_s29 + $0x28] sm:$0xff] (%p5100_p9) }
 0x1f7   : > { %3173 = vst [vmem:[%s3149_s30 + $0x48] sm:$0xff] (%p5100_p9), %v3172_v58 }
 0x1f9   : > { %v2821_v43 = vpop.f32.mrf.mxu2  ;;  %v2805_v0 = vpop.f32.mrf.mxu1 }
 0x1fa   : > { %v2822_v19 = vadd.f32 %v2821_v43, %v2803_v62  ;;  %v3190_v62 = vld [vmem:[%s5874_s29 + $0x70] sm:$0xff] (%p5100_p9) }
 0x1fb   : > { %v2840_v22 = vpop.f32.mrf.mxu3  ;;  %v2786_v6 = vpop.f32.mrf.mxu0  ;;  %3191 = vst [vmem:[%s3149_s30 + $0xd0] sm:$0xff] (%p5100_p9), %v3190_v62 }
 0x1fc   : > { %v2787_v50 = vadd.f32 %v2786_v6, %v2768_v1  ;;  %v3055_v36 = vadd.f32 %v3031_v32, %v2822_v19 }
 0x1fe   : > { %v2806_v30 = vadd.f32 %v2805_v0, %v2787_v50  ;;  %v3087_v2 = vmax.f32 %v3055_v36, 0.0 }
 0x201   : > { %v2824_v60 = vpop.f32.mrf.mxu2  ;;  %v2807_v5 = vpop.f32.mrf.mxu1 }
 0x202   : > { %v2825_v7 = vadd.f32 %v2824_v60, %v2806_v30 }
 0x203   : > { %v2843_v27 = vpop.f32.mrf.mxu3  ;;  %v2788_v38 = vpop.f32.mrf.mxu0 }
 0x204   : > { %v2789_v9 = vadd.f32 %v2788_v38, %v2770_v61  ;;  %v3063_v15 = vadd.f32 %v3031_v32, %v2825_v7 }
 0x206   : > { %v2808_v6 = vadd.f32 %v2807_v5, %v2789_v9  ;;  %v3095_v59 = vmax.f32 %v3063_v15, 0.0  ;;  %v3162_v5 = vld [vmem:[%s5874_s29] sm:$0xff] (%p5100_p9) }
 0x207   : > { %3163 = vst [vmem:[%s3149_s30] sm:$0xff] (%p5100_p9), %v3162_v5 }
 0x209   : > { %v2826_v21 = vpop.f32.mrf.mxu2  ;;  %v2876_v48 = vpop.f32.mrf.mxu1 }
 0x20a   : > { %v2827_v39 = vadd.f32 %v2826_v21, %v2808_v6  ;;  %v3164_v21 = vld [vmem:[%s5874_s29 + $0x8] sm:$0xff] (%p5100_p9) }
 0x20b   : > { %v2845_v23 = vpop.f32.mrf.mxu3  ;;  %v2857_v35 = vpop.f32.mrf.mxu0  ;;  %3165 = vst [vmem:[%s3149_s30 + $0x8] sm:$0xff] (%p5100_p9), %v3164_v21 }
 0x20c   : > { %v2858_v24 = vadd.f32 %v2857_v35, %v2838_v12 }
 0x20e   : > { %v2877_v63 = vadd.f32 %v2876_v48, %v2858_v24  ;;  %v3071_v24 = vadd.f32 %v3031_v32, %v2827_v39 }
 0x210   : > { %v3103_v45 = vmax.f32 %v3071_v24, 0.0 }
 0x211   : > { %v2895_v16 = vpop.f32.mrf.mxu2  ;;  %v2878_v46 = vpop.f32.mrf.mxu1 }
 0x212   : > { %v2896_v11 = vadd.f32 %v2895_v16, %v2877_v63  ;;  %v3170_v16 = vld [vmem:[%s5874_s29 + $0x20] sm:$0xff] (%p5100_p9) }
 0x213   : > { %v2914_v14 = vpop.f32.mrf.mxu3  ;;  %v2859_v25 = vpop.f32.mrf.mxu0  ;;  %3171 = vst [vmem:[%s3149_s30 + $0x40] sm:$0xff] (%p5100_p9), %v3170_v16 }
 0x214   : > { %v2915_v40 = vadd.f32 %v2914_v14, %v2896_v11  ;;  %v2860_v54 = vadd.f32 %v2859_v25, %v2840_v22  ;;  %v3174_v11 = vld [vmem:[%s5874_s29 + $0x30] sm:$0xff] (%p5100_p9)  ;;  %v3180_v25 = vld [vmem:[%s5874_s29 + $0x48] sm:$0xff] (%p5100_p9) }
 0x215   : > { %3175 = vst [vmem:[%s3149_s30 + $0x50] sm:$0xff] (%p5100_p9), %v3174_v11 }
 0x216   : > { %v3048_v47 = vadd.f32 %v3032_v37, %v2915_v40  ;;  %v2879_v51 = vadd.f32 %v2878_v46, %v2860_v54  ;;  %v3182_v46 = vld [vmem:[%s5874_s29 + $0x50] sm:$0xff] (%p5100_p9)  ;;  %3181 = vst [vmem:[%s3149_s30 + $0x88] sm:$0xff] (%p5100_p9), %v3180_v25  ;;  %v3186_v40 = vld [vmem:[%s5874_s29 + $0x60] sm:$0xff] (%p5100_p9)  ;;  %v3188_v54 = vld [vmem:[%s5874_s29 + $0x68] sm:$0xff] (%p5100_p9) }
 0x217   : > { %3183 = vst [vmem:[%s3149_s30 + $0x90] sm:$0xff] (%p5100_p9), %v3182_v46 }
 0x218   : > { %v3080_v53 = vmax.f32 %v3048_v47, 0.0  ;;  %3187 = vst [vmem:[%s3149_s30 + $0xc0] sm:$0xff] (%p5100_p9), %v3186_v40 }
 0x219   : > { %v2897_v57 = vpop.f32.mrf.mxu2  ;;  %v2881_v44 = vpop.f32.mrf.mxu1  ;;  %3189 = vst [vmem:[%s3149_s30 + $0xc8] sm:$0xff] (%p5100_p9), %v3188_v54 }
 0x21a   : > { %v3108_v41 = vpack.c.bf16 %v3080_v53, %v3079_v49  ;;  %v2898_v34 = vadd.f32 %v2897_v57, %v2879_v51 }
 0x21b   : > { %v2916_v28 = vpop.f32.mrf.mxu3  ;;  %v2862_v56 = vpop.f32.mrf.mxu0 }
 0x21c   : > { %3124 = vst [vmem:[%s5874_s29 + $0x18] sm:$0xff] %v3108_v41  ;;  %v2917_v10 = vadd.f32 %v2916_v28, %v2898_v34  ;;  %v2863_v42 = vadd.f32 %v2862_v56, %v2843_v27 }
 0x21e   : > { %v3056_v55 = vadd.f32 %v3032_v37, %v2917_v10  ;;  %v2882_v52 = vadd.f32 %v2881_v44, %v2863_v42 }
 0x220   : > { %v3088_v4 = vmax.f32 %v3056_v55, 0.0 }
 0x221   : > { %v2900_v18 = vpop.f32.mrf.mxu2  ;;  %v2883_v0 = vpop.f32.mrf.mxu1 }
 0x222   : > { %v3112_v29 = vpack.c.bf16 %v3088_v4, %v3087_v2  ;;  %v2901_v26 = vadd.f32 %v2900_v18, %v2882_v52 }
 0x223   : > { %v2919_v12 = vpop.f32.mrf.mxu3  ;;  %v2864_v13 = vpop.f32.mrf.mxu0  ;;  %v3168_v32 = vld [vmem:[%s5874_s29 + $0x18] sm:$0xff] (%p5100_p9) }
 0x224   : > { %3128 = vst [vmem:[%s5874_s29 + $0x38] sm:$0xff] %v3112_v29  ;;  %v2920_v43 = vadd.f32 %v2919_v12, %v2901_v26  ;;  %v2865_v22 = vadd.f32 %v2864_v13, %v2845_v23  ;;  %v3166_v23 = vld [vmem:[%s5874_s29 + $0x10] sm:$0xff] (%p5100_p9) }
 0x225   : > { %3167 = vst [vmem:[%s3149_s30 + $0x10] sm:$0xff] (%p5100_p9), %v3166_v23 }
 0x226   : > { %v3064_v27 = vadd.f32 %v3032_v37, %v2920_v43  ;;  %v2884_v17 = vadd.f32 %v2883_v0, %v2865_v22  ;;  %3169 = vst [vmem:[%s3149_s30 + $0x18] sm:$0xff] (%p5100_p9), %v3168_v32 }
 0x228   : > { %v3096_v60 = vmax.f32 %v3064_v27, 0.0 }
 0x229   : > { %v2902_v3 = vpop.f32.mrf.mxu2 }
 0x22a   : > { %v3116_v35 = vpack.c.bf16 %v3096_v60, %v3095_v59  ;;  %v2903_v38 = vadd.f32 %v2902_v3, %v2884_v17 }
 0x22b   : > { %v2921_v48 = vpop.f32.mrf.mxu3  ;;  %v3176_v14 = vld [vmem:[%s5874_s29 + $0x38] sm:$0xff] (%p5100_p9) }
 0x22c   : > { %3132 = vst [vmem:[%s5874_s29 + $0x58] sm:$0xff] %v3116_v35  ;;  %v2922_v8 = vadd.f32 %v2921_v48, %v2903_v38 }
 0x22d   : > { %3177 = vst [vmem:[%s3149_s30 + $0x58] sm:$0xff] (%p5100_p9), %v3176_v14 }
 0x22e   : > { %v3072_v20 = vadd.f32 %v3032_v37, %v2922_v8  ;;  %v3178_v37 = vld [vmem:[%s5874_s29 + $0x40] sm:$0xff] (%p5100_p9) }
 0x22f   : > { %3179 = vst [vmem:[%s3149_s30 + $0x80] sm:$0xff] (%p5100_p9), %v3178_v37 }
 0x230   : > { %v3104_v33 = vmax.f32 %v3072_v20, 0.0  ;;  %3143 = sbr.rel (!%p5100_p9) target bundleno = 573 (0x23d), region = 52 }
 0x232   : > { %v3120_v63 = vpack.c.bf16 %v3104_v33, %v3103_v45 }
 0x233   : > { %v3184_v31 = vld [vmem:[%s5874_s29 + $0x58] sm:$0xff] (%p5100_p9) }
 0x234   : > { %3136 = vst [vmem:[%s5874_s29 + $0x78] sm:$0xff] %v3120_v63 }
 0x235   : > { %3185 = vst [vmem:[%s3149_s30 + $0x98] sm:$0xff] %v3184_v31 }
 0x23b   : > { %v3192_v47 = vld [vmem:[%s5874_s29 + $0x78] sm:$0xff] }
 0x23c   : > { %3193 = vst [vmem:[%s3149_s30 + $0xd8] sm:$0xff] %v3192_v47 }
 0x23d PF: > { %s19_s17 = sadd.s32 1, %s5025_s17   ;;  %s6177_s12 = smov %s5009_s13 }
 0x23e   : > { %p16_p1 = scmp.ge.s32.totalorder %s19_s17, 4   ;;  %s6178_s13 = smov %s5013_s14 }
 0x23f   : > { %s6179_s14 = smov %s5098_s24  ;;  %s6180_s15 = smov %s5021_s16 }
 0x240   : > { %s6181_s16 = smov %s6183_s19  ;;  %18 = sbr.rel (!%p16_p1) target bundleno = 6 (0x6), region = 119 }
 0x245   :  { %3209 = vsyncpa [#allocation4], 1 }
 0x246   :  { %3211 = vsyncpa [#allocation4 + $0x1], 1 }
 0x247   :  { %3212 = vsyncpa [#allocation6], 1 }
 0x248   :  { %3214 = vsyncpa [#allocation6 + $0x1], 1 }

</bundles_post_ra>
